<compile_context>
chip_gen: v7x
topology: tpu7x:2x2x1
jax: 0.10.0
libtpu: 0.0.40
codegen_flags: <defaults>
</compile_context>

<pallas_src>
import functools

import jax
import jax.numpy as jnp
from jax import lax
from jax.experimental import pallas as pl
from jax.experimental.pallas import tpu as pltpu


def _downsample_block_kernel(xp_ref, wd_ref, bd_ref, alpha_ref, wc_ref, bc_ref,
                             o_ref, pad_ref, *, n_convs, Ho, Wo, K, P):
    """One grid step = one image of the batch, fully processed in VMEM.

    xp_ref    : (Ho*Wo, KD*KD*Cin) bf16      folded 2x2 stride-2 patches of this image
    wd_ref    : (KD*KD*Cin, Cout)  bf16      folded downsample-conv weight       (resident)
    bd_ref    : (1, Cout)          f32       downsample-conv bias                (resident)
    alpha_ref : (1, Cout)          f32       PReLU per-channel slope             (resident)
    wc_ref    : (n_convs, K, K*Cout, Cout) bf16  per-kh folded 5x5-conv weights  (resident)
    bc_ref    : (n_convs, 1, Cout) f32       5x5-conv biases                     (resident)
    o_ref     : (Ho*Wo, Cout)                output rows (NHWC order, channels on lanes)
    pad_ref   : (Ho+2P, Wo+2P, Cout) f32     scratch: zero-padded activation for the 5x5 convs
    """
    cout = o_ref.shape[-1]

    # ---- downsample conv2d_block: folded 2x2/stride-2 conv (bf16 MXU, f32 acc) + bias + PReLU ----
    y = jnp.dot(xp_ref[...], wd_ref[...], preferred_element_type=jnp.float32)
    y = y + bd_ref[...]
    alpha = alpha_ref[...]
    y = jnp.where(y > 0, y, alpha * y)                       # nn.PReLU(num_parameters=Cout)

    residual = y                                             # residual_x, kept in VMEM (f32)

    # ---- n_convs x conv2d_block: 5x5 stride-1 pad-2 conv + bias + ReLU --------------------------
    if n_convs > 0:
        # Zero only the P-wide border frame; the interior is fully overwritten each layer and the
        # border is never written afterwards.  (Cheap vs. a full-buffer memset per image.)
        zt = jnp.zeros((P, Wo + 2 * P, cout), pad_ref.dtype)
        pad_ref[0:P, :, :] = zt
        pad_ref[P + Ho:P + Ho + P, :, :] = zt
        zs = jnp.zeros((Ho, P, cout), pad_ref.dtype)
        pad_ref[P:P + Ho, 0:P, :] = zs
        pad_ref[P:P + Ho, P + Wo:P + Wo + P, :] = zs

    cur = y
    for li in range(n_convs):                                # n_convs is a static Python int
        # current activation -> interior of the zero-padded scratch
        pad_ref[P:P + Ho, P:P + Wo, :] = cur.reshape(Ho, Wo, cout)
        # Hoist the kw (sublane-axis) shifts: K realignment copies per layer instead of K*K.
        kw_shift = [pad_ref[:, kw:kw + Wo, :] for kw in range(K)]
        acc = jnp.zeros((Ho * Wo, cout), jnp.float32) + bc_ref[li]
        for kh in range(K):                                  # kh taps = free leading-dim offsets
            group = jnp.concatenate([s[kh:kh + Ho] for s in kw_shift], axis=-1)
            group = group.reshape(Ho * Wo, K * cout)         # (Ho*Wo, 5*Cout) patch slab
            acc = acc + jnp.dot(group.astype(jnp.bfloat16),  # bf16 MXU operands, f32 accumulate
                                wc_ref[li, kh],
                                preferred_element_type=jnp.float32)
        cur = jnp.maximum(acc, 0.0)                          # bn=False -> Identity; ReLU

    # ---- residual add + residual_activation (ReLU); dropout_rate=0 -> Identity ------------------
    out = jnp.maximum(cur + residual, 0.0)
    o_ref[...] = out.astype(o_ref.dtype)


def downsample_block_forward(x, down_w, down_b, prelu_alpha, conv_ws, conv_bs,
                             *, conv_kernel_size=5, conv_stride=1, conv_padding=2,
                             down_kernel=2, down_stride=2, down_padding=0,
                             input_format="NCHW", output_format="NCHW"):
    """Forward of downsample_block with the module's default flags.

    x       : (N, Cin, H, W) if input_format=="NCHW", else (N, H, W, Cin)
    down_w  : (Cout, Cin, 2, 2)  PyTorch Conv2d weight of the downsample block
    down_b  : (Cout,)            its bias
    prelu_alpha : (Cout,)        nn.PReLU(num_parameters=Cout) slope
    conv_ws : (n_convs, Cout, Cout, 5, 5)  stacked 5x5 conv weights
    conv_bs : (n_convs, Cout)              stacked 5x5 conv biases

    Set input_format/output_format to "NHWC" when chaining VNet blocks to avoid the extra
    NCHW<->NHWC HBM passes in the wrapper.
    """
    # TODO(synk): bn=True (BatchNorm2d), dropout_rate>0 (Dropout2d) and custom activation_fn
    #             modules are not implemented (module defaults are Identity / ReLU / PReLU).
    assert conv_stride == 1 and 2 * conv_padding == conv_kernel_size - 1, \
        "conv blocks must preserve spatial size (module defaults k=5, s=1, p=2)"
    assert down_kernel == down_stride and down_padding == 0, \
        "downsample conv supported for the module defaults k=2, s=2, p=0"
    # TODO(synk): overlapping / padded downsample convs (kernel != stride or padding != 0).

    if input_format == "NCHW":
        x_nhwc = jnp.transpose(x, (0, 2, 3, 1))
    else:
        x_nhwc = x
    N, H, W, Cin = x_nhwc.shape
    Cout = down_w.shape[0]
    KD, S = down_kernel, down_stride
    Ho = (H - KD) // S + 1
    Wo = (W - KD) // S + 1
    K, P = conv_kernel_size, conv_padding
    n_convs = int(conv_ws.shape[0]) if conv_ws is not None else 0
    out_dtype = x.dtype

    # Non-overlapping KDxKD / stride-KD patches == pure reshape (no im2col blow-up); bf16 for MXU.
    xp = (x_nhwc[:, :Ho * S, :Wo * S, :]
          .reshape(N, Ho, KD, Wo, KD, Cin)
          .transpose(0, 1, 3, 2, 4, 5)
          .reshape(N, Ho * Wo, KD * KD * Cin)
          .astype(jnp.bfloat16))

    # Conv2d weight (Cout, Cin, kh, kw) -> tap-major folded (kh*kw*Cin, Cout), bf16 MXU operand.
    wd = down_w.transpose(2, 3, 1, 0).reshape(KD * KD * Cin, Cout).astype(jnp.bfloat16)
    bd = down_b.reshape(1, Cout).astype(jnp.float32)
    alpha = prelu_alpha.reshape(1, Cout).astype(jnp.float32)

    if n_convs > 0:
        # (n_convs, Cout, Cin, kh, kw) -> (n_convs, kh, kw, Cin, Cout) -> per-kh folded weights.
        wc = (conv_ws.transpose(0, 3, 4, 2, 1)
              .reshape(n_convs, K, K * Cout, Cout).astype(jnp.bfloat16))
        bc = conv_bs.reshape(n_convs, 1, Cout).astype(jnp.float32)
    else:  # keep pallas_call inputs non-empty; kernel skips the conv loop statically
        wc = jnp.zeros((1, K, K * Cout, Cout), dtype=jnp.bfloat16)
        bc = jnp.zeros((1, 1, Cout), dtype=jnp.float32)
    n_eff = wc.shape[0]

    kernel = functools.partial(_downsample_block_kernel,
                               n_convs=n_convs, Ho=Ho, Wo=Wo, K=K, P=P)

    # Explicit VMEM budget: pipelined xp/out blocks + resident weights + pad scratch + live temps.
    out_bytes = jnp.dtype(out_dtype).itemsize
    est = (2 * Ho * Wo * KD * KD * Cin * 2                       # xp (bf16, double-buffered)
           + 2 * Ho * Wo * Cout * out_bytes                      # out block (double-buffered)
           + (KD * KD * Cin * Cout + n_eff * K * K * Cout * Cout) * 2   # resident weights (bf16)
           + (2 + n_eff) * Cout * 4                              # biases + PReLU slope (f32)
           + (Ho + 2 * P) * (Wo + 2 * P) * Cout * 4              # pad scratch (f32)
           + (K + 1) * (Ho + 2 * P) * Wo * Cout * 4              # hoisted kw-shift slices
           + Ho * Wo * K * Cout * (4 + 2)                        # per-kh group slab (f32 + bf16)
           + 6 * Ho * Wo * Cout * 4)                             # y / residual / acc / cur temps
    vmem_limit = int(min(64 * 2 ** 20, max(4 * 2 ** 20, 2 * est)))

    def _call(single_buffer_weights):
        # Resident operands never change across the grid -> single buffering saves VMEM.
        res_kw = {"pipeline_mode": pl.Buffered(1)} if single_buffer_weights else {}
        grid_spec = pltpu.PrefetchScalarGridSpec(
            num_scalar_prefetch=0,
            grid=(N,),
            in_specs=[
                pl.BlockSpec((None, Ho * Wo, KD * KD * Cin), lambda n: (n, 0, 0)),
                pl.BlockSpec((KD * KD * Cin, Cout), lambda n: (0, 0), **res_kw),
                pl.BlockSpec((1, Cout), lambda n: (0, 0), **res_kw),
                pl.BlockSpec((1, Cout), lambda n: (0, 0), **res_kw),
                pl.BlockSpec((n_eff, K, K * Cout, Cout), lambda n: (0, 0, 0, 0), **res_kw),
                pl.BlockSpec((n_eff, 1, Cout), lambda n: (0, 0, 0), **res_kw),
            ],
            out_specs=pl.BlockSpec((None, Ho * Wo, Cout), lambda n: (n, 0, 0)),
            scratch_shapes=[pltpu.VMEM((Ho + 2 * P, Wo + 2 * P, Cout), jnp.float32)],
        )
        return pl.pallas_call(
            kernel,
            out_shape=jax.ShapeDtypeStruct((N, Ho * Wo, Cout), out_dtype),
            grid_spec=grid_spec,
            compiler_params=pltpu.CompilerParams(
                dimension_semantics=("parallel",),       # batch steps independent (megacore split)
                vmem_limit_bytes=vmem_limit),
        )(xp, wd, bd, alpha, wc, bc)

    try:
        out = _call(True)
    except Exception:
        # Fallback: pipeline_mode=pl.Buffered(1) unsupported -> default double-buffered residents.
        out = _call(False)

    out = out.reshape(N, Ho, Wo, Cout)
    if output_format == "NCHW":
        out = out.transpose(0, 3, 1, 2)                  # wrapper glue only (skip by chaining NHWC)
    return out


if __name__ == "__main__":
    key = jax.random.PRNGKey(0)
    k = jax.random.split(key, 6)

    N, Cin, Cout, H, W = 2, 4, 8, 16, 16
    n_convs, K, P = 2, 5, 2

    x = jax.random.normal(k[0], (N, Cin, H, W), dtype=jnp.float32)
    down_w = 0.2 * jax.random.normal(k[1], (Cout, Cin, 2, 2), dtype=jnp.float32)
    down_b = 0.1 * jax.random.normal(k[2], (Cout,), dtype=jnp.float32)
    prelu_alpha = 0.25 + 0.05 * jax.random.normal(k[3], (Cout,), dtype=jnp.float32)
    conv_ws = 0.1 * jax.random.normal(k[4], (n_convs, Cout, Cout, K, K), dtype=jnp.float32)
    conv_bs = 0.1 * jax.random.normal(k[5], (n_convs, Cout), dtype=jnp.float32)

    out = downsample_block_forward(x, down_w, down_b, prelu_alpha, conv_ws, conv_bs)
    out = jax.block_until_ready(out)

    # Reference: the same forward with XLA convolutions in f32.
    dn = ("NCHW", "OIHW", "NCHW")
    y = lax.conv_general_dilated(x, down_w, (2, 2), [(0, 0), (0, 0)], dimension_numbers=dn,
                                 precision=lax.Precision.HIGHEST)
    y = y + down_b[None, :, None, None]
    y = jnp.where(y > 0, y, prelu_alpha[None, :, None, None] * y)       # PReLU
    res = y
    for i in range(n_convs):
        y = lax.conv_general_dilated(y, conv_ws[i], (1, 1), [(P, P), (P, P)],
                                     dimension_numbers=dn, precision=lax.Precision.HIGHEST)
        y = jnp.maximum(y + conv_bs[i][None, :, None, None], 0.0)
    ref = jnp.maximum(y + res, 0.0)

    assert out.shape == (N, Cout, H // 2, W // 2), out.shape
    err = float(jnp.max(jnp.abs(out - ref)))
    # Kernel uses bf16 MXU operands with f32 accumulation -> looser tolerance than a pure-f32 run.
    assert jnp.allclose(out, ref, atol=1e-1, rtol=5e-2), f"max abs err = {err}"
    print("KERNEL_OK")
</pallas_src>

<mosaic_0001>
module attributes {stable_mosaic.version = 11 : i64} {
  func.func @_downsample_block_kernel(%arg0: i32, %arg1: memref<1x64x16xbf16, #tpu.memory_space<vmem>>, %arg2: memref<16x8xbf16, #tpu.memory_space<vmem>>, %arg3: memref<1x8xf32, #tpu.memory_space<vmem>>, %arg4: memref<1x8xf32, #tpu.memory_space<vmem>>, %arg5: memref<2x5x40x8xbf16, #tpu.memory_space<vmem>>, %arg6: memref<2x1x8xf32, #tpu.memory_space<vmem>>, %arg7: memref<1x64x8xf32, #tpu.memory_space<vmem>>, %arg8: memref<12x12x8xf32, #tpu.memory_space<vmem>>) attributes {dimension_semantics = [#tpu.dimension_semantics<parallel>], iteration_bounds = array<i64: 2>, scalar_prefetch = 0 : i64, scratch_operands = 1 : i64, tpu.core_type = #tpu.core_type<tc>, window_params = [{transform_indices = @transform_0, window_bounds = array<i64: 1, 64, 16>}, {pipeline_mode = #tpu.pipeline_mode<synchronous>, transform_indices = @transform_1, window_bounds = array<i64: 16, 8>}, {pipeline_mode = #tpu.pipeline_mode<synchronous>, transform_indices = @transform_2, window_bounds = array<i64: 1, 8>}, {pipeline_mode = #tpu.pipeline_mode<synchronous>, transform_indices = @transform_3, window_bounds = array<i64: 1, 8>}, {pipeline_mode = #tpu.pipeline_mode<synchronous>, transform_indices = @transform_4, window_bounds = array<i64: 2, 5, 40, 8>}, {pipeline_mode = #tpu.pipeline_mode<synchronous>, transform_indices = @transform_5, window_bounds = array<i64: 2, 1, 8>}, {transform_indices = @transform_6, window_bounds = array<i64: 1, 64, 8>}]} {
    %c0 = arith.constant 0 : index
    %c0_0 = arith.constant 0 : index
    %c0_1 = arith.constant 0 : index
    %0 = vector.load %arg1[%c0, %c0_0, %c0_1] : memref<1x64x16xbf16, #tpu.memory_space<vmem>>, vector<1x64x16xbf16>
    %1 = vector.shape_cast %0 : vector<1x64x16xbf16> to vector<64x16xbf16>
    %c0_2 = arith.constant 0 : index
    %c0_3 = arith.constant 0 : index
    %2 = vector.load %arg2[%c0_2, %c0_3] : memref<16x8xbf16, #tpu.memory_space<vmem>>, vector<16x8xbf16>
    %cst = arith.constant dense<0.000000e+00> : vector<64x8xf32>
    %3 = tpu.matmul %1, %2, %cst {dimension_numbers = #tpu.dot_dimension_numbers<[1], [0], [0], [1], [0, 0, 1, 1], [], []>} : vector<64x16xbf16>, vector<16x8xbf16>, vector<64x8xf32> -> vector<64x8xf32>
    %c0_4 = arith.constant 0 : index
    %c0_5 = arith.constant 0 : index
    %4 = vector.load %arg3[%c0_4, %c0_5] : memref<1x8xf32, #tpu.memory_space<vmem>>, vector<1x8xf32>
    %5 = vector.broadcast %4 : vector<1x8xf32> to vector<64x8xf32>
    %6 = arith.addf %3, %5 : vector<64x8xf32>
    %c0_6 = arith.constant 0 : index
    %c0_7 = arith.constant 0 : index
    %7 = vector.load %arg4[%c0_6, %c0_7] : memref<1x8xf32, #tpu.memory_space<vmem>>, vector<1x8xf32>
    %cst_8 = arith.constant 0.000000e+00 : f32
    %8 = vector.broadcast %cst_8 : f32 to vector<64x8xf32>
    %9 = arith.cmpf ogt, %6, %8 : vector<64x8xf32>
    %10 = vector.broadcast %7 : vector<1x8xf32> to vector<64x8xf32>
    %11 = arith.mulf %10, %6 : vector<64x8xf32>
    %12 = arith.select %9, %6, %11 : vector<64x8xi1>, vector<64x8xf32>
    %cst_9 = arith.constant 0.000000e+00 : f32
    %13 = vector.broadcast %cst_9 : f32 to vector<2x12x8xf32>
    %c0_10 = arith.constant 0 : index
    %c0_11 = arith.constant 0 : index
    %c0_12 = arith.constant 0 : index
    %14 = vector.load %arg8[%c0_10, %c0_11, %c0_12] : memref<12x12x8xf32, #tpu.memory_space<vmem>>, vector<2x12x8xf32>
    tpu.vector_store %arg8[%c0_10, %c0_11, %c0_12], %13 {strides = array<i32>} : memref<12x12x8xf32, #tpu.memory_space<vmem>>, vector<2x12x8xf32>,
    %c10 = arith.constant 10 : index
    %c0_13 = arith.constant 0 : index
    %c0_14 = arith.constant 0 : index
    %15 = vector.load %arg8[%c10, %c0_13, %c0_14] : memref<12x12x8xf32, #tpu.memory_space<vmem>>, vector<2x12x8xf32>
    tpu.vector_store %arg8[%c10, %c0_13, %c0_14], %13 {strides = array<i32>} : memref<12x12x8xf32, #tpu.memory_space<vmem>>, vector<2x12x8xf32>,
    %cst_15 = arith.constant 0.000000e+00 : f32
    %16 = vector.broadcast %cst_15 : f32 to vector<8x2x8xf32>
    %c2 = arith.constant 2 : index
    %c0_16 = arith.constant 0 : index
    %c0_17 = arith.constant 0 : index
    %17 = vector.load %arg8[%c2, %c0_16, %c0_17] : memref<12x12x8xf32, #tpu.memory_space<vmem>>, vector<8x2x8xf32>
    tpu.vector_store %arg8[%c2, %c0_16, %c0_17], %16 {strides = array<i32>} : memref<12x12x8xf32, #tpu.memory_space<vmem>>, vector<8x2x8xf32>,
    %c2_18 = arith.constant 2 : index
    %c10_19 = arith.constant 10 : index
    %c0_20 = arith.constant 0 : index
    %18 = vector.load %arg8[%c2_18, %c10_19, %c0_20] : memref<12x12x8xf32, #tpu.memory_space<vmem>>, vector<8x2x8xf32>
    tpu.vector_store %arg8[%c2_18, %c10_19, %c0_20], %16 {strides = array<i32>} : memref<12x12x8xf32, #tpu.memory_space<vmem>>, vector<8x2x8xf32>,
    %19 = vector.shape_cast %12 : vector<64x8xf32> to vector<8x8x8xf32>
    %c2_21 = arith.constant 2 : index
    %c2_22 = arith.constant 2 : index
    %c0_23 = arith.constant 0 : index
    %20 = vector.load %arg8[%c2_21, %c2_22, %c0_23] : memref<12x12x8xf32, #tpu.memory_space<vmem>>, vector<8x8x8xf32>
    tpu.vector_store %arg8[%c2_21, %c2_22, %c0_23], %19 {strides = array<i32>} : memref<12x12x8xf32, #tpu.memory_space<vmem>>, vector<8x8x8xf32>,
    %c0_24 = arith.constant 0 : index
    %c0_25 = arith.constant 0 : index
    %c0_26 = arith.constant 0 : index
    %21 = vector.load %arg8[%c0_24, %c0_25, %c0_26] : memref<12x12x8xf32, #tpu.memory_space<vmem>>, vector<12x8x8xf32>
    %c0_27 = arith.constant 0 : index
    %c1 = arith.constant 1 : index
    %c0_28 = arith.constant 0 : index
    %22 = vector.load %arg8[%c0_27, %c1, %c0_28] : memref<12x12x8xf32, #tpu.memory_space<vmem>>, vector<12x8x8xf32>
    %c0_29 = arith.constant 0 : index
    %c2_30 = arith.constant 2 : index
    %c0_31 = arith.constant 0 : index
    %23 = vector.load %arg8[%c0_29, %c2_30, %c0_31] : memref<12x12x8xf32, #tpu.memory_space<vmem>>, vector<12x8x8xf32>
    %c0_32 = arith.constant 0 : index
    %c3 = arith.constant 3 : index
    %c0_33 = arith.constant 0 : index
    %24 = vector.load %arg8[%c0_32, %c3, %c0_33] : memref<12x12x8xf32, #tpu.memory_space<vmem>>, vector<12x8x8xf32>
    %c0_34 = arith.constant 0 : index
    %c4 = arith.constant 4 : index
    %c0_35 = arith.constant 0 : index
    %25 = vector.load %arg8[%c0_34, %c4, %c0_35] : memref<12x12x8xf32, #tpu.memory_space<vmem>>, vector<12x8x8xf32>
    %cst_36 = arith.constant 0.000000e+00 : f32
    %26 = vector.broadcast %cst_36 : f32 to vector<64x8xf32>
    %c0_37 = arith.constant 0 : index
    %c0_38 = arith.constant 0 : index
    %c0_39 = arith.constant 0 : index
    %27 = vector.load %arg6[%c0_37, %c0_38, %c0_39] : memref<2x1x8xf32, #tpu.memory_space<vmem>>, vector<1x1x8xf32>
    %28 = vector.shape_cast %27 : vector<1x1x8xf32> to vector<1x8xf32>
    %29 = vector.broadcast %28 : vector<1x8xf32> to vector<64x8xf32>
    %30 = arith.addf %26, %29 : vector<64x8xf32>
    %31 = vector.extract_strided_slice %21 {offsets = [0, 0, 0], sizes = [8, 8, 8], strides = [1, 1, 1]} : vector<12x8x8xf32> to vector<8x8x8xf32>
    %32 = vector.extract_strided_slice %22 {offsets = [0, 0, 0], sizes = [8, 8, 8], strides = [1, 1, 1]} : vector<12x8x8xf32> to vector<8x8x8xf32>
    %33 = vector.extract_strided_slice %23 {offsets = [0, 0, 0], sizes = [8, 8, 8], strides = [1, 1, 1]} : vector<12x8x8xf32> to vector<8x8x8xf32>
    %34 = vector.extract_strided_slice %24 {offsets = [0, 0, 0], sizes = [8, 8, 8], strides = [1, 1, 1]} : vector<12x8x8xf32> to vector<8x8x8xf32>
    %35 = vector.extract_strided_slice %25 {offsets = [0, 0, 0], sizes = [8, 8, 8], strides = [1, 1, 1]} : vector<12x8x8xf32> to vector<8x8x8xf32>
    %36 = tpu.concatenate %31, %32, %33, %34, %35 in 2 : vector<8x8x8xf32>, vector<8x8x8xf32>, vector<8x8x8xf32>, vector<8x8x8xf32>, vector<8x8x8xf32> -> vector<8x8x40xf32>
    %37 = vector.shape_cast %36 : vector<8x8x40xf32> to vector<64x40xf32>
    %38 = arith.truncf %37 : vector<64x40xf32> to vector<64x40xbf16>
    %c0_40 = arith.constant 0 : index
    %c0_41 = arith.constant 0 : index
    %c0_42 = arith.constant 0 : index
    %c0_43 = arith.constant 0 : index
    %39 = vector.load %arg5[%c0_40, %c0_41, %c0_42, %c0_43] : memref<2x5x40x8xbf16, #tpu.memory_space<vmem>>, vector<1x1x40x8xbf16>
    %40 = vector.shape_cast %39 : vector<1x1x40x8xbf16> to vector<40x8xbf16>
    %cst_44 = arith.constant dense<0.000000e+00> : vector<64x8xf32>
    %41 = tpu.matmul %38, %40, %cst_44 {dimension_numbers = #tpu.dot_dimension_numbers<[1], [0], [0], [1], [0, 0, 1, 1], [], []>} : vector<64x40xbf16>, vector<40x8xbf16>, vector<64x8xf32> -> vector<64x8xf32>
    %42 = arith.addf %30, %41 : vector<64x8xf32>
    %43 = vector.extract_strided_slice %21 {offsets = [1, 0, 0], sizes = [8, 8, 8], strides = [1, 1, 1]} : vector<12x8x8xf32> to vector<8x8x8xf32>
    %44 = vector.extract_strided_slice %22 {offsets = [1, 0, 0], sizes = [8, 8, 8], strides = [1, 1, 1]} : vector<12x8x8xf32> to vector<8x8x8xf32>
    %45 = vector.extract_strided_slice %23 {offsets = [1, 0, 0], sizes = [8, 8, 8], strides = [1, 1, 1]} : vector<12x8x8xf32> to vector<8x8x8xf32>
    %46 = vector.extract_strided_slice %24 {offsets = [1, 0, 0], sizes = [8, 8, 8], strides = [1, 1, 1]} : vector<12x8x8xf32> to vector<8x8x8xf32>
    %47 = vector.extract_strided_slice %25 {offsets = [1, 0, 0], sizes = [8, 8, 8], strides = [1, 1, 1]} : vector<12x8x8xf32> to vector<8x8x8xf32>
    %48 = tpu.concatenate %43, %44, %45, %46, %47 in 2 : vector<8x8x8xf32>, vector<8x8x8xf32>, vector<8x8x8xf32>, vector<8x8x8xf32>, vector<8x8x8xf32> -> vector<8x8x40xf32>
    %49 = vector.shape_cast %48 : vector<8x8x40xf32> to vector<64x40xf32>
    %50 = arith.truncf %49 : vector<64x40xf32> to vector<64x40xbf16>
    %c0_45 = arith.constant 0 : index
    %c1_46 = arith.constant 1 : index
    %c0_47 = arith.constant 0 : index
    %c0_48 = arith.constant 0 : index
    %51 = vector.load %arg5[%c0_45, %c1_46, %c0_47, %c0_48] : memref<2x5x40x8xbf16, #tpu.memory_space<vmem>>, vector<1x1x40x8xbf16>
    %52 = vector.shape_cast %51 : vector<1x1x40x8xbf16> to vector<40x8xbf16>
    %cst_49 = arith.constant dense<0.000000e+00> : vector<64x8xf32>
    %53 = tpu.matmul %50, %52, %cst_49 {dimension_numbers = #tpu.dot_dimension_numbers<[1], [0], [0], [1], [0, 0, 1, 1], [], []>} : vector<64x40xbf16>, vector<40x8xbf16>, vector<64x8xf32> -> vector<64x8xf32>
    %54 = arith.addf %42, %53 : vector<64x8xf32>
    %55 = vector.extract_strided_slice %21 {offsets = [2, 0, 0], sizes = [8, 8, 8], strides = [1, 1, 1]} : vector<12x8x8xf32> to vector<8x8x8xf32>
    %56 = vector.extract_strided_slice %22 {offsets = [2, 0, 0], sizes = [8, 8, 8], strides = [1, 1, 1]} : vector<12x8x8xf32> to vector<8x8x8xf32>
    %57 = vector.extract_strided_slice %23 {offsets = [2, 0, 0], sizes = [8, 8, 8], strides = [1, 1, 1]} : vector<12x8x8xf32> to vector<8x8x8xf32>
    %58 = vector.extract_strided_slice %24 {offsets = [2, 0, 0], sizes = [8, 8, 8], strides = [1, 1, 1]} : vector<12x8x8xf32> to vector<8x8x8xf32>
    %59 = vector.extract_strided_slice %25 {offsets = [2, 0, 0], sizes = [8, 8, 8], strides = [1, 1, 1]} : vector<12x8x8xf32> to vector<8x8x8xf32>
    %60 = tpu.concatenate %55, %56, %57, %58, %59 in 2 : vector<8x8x8xf32>, vector<8x8x8xf32>, vector<8x8x8xf32>, vector<8x8x8xf32>, vector<8x8x8xf32> -> vector<8x8x40xf32>
    %61 = vector.shape_cast %60 : vector<8x8x40xf32> to vector<64x40xf32>
    %62 = arith.truncf %61 : vector<64x40xf32> to vector<64x40xbf16>
    %c0_50 = arith.constant 0 : index
    %c2_51 = arith.constant 2 : index
    %c0_52 = arith.constant 0 : index
    %c0_53 = arith.constant 0 : index
    %63 = vector.load %arg5[%c0_50, %c2_51, %c0_52, %c0_53] : memref<2x5x40x8xbf16, #tpu.memory_space<vmem>>, vector<1x1x40x8xbf16>
    %64 = vector.shape_cast %63 : vector<1x1x40x8xbf16> to vector<40x8xbf16>
    %cst_54 = arith.constant dense<0.000000e+00> : vector<64x8xf32>
    %65 = tpu.matmul %62, %64, %cst_54 {dimension_numbers = #tpu.dot_dimension_numbers<[1], [0], [0], [1], [0, 0, 1, 1], [], []>} : vector<64x40xbf16>, vector<40x8xbf16>, vector<64x8xf32> -> vector<64x8xf32>
    %66 = arith.addf %54, %65 : vector<64x8xf32>
    %67 = vector.extract_strided_slice %21 {offsets = [3, 0, 0], sizes = [8, 8, 8], strides = [1, 1, 1]} : vector<12x8x8xf32> to vector<8x8x8xf32>
    %68 = vector.extract_strided_slice %22 {offsets = [3, 0, 0], sizes = [8, 8, 8], strides = [1, 1, 1]} : vector<12x8x8xf32> to vector<8x8x8xf32>
    %69 = vector.extract_strided_slice %23 {offsets = [3, 0, 0], sizes = [8, 8, 8], strides = [1, 1, 1]} : vector<12x8x8xf32> to vector<8x8x8xf32>
    %70 = vector.extract_strided_slice %24 {offsets = [3, 0, 0], sizes = [8, 8, 8], strides = [1, 1, 1]} : vector<12x8x8xf32> to vector<8x8x8xf32>
    %71 = vector.extract_strided_slice %25 {offsets = [3, 0, 0], sizes = [8, 8, 8], strides = [1, 1, 1]} : vector<12x8x8xf32> to vector<8x8x8xf32>
    %72 = tpu.concatenate %67, %68, %69, %70, %71 in 2 : vector<8x8x8xf32>, vector<8x8x8xf32>, vector<8x8x8xf32>, vector<8x8x8xf32>, vector<8x8x8xf32> -> vector<8x8x40xf32>
    %73 = vector.shape_cast %72 : vector<8x8x40xf32> to vector<64x40xf32>
    %74 = arith.truncf %73 : vector<64x40xf32> to vector<64x40xbf16>
    %c0_55 = arith.constant 0 : index
    %c3_56 = arith.constant 3 : index
    %c0_57 = arith.constant 0 : index
    %c0_58 = arith.constant 0 : index
    %75 = vector.load %arg5[%c0_55, %c3_56, %c0_57, %c0_58] : memref<2x5x40x8xbf16, #tpu.memory_space<vmem>>, vector<1x1x40x8xbf16>
    %76 = vector.shape_cast %75 : vector<1x1x40x8xbf16> to vector<40x8xbf16>
    %cst_59 = arith.constant dense<0.000000e+00> : vector<64x8xf32>
    %77 = tpu.matmul %74, %76, %cst_59 {dimension_numbers = #tpu.dot_dimension_numbers<[1], [0], [0], [1], [0, 0, 1, 1], [], []>} : vector<64x40xbf16>, vector<40x8xbf16>, vector<64x8xf32> -> vector<64x8xf32>
    %78 = arith.addf %66, %77 : vector<64x8xf32>
    %79 = vector.extract_strided_slice %21 {offsets = [4, 0, 0], sizes = [8, 8, 8], strides = [1, 1, 1]} : vector<12x8x8xf32> to vector<8x8x8xf32>
    %80 = vector.extract_strided_slice %22 {offsets = [4, 0, 0], sizes = [8, 8, 8], strides = [1, 1, 1]} : vector<12x8x8xf32> to vector<8x8x8xf32>
    %81 = vector.extract_strided_slice %23 {offsets = [4, 0, 0], sizes = [8, 8, 8], strides = [1, 1, 1]} : vector<12x8x8xf32> to vector<8x8x8xf32>
    %82 = vector.extract_strided_slice %24 {offsets = [4, 0, 0], sizes = [8, 8, 8], strides = [1, 1, 1]} : vector<12x8x8xf32> to vector<8x8x8xf32>
    %83 = vector.extract_strided_slice %25 {offsets = [4, 0, 0], sizes = [8, 8, 8], strides = [1, 1, 1]} : vector<12x8x8xf32> to vector<8x8x8xf32>
    %84 = tpu.concatenate %79, %80, %81, %82, %83 in 2 : vector<8x8x8xf32>, vector<8x8x8xf32>, vector<8x8x8xf32>, vector<8x8x8xf32>, vector<8x8x8xf32> -> vector<8x8x40xf32>
    %85 = vector.shape_cast %84 : vector<8x8x40xf32> to vector<64x40xf32>
    %86 = arith.truncf %85 : vector<64x40xf32> to vector<64x40xbf16>
    %c0_60 = arith.constant 0 : index
    %c4_61 = arith.constant 4 : index
    %c0_62 = arith.constant 0 : index
    %c0_63 = arith.constant 0 : index
    %87 = vector.load %arg5[%c0_60, %c4_61, %c0_62, %c0_63] : memref<2x5x40x8xbf16, #tpu.memory_space<vmem>>, vector<1x1x40x8xbf16>
    %88 = vector.shape_cast %87 : vector<1x1x40x8xbf16> to vector<40x8xbf16>
    %cst_64 = arith.constant dense<0.000000e+00> : vector<64x8xf32>
    %89 = tpu.matmul %86, %88, %cst_64 {dimension_numbers = #tpu.dot_dimension_numbers<[1], [0], [0], [1], [0, 0, 1, 1], [], []>} : vector<64x40xbf16>, vector<40x8xbf16>, vector<64x8xf32> -> vector<64x8xf32>
    %90 = arith.addf %78, %89 : vector<64x8xf32>
    %cst_65 = arith.constant 0.000000e+00 : f32
    %91 = vector.broadcast %cst_65 : f32 to vector<64x8xf32>
    %92 = arith.maximumf %90, %91 : vector<64x8xf32>
    %93 = vector.shape_cast %92 : vector<64x8xf32> to vector<8x8x8xf32>
    %c2_66 = arith.constant 2 : index
    %c2_67 = arith.constant 2 : index
    %c0_68 = arith.constant 0 : index
    %94 = vector.load %arg8[%c2_66, %c2_67, %c0_68] : memref<12x12x8xf32, #tpu.memory_space<vmem>>, vector<8x8x8xf32>
    tpu.vector_store %arg8[%c2_66, %c2_67, %c0_68], %93 {strides = array<i32>} : memref<12x12x8xf32, #tpu.memory_space<vmem>>, vector<8x8x8xf32>,
    %c0_69 = arith.constant 0 : index
    %c0_70 = arith.constant 0 : index
    %c0_71 = arith.constant 0 : index
    %95 = vector.load %arg8[%c0_69, %c0_70, %c0_71] : memref<12x12x8xf32, #tpu.memory_space<vmem>>, vector<12x8x8xf32>
    %c0_72 = arith.constant 0 : index
    %c1_73 = arith.constant 1 : index
    %c0_74 = arith.constant 0 : index
    %96 = vector.load %arg8[%c0_72, %c1_73, %c0_74] : memref<12x12x8xf32, #tpu.memory_space<vmem>>, vector<12x8x8xf32>
    %c0_75 = arith.constant 0 : index
    %c2_76 = arith.constant 2 : index
    %c0_77 = arith.constant 0 : index
    %97 = vector.load %arg8[%c0_75, %c2_76, %c0_77] : memref<12x12x8xf32, #tpu.memory_space<vmem>>, vector<12x8x8xf32>
    %c0_78 = arith.constant 0 : index
    %c3_79 = arith.constant 3 : index
    %c0_80 = arith.constant 0 : index
    %98 = vector.load %arg8[%c0_78, %c3_79, %c0_80] : memref<12x12x8xf32, #tpu.memory_space<vmem>>, vector<12x8x8xf32>
    %c0_81 = arith.constant 0 : index
    %c4_82 = arith.constant 4 : index
    %c0_83 = arith.constant 0 : index
    %99 = vector.load %arg8[%c0_81, %c4_82, %c0_83] : memref<12x12x8xf32, #tpu.memory_space<vmem>>, vector<12x8x8xf32>
    %cst_84 = arith.constant 0.000000e+00 : f32
    %100 = vector.broadcast %cst_84 : f32 to vector<64x8xf32>
    %c1_85 = arith.constant 1 : index
    %c0_86 = arith.constant 0 : index
    %c0_87 = arith.constant 0 : index
    %101 = vector.load %arg6[%c1_85, %c0_86, %c0_87] : memref<2x1x8xf32, #tpu.memory_space<vmem>>, vector<1x1x8xf32>
    %102 = vector.shape_cast %101 : vector<1x1x8xf32> to vector<1x8xf32>
    %103 = vector.broadcast %102 : vector<1x8xf32> to vector<64x8xf32>
    %104 = arith.addf %100, %103 : vector<64x8xf32>
    %105 = vector.extract_strided_slice %95 {offsets = [0, 0, 0], sizes = [8, 8, 8], strides = [1, 1, 1]} : vector<12x8x8xf32> to vector<8x8x8xf32>
    %106 = vector.extract_strided_slice %96 {offsets = [0, 0, 0], sizes = [8, 8, 8], strides = [1, 1, 1]} : vector<12x8x8xf32> to vector<8x8x8xf32>
    %107 = vector.extract_strided_slice %97 {offsets = [0, 0, 0], sizes = [8, 8, 8], strides = [1, 1, 1]} : vector<12x8x8xf32> to vector<8x8x8xf32>
    %108 = vector.extract_strided_slice %98 {offsets = [0, 0, 0], sizes = [8, 8, 8], strides = [1, 1, 1]} : vector<12x8x8xf32> to vector<8x8x8xf32>
    %109 = vector.extract_strided_slice %99 {offsets = [0, 0, 0], sizes = [8, 8, 8], strides = [1, 1, 1]} : vector<12x8x8xf32> to vector<8x8x8xf32>
    %110 = tpu.concatenate %105, %106, %107, %108, %109 in 2 : vector<8x8x8xf32>, vector<8x8x8xf32>, vector<8x8x8xf32>, vector<8x8x8xf32>, vector<8x8x8xf32> -> vector<8x8x40xf32>
    %111 = vector.shape_cast %110 : vector<8x8x40xf32> to vector<64x40xf32>
    %112 = arith.truncf %111 : vector<64x40xf32> to vector<64x40xbf16>
    %c1_88 = arith.constant 1 : index
    %c0_89 = arith.constant 0 : index
    %c0_90 = arith.constant 0 : index
    %c0_91 = arith.constant 0 : index
    %113 = vector.load %arg5[%c1_88, %c0_89, %c0_90, %c0_91] : memref<2x5x40x8xbf16, #tpu.memory_space<vmem>>, vector<1x1x40x8xbf16>
    %114 = vector.shape_cast %113 : vector<1x1x40x8xbf16> to vector<40x8xbf16>
    %cst_92 = arith.constant dense<0.000000e+00> : vector<64x8xf32>
    %115 = tpu.matmul %112, %114, %cst_92 {dimension_numbers = #tpu.dot_dimension_numbers<[1], [0], [0], [1], [0, 0, 1, 1], [], []>} : vector<64x40xbf16>, vector<40x8xbf16>, vector<64x8xf32> -> vector<64x8xf32>
    %116 = arith.addf %104, %115 : vector<64x8xf32>
    %117 = vector.extract_strided_slice %95 {offsets = [1, 0, 0], sizes = [8, 8, 8], strides = [1, 1, 1]} : vector<12x8x8xf32> to vector<8x8x8xf32>
    %118 = vector.extract_strided_slice %96 {offsets = [1, 0, 0], sizes = [8, 8, 8], strides = [1, 1, 1]} : vector<12x8x8xf32> to vector<8x8x8xf32>
    %119 = vector.extract_strided_slice %97 {offsets = [1, 0, 0], sizes = [8, 8, 8], strides = [1, 1, 1]} : vector<12x8x8xf32> to vector<8x8x8xf32>
    %120 = vector.extract_strided_slice %98 {offsets = [1, 0, 0], sizes = [8, 8, 8], strides = [1, 1, 1]} : vector<12x8x8xf32> to vector<8x8x8xf32>
    %121 = vector.extract_strided_slice %99 {offsets = [1, 0, 0], sizes = [8, 8, 8], strides = [1, 1, 1]} : vector<12x8x8xf32> to vector<8x8x8xf32>
    %122 = tpu.concatenate %117, %118, %119, %120, %121 in 2 : vector<8x8x8xf32>, vector<8x8x8xf32>, vector<8x8x8xf32>, vector<8x8x8xf32>, vector<8x8x8xf32> -> vector<8x8x40xf32>
    %123 = vector.shape_cast %122 : vector<8x8x40xf32> to vector<64x40xf32>
    %124 = arith.truncf %123 : vector<64x40xf32> to vector<64x40xbf16>
    %c1_93 = arith.constant 1 : index
    %c1_94 = arith.constant 1 : index
    %c0_95 = arith.constant 0 : index
    %c0_96 = arith.constant 0 : index
    %125 = vector.load %arg5[%c1_93, %c1_94, %c0_95, %c0_96] : memref<2x5x40x8xbf16, #tpu.memory_space<vmem>>, vector<1x1x40x8xbf16>
    %126 = vector.shape_cast %125 : vector<1x1x40x8xbf16> to vector<40x8xbf16>
    %cst_97 = arith.constant dense<0.000000e+00> : vector<64x8xf32>
    %127 = tpu.matmul %124, %126, %cst_97 {dimension_numbers = #tpu.dot_dimension_numbers<[1], [0], [0], [1], [0, 0, 1, 1], [], []>} : vector<64x40xbf16>, vector<40x8xbf16>, vector<64x8xf32> -> vector<64x8xf32>
    %128 = arith.addf %116, %127 : vector<64x8xf32>
    %129 = vector.extract_strided_slice %95 {offsets = [2, 0, 0], sizes = [8, 8, 8], strides = [1, 1, 1]} : vector<12x8x8xf32> to vector<8x8x8xf32>
    %130 = vector.extract_strided_slice %96 {offsets = [2, 0, 0], sizes = [8, 8, 8], strides = [1, 1, 1]} : vector<12x8x8xf32> to vector<8x8x8xf32>
    %131 = vector.extract_strided_slice %97 {offsets = [2, 0, 0], sizes = [8, 8, 8], strides = [1, 1, 1]} : vector<12x8x8xf32> to vector<8x8x8xf32>
    %132 = vector.extract_strided_slice %98 {offsets = [2, 0, 0], sizes = [8, 8, 8], strides = [1, 1, 1]} : vector<12x8x8xf32> to vector<8x8x8xf32>
    %133 = vector.extract_strided_slice %99 {offsets = [2, 0, 0], sizes = [8, 8, 8], strides = [1, 1, 1]} : vector<12x8x8xf32> to vector<8x8x8xf32>
    %134 = tpu.concatenate %129, %130, %131, %132, %133 in 2 : vector<8x8x8xf32>, vector<8x8x8xf32>, vector<8x8x8xf32>, vector<8x8x8xf32>, vector<8x8x8xf32> -> vector<8x8x40xf32>
    %135 = vector.shape_cast %134 : vector<8x8x40xf32> to vector<64x40xf32>
    %136 = arith.truncf %135 : vector<64x40xf32> to vector<64x40xbf16>
    %c1_98 = arith.constant 1 : index
    %c2_99 = arith.constant 2 : index
    %c0_100 = arith.constant 0 : index
    %c0_101 = arith.constant 0 : index
    %137 = vector.load %arg5[%c1_98, %c2_99, %c0_100, %c0_101] : memref<2x5x40x8xbf16, #tpu.memory_space<vmem>>, vector<1x1x40x8xbf16>
    %138 = vector.shape_cast %137 : vector<1x1x40x8xbf16> to vector<40x8xbf16>
    %cst_102 = arith.constant dense<0.000000e+00> : vector<64x8xf32>
    %139 = tpu.matmul %136, %138, %cst_102 {dimension_numbers = #tpu.dot_dimension_numbers<[1], [0], [0], [1], [0, 0, 1, 1], [], []>} : vector<64x40xbf16>, vector<40x8xbf16>, vector<64x8xf32> -> vector<64x8xf32>
    %140 = arith.addf %128, %139 : vector<64x8xf32>
    %141 = vector.extract_strided_slice %95 {offsets = [3, 0, 0], sizes = [8, 8, 8], strides = [1, 1, 1]} : vector<12x8x8xf32> to vector<8x8x8xf32>
    %142 = vector.extract_strided_slice %96 {offsets = [3, 0, 0], sizes = [8, 8, 8], strides = [1, 1, 1]} : vector<12x8x8xf32> to vector<8x8x8xf32>
    %143 = vector.extract_strided_slice %97 {offsets = [3, 0, 0], sizes = [8, 8, 8], strides = [1, 1, 1]} : vector<12x8x8xf32> to vector<8x8x8xf32>
    %144 = vector.extract_strided_slice %98 {offsets = [3, 0, 0], sizes = [8, 8, 8], strides = [1, 1, 1]} : vector<12x8x8xf32> to vector<8x8x8xf32>
    %145 = vector.extract_strided_slice %99 {offsets = [3, 0, 0], sizes = [8, 8, 8], strides = [1, 1, 1]} : vector<12x8x8xf32> to vector<8x8x8xf32>
    %146 = tpu.concatenate %141, %142, %143, %144, %145 in 2 : vector<8x8x8xf32>, vector<8x8x8xf32>, vector<8x8x8xf32>, vector<8x8x8xf32>, vector<8x8x8xf32> -> vector<8x8x40xf32>
    %147 = vector.shape_cast %146 : vector<8x8x40xf32> to vector<64x40xf32>
    %148 = arith.truncf %147 : vector<64x40xf32> to vector<64x40xbf16>
    %c1_103 = arith.constant 1 : index
    %c3_104 = arith.constant 3 : index
    %c0_105 = arith.constant 0 : index
    %c0_106 = arith.constant 0 : index
    %149 = vector.load %arg5[%c1_103, %c3_104, %c0_105, %c0_106] : memref<2x5x40x8xbf16, #tpu.memory_space<vmem>>, vector<1x1x40x8xbf16>
    %150 = vector.shape_cast %149 : vector<1x1x40x8xbf16> to vector<40x8xbf16>
    %cst_107 = arith.constant dense<0.000000e+00> : vector<64x8xf32>
    %151 = tpu.matmul %148, %150, %cst_107 {dimension_numbers = #tpu.dot_dimension_numbers<[1], [0], [0], [1], [0, 0, 1, 1], [], []>} : vector<64x40xbf16>, vector<40x8xbf16>, vector<64x8xf32> -> vector<64x8xf32>
    %152 = arith.addf %140, %151 : vector<64x8xf32>
    %153 = vector.extract_strided_slice %95 {offsets = [4, 0, 0], sizes = [8, 8, 8], strides = [1, 1, 1]} : vector<12x8x8xf32> to vector<8x8x8xf32>
    %154 = vector.extract_strided_slice %96 {offsets = [4, 0, 0], sizes = [8, 8, 8], strides = [1, 1, 1]} : vector<12x8x8xf32> to vector<8x8x8xf32>
    %155 = vector.extract_strided_slice %97 {offsets = [4, 0, 0], sizes = [8, 8, 8], strides = [1, 1, 1]} : vector<12x8x8xf32> to vector<8x8x8xf32>
    %156 = vector.extract_strided_slice %98 {offsets = [4, 0, 0], sizes = [8, 8, 8], strides = [1, 1, 1]} : vector<12x8x8xf32> to vector<8x8x8xf32>
    %157 = vector.extract_strided_slice %99 {offsets = [4, 0, 0], sizes = [8, 8, 8], strides = [1, 1, 1]} : vector<12x8x8xf32> to vector<8x8x8xf32>
    %158 = tpu.concatenate %153, %154, %155, %156, %157 in 2 : vector<8x8x8xf32>, vector<8x8x8xf32>, vector<8x8x8xf32>, vector<8x8x8xf32>, vector<8x8x8xf32> -> vector<8x8x40xf32>
    %159 = vector.shape_cast %158 : vector<8x8x40xf32> to vector<64x40xf32>
    %160 = arith.truncf %159 : vector<64x40xf32> to vector<64x40xbf16>
    %c1_108 = arith.constant 1 : index
    %c4_109 = arith.constant 4 : index
    %c0_110 = arith.constant 0 : index
    %c0_111 = arith.constant 0 : index
    %161 = vector.load %arg5[%c1_108, %c4_109, %c0_110, %c0_111] : memref<2x5x40x8xbf16, #tpu.memory_space<vmem>>, vector<1x1x40x8xbf16>
    %162 = vector.shape_cast %161 : vector<1x1x40x8xbf16> to vector<40x8xbf16>
    %cst_112 = arith.constant dense<0.000000e+00> : vector<64x8xf32>
    %163 = tpu.matmul %160, %162, %cst_112 {dimension_numbers = #tpu.dot_dimension_numbers<[1], [0], [0], [1], [0, 0, 1, 1], [], []>} : vector<64x40xbf16>, vector<40x8xbf16>, vector<64x8xf32> -> vector<64x8xf32>
    %164 = arith.addf %152, %163 : vector<64x8xf32>
    %cst_113 = arith.constant 0.000000e+00 : f32
    %165 = vector.broadcast %cst_113 : f32 to vector<64x8xf32>
    %166 = arith.maximumf %164, %165 : vector<64x8xf32>
    %167 = arith.addf %166, %12 : vector<64x8xf32>
    %cst_114 = arith.constant 0.000000e+00 : f32
    %168 = vector.broadcast %cst_114 : f32 to vector<64x8xf32>
    %169 = arith.maximumf %167, %168 : vector<64x8xf32>
    %c0_115 = arith.constant 0 : index
    %c0_116 = arith.constant 0 : index
    %c0_117 = arith.constant 0 : index
    %170 = vector.load %arg7[%c0_115, %c0_116, %c0_117] : memref<1x64x8xf32, #tpu.memory_space<vmem>>, vector<1x64x8xf32>
    %171 = vector.shape_cast %170 : vector<1x64x8xf32> to vector<64x8xf32>
    %172 = vector.shape_cast %169 : vector<64x8xf32> to vector<1x64x8xf32>
    tpu.vector_store %arg7[%c0_115, %c0_116, %c0_117], %172 {strides = array<i32>} : memref<1x64x8xf32, #tpu.memory_space<vmem>>, vector<1x64x8xf32>,
    return
  }
  func.func @transform_0(%arg0: i32) -> (i32, i32, i32) {
    %c0_i32 = arith.constant 0 : i32
    %c0_i32_0 = arith.constant 0 : i32
    %c0_i32_1 = arith.constant 0 : i32
    return %arg0, %c0_i32, %c0_i32_0 : i32, i32, i32
  }
  func.func @transform_1(%arg0: i32) -> (i32, i32) {
    %c0_i32 = arith.constant 0 : i32
    %c0_i32_0 = arith.constant 0 : i32
    %c0_i32_1 = arith.constant 0 : i32
    return %c0_i32, %c0_i32_0 : i32, i32
  }
  func.func @transform_2(%arg0: i32) -> (i32, i32) {
    %c0_i32 = arith.constant 0 : i32
    %c0_i32_0 = arith.constant 0 : i32
    %c0_i32_1 = arith.constant 0 : i32
    return %c0_i32, %c0_i32_0 : i32, i32
  }
  func.func @transform_3(%arg0: i32) -> (i32, i32) {
    %c0_i32 = arith.constant 0 : i32
    %c0_i32_0 = arith.constant 0 : i32
    %c0_i32_1 = arith.constant 0 : i32
    return %c0_i32, %c0_i32_0 : i32, i32
  }
  func.func @transform_4(%arg0: i32) -> (i32, i32, i32, i32) {
    %c0_i32 = arith.constant 0 : i32
    %c0_i32_0 = arith.constant 0 : i32
    %c0_i32_1 = arith.constant 0 : i32
    %c0_i32_2 = arith.constant 0 : i32
    %c0_i32_3 = arith.constant 0 : i32
    return %c0_i32, %c0_i32_0, %c0_i32_1, %c0_i32_2 : i32, i32, i32, i32
  }
  func.func @transform_5(%arg0: i32) -> (i32, i32, i32) {
    %c0_i32 = arith.constant 0 : i32
    %c0_i32_0 = arith.constant 0 : i32
    %c0_i32_1 = arith.constant 0 : i32
    %c0_i32_2 = arith.constant 0 : i32
    return %c0_i32, %c0_i32_0, %c0_i32_1 : i32, i32, i32
  }
  func.func @transform_6(%arg0: i32) -> (i32, i32, i32) {
    %c0_i32 = arith.constant 0 : i32
    %c0_i32_0 = arith.constant 0 : i32
    %c0_i32_1 = arith.constant 0 : i32
    return %arg0, %c0_i32, %c0_i32_0 : i32, i32, i32
  }
}

module attributes {stable_mosaic.version = 11 : i64} {
  func.func @_downsample_block_kernel(%arg0: i32, %arg1: memref<1x64x16xbf16, #tpu.memory_space<vmem>>, %arg2: memref<16x8xbf16, #tpu.memory_space<vmem>>, %arg3: memref<1x8xf32, #tpu.memory_space<vmem>>, %arg4: memref<1x8xf32, #tpu.memory_space<vmem>>, %arg5: memref<2x5x40x8xbf16, #tpu.memory_space<vmem>>, %arg6: memref<2x1x8xf32, #tpu.memory_space<vmem>>, %arg7: memref<1x64x8xf32, #tpu.memory_space<vmem>>, %arg8: memref<12x12x8xf32, #tpu.memory_space<vmem>>) attributes {dimension_semantics = [#tpu.dimension_semantics<parallel>], iteration_bounds = array<i64: 2>, scalar_prefetch = 0 : i64, scratch_operands = 1 : i64, tpu.core_type = #tpu.core_type<tc>, window_params = [{transform_indices = @transform_0, window_bounds = array<i64: 1, 64, 16>}, {pipeline_mode = #tpu.pipeline_mode<synchronous>, transform_indices = @transform_1, window_bounds = array<i64: 16, 8>}, {pipeline_mode = #tpu.pipeline_mode<synchronous>, transform_indices = @transform_2, window_bounds = array<i64: 1, 8>}, {pipeline_mode = #tpu.pipeline_mode<synchronous>, transform_indices = @transform_3, window_bounds = array<i64: 1, 8>}, {pipeline_mode = #tpu.pipeline_mode<synchronous>, transform_indices = @transform_4, window_bounds = array<i64: 2, 5, 40, 8>}, {pipeline_mode = #tpu.pipeline_mode<synchronous>, transform_indices = @transform_5, window_bounds = array<i64: 2, 1, 8>}, {transform_indices = @transform_6, window_bounds = array<i64: 1, 64, 8>}]} {
    %c0 = arith.constant 0 : index
    %c0_0 = arith.constant 0 : index
    %c0_1 = arith.constant 0 : index
    %0 = vector.load %arg1[%c0, %c0_0, %c0_1] : memref<1x64x16xbf16, #tpu.memory_space<vmem>>, vector<1x64x16xbf16>
    %1 = vector.shape_cast %0 : vector<1x64x16xbf16> to vector<64x16xbf16>
    %c0_2 = arith.constant 0 : index
    %c0_3 = arith.constant 0 : index
    %2 = vector.load %arg2[%c0_2, %c0_3] : memref<16x8xbf16, #tpu.memory_space<vmem>>, vector<16x8xbf16>
    %cst = arith.constant dense<0.000000e+00> : vector<64x8xf32>
    %3 = tpu.matmul %1, %2, %cst {dimension_numbers = #tpu.dot_dimension_numbers<[1], [0], [0], [1], [0, 0, 1, 1], [], []>} : vector<64x16xbf16>, vector<16x8xbf16>, vector<64x8xf32> -> vector<64x8xf32>
    %c0_4 = arith.constant 0 : index
    %c0_5 = arith.constant 0 : index
    %4 = vector.load %arg3[%c0_4, %c0_5] : memref<1x8xf32, #tpu.memory_space<vmem>>, vector<1x8xf32>
    %5 = vector.broadcast %4 : vector<1x8xf32> to vector<64x8xf32>
    %6 = arith.addf %3, %5 : vector<64x8xf32>
    %c0_6 = arith.constant 0 : index
    %c0_7 = arith.constant 0 : index
    %7 = vector.load %arg4[%c0_6, %c0_7] : memref<1x8xf32, #tpu.memory_space<vmem>>, vector<1x8xf32>
    %cst_8 = arith.constant 0.000000e+00 : f32
    %8 = vector.broadcast %cst_8 : f32 to vector<64x8xf32>
    %9 = arith.cmpf ogt, %6, %8 : vector<64x8xf32>
    %10 = vector.broadcast %7 : vector<1x8xf32> to vector<64x8xf32>
    %11 = arith.mulf %10, %6 : vector<64x8xf32>
    %12 = arith.select %9, %6, %11 : vector<64x8xi1>, vector<64x8xf32>
    %cst_9 = arith.constant 0.000000e+00 : f32
    %13 = vector.broadcast %cst_9 : f32 to vector<2x12x8xf32>
    %c0_10 = arith.constant 0 : index
    %c0_11 = arith.constant 0 : index
    %c0_12 = arith.constant 0 : index
    %14 = vector.load %arg8[%c0_10, %c0_11, %c0_12] : memref<12x12x8xf32, #tpu.memory_space<vmem>>, vector<2x12x8xf32>
    tpu.vector_store %arg8[%c0_10, %c0_11, %c0_12], %13 {strides = array<i32>} : memref<12x12x8xf32, #tpu.memory_space<vmem>>, vector<2x12x8xf32>,
    %c10 = arith.constant 10 : index
    %c0_13 = arith.constant 0 : index
    %c0_14 = arith.constant 0 : index
    %15 = vector.load %arg8[%c10, %c0_13, %c0_14] : memref<12x12x8xf32, #tpu.memory_space<vmem>>, vector<2x12x8xf32>
    tpu.vector_store %arg8[%c10, %c0_13, %c0_14], %13 {strides = array<i32>} : memref<12x12x8xf32, #tpu.memory_space<vmem>>, vector<2x12x8xf32>,
    %cst_15 = arith.constant 0.000000e+00 : f32
    %16 = vector.broadcast %cst_15 : f32 to vector<8x2x8xf32>
    %c2 = arith.constant 2 : index
    %c0_16 = arith.constant 0 : index
    %c0_17 = arith.constant 0 : index
    %17 = vector.load %arg8[%c2, %c0_16, %c0_17] : memref<12x12x8xf32, #tpu.memory_space<vmem>>, vector<8x2x8xf32>
    tpu.vector_store %arg8[%c2, %c0_16, %c0_17], %16 {strides = array<i32>} : memref<12x12x8xf32, #tpu.memory_space<vmem>>, vector<8x2x8xf32>,
    %c2_18 = arith.constant 2 : index
    %c10_19 = arith.constant 10 : index
    %c0_20 = arith.constant 0 : index
    %18 = vector.load %arg8[%c2_18, %c10_19, %c0_20] : memref<12x12x8xf32, #tpu.memory_space<vmem>>, vector<8x2x8xf32>
    tpu.vector_store %arg8[%c2_18, %c10_19, %c0_20], %16 {strides = array<i32>} : memref<12x12x8xf32, #tpu.memory_space<vmem>>, vector<8x2x8xf32>,
    %19 = vector.shape_cast %12 : vector<64x8xf32> to vector<8x8x8xf32>
    %c2_21 = arith.constant 2 : index
    %c2_22 = arith.constant 2 : index
    %c0_23 = arith.constant 0 : index
    %20 = vector.load %arg8[%c2_21, %c2_22, %c0_23] : memref<12x12x8xf32, #tpu.memory_space<vmem>>, vector<8x8x8xf32>
    tpu.vector_store %arg8[%c2_21, %c2_22, %c0_23], %19 {strides = array<i32>} : memref<12x12x8xf32, #tpu.memory_space<vmem>>, vector<8x8x8xf32>,
    %c0_24 = arith.constant 0 : index
    %c0_25 = arith.constant 0 : index
    %c0_26 = arith.constant 0 : index
    %21 = vector.load %arg8[%c0_24, %c0_25, %c0_26] : memref<12x12x8xf32, #tpu.memory_space<vmem>>, vector<12x8x8xf32>
    %c0_27 = arith.constant 0 : index
    %c1 = arith.constant 1 : index
    %c0_28 = arith.constant 0 : index
    %22 = vector.load %arg8[%c0_27, %c1, %c0_28] : memref<12x12x8xf32, #tpu.memory_space<vmem>>, vector<12x8x8xf32>
    %c0_29 = arith.constant 0 : index
    %c2_30 = arith.constant 2 : index
    %c0_31 = arith.constant 0 : index
    %23 = vector.load %arg8[%c0_29, %c2_30, %c0_31] : memref<12x12x8xf32, #tpu.memory_space<vmem>>, vector<12x8x8xf32>
    %c0_32 = arith.constant 0 : index
    %c3 = arith.constant 3 : index
    %c0_33 = arith.constant 0 : index
    %24 = vector.load %arg8[%c0_32, %c3, %c0_33] : memref<12x12x8xf32, #tpu.memory_space<vmem>>, vector<12x8x8xf32>
    %c0_34 = arith.constant 0 : index
    %c4 = arith.constant 4 : index
    %c0_35 = arith.constant 0 : index
    %25 = vector.load %arg8[%c0_34, %c4, %c0_35] : memref<12x12x8xf32, #tpu.memory_space<vmem>>, vector<12x8x8xf32>
    %cst_36 = arith.constant 0.000000e+00 : f32
    %26 = vector.broadcast %cst_36 : f32 to vector<64x8xf32>
    %c0_37 = arith.constant 0 : index
    %c0_38 = arith.constant 0 : index
    %c0_39 = arith.constant 0 : index
    %27 = vector.load %arg6[%c0_37, %c0_38, %c0_39] : memref<2x1x8xf32, #tpu.memory_space<vmem>>, vector<1x1x8xf32>
    %28 = vector.shape_cast %27 : vector<1x1x8xf32> to vector<1x8xf32>
    %29 = vector.broadcast %28 : vector<1x8xf32> to vector<64x8xf32>
    %30 = arith.addf %26, %29 : vector<64x8xf32>
    %31 = vector.extract_strided_slice %21 {offsets = [0, 0, 0], sizes = [8, 8, 8], strides = [1, 1, 1]} : vector<12x8x8xf32> to vector<8x8x8xf32>
    %32 = vector.extract_strided_slice %22 {offsets = [0, 0, 0], sizes = [8, 8, 8], strides = [1, 1, 1]} : vector<12x8x8xf32> to vector<8x8x8xf32>
    %33 = vector.extract_strided_slice %23 {offsets = [0, 0, 0], sizes = [8, 8, 8], strides = [1, 1, 1]} : vector<12x8x8xf32> to vector<8x8x8xf32>
    %34 = vector.extract_strided_slice %24 {offsets = [0, 0, 0], sizes = [8, 8, 8], strides = [1, 1, 1]} : vector<12x8x8xf32> to vector<8x8x8xf32>
    %35 = vector.extract_strided_slice %25 {offsets = [0, 0, 0], sizes = [8, 8, 8], strides = [1, 1, 1]} : vector<12x8x8xf32> to vector<8x8x8xf32>
    %36 = tpu.concatenate %31, %32, %33, %34, %35 in 2 : vector<8x8x8xf32>, vector<8x8x8xf32>, vector<8x8x8xf32>, vector<8x8x8xf32>, vector<8x8x8xf32> -> vector<8x8x40xf32>
    %37 = vector.shape_cast %36 : vector<8x8x40xf32> to vector<64x40xf32>
    %38 = arith.truncf %37 : vector<64x40xf32> to vector<64x40xbf16>
    %c0_40 = arith.constant 0 : index
    %c0_41 = arith.constant 0 : index
    %c0_42 = arith.constant 0 : index
    %c0_43 = arith.constant 0 : index
    %39 = vector.load %arg5[%c0_40, %c0_41, %c0_42, %c0_43] : memref<2x5x40x8xbf16, #tpu.memory_space<vmem>>, vector<1x1x40x8xbf16>
    %40 = vector.shape_cast %39 : vector<1x1x40x8xbf16> to vector<40x8xbf16>
    %cst_44 = arith.constant dense<0.000000e+00> : vector<64x8xf32>
    %41 = tpu.matmul %38, %40, %cst_44 {dimension_numbers = #tpu.dot_dimension_numbers<[1], [0], [0], [1], [0, 0, 1, 1], [], []>} : vector<64x40xbf16>, vector<40x8xbf16>, vector<64x8xf32> -> vector<64x8xf32>
    %42 = arith.addf %30, %41 : vector<64x8xf32>
    %43 = vector.extract_strided_slice %21 {offsets = [1, 0, 0], sizes = [8, 8, 8], strides = [1, 1, 1]} : vector<12x8x8xf32> to vector<8x8x8xf32>
    %44 = vector.extract_strided_slice %22 {offsets = [1, 0, 0], sizes = [8, 8, 8], strides = [1, 1, 1]} : vector<12x8x8xf32> to vector<8x8x8xf32>
    %45 = vector.extract_strided_slice %23 {offsets = [1, 0, 0], sizes = [8, 8, 8], strides = [1, 1, 1]} : vector<12x8x8xf32> to vector<8x8x8xf32>
    %46 = vector.extract_strided_slice %24 {offsets = [1, 0, 0], sizes = [8, 8, 8], strides = [1, 1, 1]} : vector<12x8x8xf32> to vector<8x8x8xf32>
    %47 = vector.extract_strided_slice %25 {offsets = [1, 0, 0], sizes = [8, 8, 8], strides = [1, 1, 1]} : vector<12x8x8xf32> to vector<8x8x8xf32>
    %48 = tpu.concatenate %43, %44, %45, %46, %47 in 2 : vector<8x8x8xf32>, vector<8x8x8xf32>, vector<8x8x8xf32>, vector<8x8x8xf32>, vector<8x8x8xf32> -> vector<8x8x40xf32>
    %49 = vector.shape_cast %48 : vector<8x8x40xf32> to vector<64x40xf32>
    %50 = arith.truncf %49 : vector<64x40xf32> to vector<64x40xbf16>
    %c0_45 = arith.constant 0 : index
    %c1_46 = arith.constant 1 : index
    %c0_47 = arith.constant 0 : index
    %c0_48 = arith.constant 0 : index
    %51 = vector.load %arg5[%c0_45, %c1_46, %c0_47, %c0_48] : memref<2x5x40x8xbf16, #tpu.memory_space<vmem>>, vector<1x1x40x8xbf16>
    %52 = vector.shape_cast %51 : vector<1x1x40x8xbf16> to vector<40x8xbf16>
    %cst_49 = arith.constant dense<0.000000e+00> : vector<64x8xf32>
    %53 = tpu.matmul %50, %52, %cst_49 {dimension_numbers = #tpu.dot_dimension_numbers<[1], [0], [0], [1], [0, 0, 1, 1], [], []>} : vector<64x40xbf16>, vector<40x8xbf16>, vector<64x8xf32> -> vector<64x8xf32>
    %54 = arith.addf %42, %53 : vector<64x8xf32>
    %55 = vector.extract_strided_slice %21 {offsets = [2, 0, 0], sizes = [8, 8, 8], strides = [1, 1, 1]} : vector<12x8x8xf32> to vector<8x8x8xf32>
    %56 = vector.extract_strided_slice %22 {offsets = [2, 0, 0], sizes = [8, 8, 8], strides = [1, 1, 1]} : vector<12x8x8xf32> to vector<8x8x8xf32>
    %57 = vector.extract_strided_slice %23 {offsets = [2, 0, 0], sizes = [8, 8, 8], strides = [1, 1, 1]} : vector<12x8x8xf32> to vector<8x8x8xf32>
    %58 = vector.extract_strided_slice %24 {offsets = [2, 0, 0], sizes = [8, 8, 8], strides = [1, 1, 1]} : vector<12x8x8xf32> to vector<8x8x8xf32>
    %59 = vector.extract_strided_slice %25 {offsets = [2, 0, 0], sizes = [8, 8, 8], strides = [1, 1, 1]} : vector<12x8x8xf32> to vector<8x8x8xf32>
    %60 = tpu.concatenate %55, %56, %57, %58, %59 in 2 : vector<8x8x8xf32>, vector<8x8x8xf32>, vector<8x8x8xf32>, vector<8x8x8xf32>, vector<8x8x8xf32> -> vector<8x8x40xf32>
    %61 = vector.shape_cast %60 : vector<8x8x40xf32> to vector<64x40xf32>
    %62 = arith.truncf %61 : vector<64x40xf32> to vector<64x40xbf16>
    %c0_50 = arith.constant 0 : index
    %c2_51 = arith.constant 2 : index
    %c0_52 = arith.constant 0 : index
    %c0_53 = arith.constant 0 : index
    %63 = vector.load %arg5[%c0_50, %c2_51, %c0_52, %c0_53] : memref<2x5x40x8xbf16, #tpu.memory_space<vmem>>, vector<1x1x40x8xbf16>
    %64 = vector.shape_cast %63 : vector<1x1x40x8xbf16> to vector<40x8xbf16>
    %cst_54 = arith.constant dense<0.000000e+00> : vector<64x8xf32>
    %65 = tpu.matmul %62, %64, %cst_54 {dimension_numbers = #tpu.dot_dimension_numbers<[1], [0], [0], [1], [0, 0, 1, 1], [], []>} : vector<64x40xbf16>, vector<40x8xbf16>, vector<64x8xf32> -> vector<64x8xf32>
    %66 = arith.addf %54, %65 : vector<64x8xf32>
    %67 = vector.extract_strided_slice %21 {offsets = [3, 0, 0], sizes = [8, 8, 8], strides = [1, 1, 1]} : vector<12x8x8xf32> to vector<8x8x8xf32>
    %68 = vector.extract_strided_slice %22 {offsets = [3, 0, 0], sizes = [8, 8, 8], strides = [1, 1, 1]} : vector<12x8x8xf32> to vector<8x8x8xf32>
    %69 = vector.extract_strided_slice %23 {offsets = [3, 0, 0], sizes = [8, 8, 8], strides = [1, 1, 1]} : vector<12x8x8xf32> to vector<8x8x8xf32>
    %70 = vector.extract_strided_slice %24 {offsets = [3, 0, 0], sizes = [8, 8, 8], strides = [1, 1, 1]} : vector<12x8x8xf32> to vector<8x8x8xf32>
    %71 = vector.extract_strided_slice %25 {offsets = [3, 0, 0], sizes = [8, 8, 8], strides = [1, 1, 1]} : vector<12x8x8xf32> to vector<8x8x8xf32>
    %72 = tpu.concatenate %67, %68, %69, %70, %71 in 2 : vector<8x8x8xf32>, vector<8x8x8xf32>, vector<8x8x8xf32>, vector<8x8x8xf32>, vector<8x8x8xf32> -> vector<8x8x40xf32>
    %73 = vector.shape_cast %72 : vector<8x8x40xf32> to vector<64x40xf32>
    %74 = arith.truncf %73 : vector<64x40xf32> to vector<64x40xbf16>
    %c0_55 = arith.constant 0 : index
    %c3_56 = arith.constant 3 : index
    %c0_57 = arith.constant 0 : index
    %c0_58 = arith.constant 0 : index
    %75 = vector.load %arg5[%c0_55, %c3_56, %c0_57, %c0_58] : memref<2x5x40x8xbf16, #tpu.memory_space<vmem>>, vector<1x1x40x8xbf16>
    %76 = vector.shape_cast %75 : vector<1x1x40x8xbf16> to vector<40x8xbf16>
    %cst_59 = arith.constant dense<0.000000e+00> : vector<64x8xf32>
    %77 = tpu.matmul %74, %76, %cst_59 {dimension_numbers = #tpu.dot_dimension_numbers<[1], [0], [0], [1], [0, 0, 1, 1], [], []>} : vector<64x40xbf16>, vector<40x8xbf16>, vector<64x8xf32> -> vector<64x8xf32>
    %78 = arith.addf %66, %77 : vector<64x8xf32>
    %79 = vector.extract_strided_slice %21 {offsets = [4, 0, 0], sizes = [8, 8, 8], strides = [1, 1, 1]} : vector<12x8x8xf32> to vector<8x8x8xf32>
    %80 = vector.extract_strided_slice %22 {offsets = [4, 0, 0], sizes = [8, 8, 8], strides = [1, 1, 1]} : vector<12x8x8xf32> to vector<8x8x8xf32>
    %81 = vector.extract_strided_slice %23 {offsets = [4, 0, 0], sizes = [8, 8, 8], strides = [1, 1, 1]} : vector<12x8x8xf32> to vector<8x8x8xf32>
    %82 = vector.extract_strided_slice %24 {offsets = [4, 0, 0], sizes = [8, 8, 8], strides = [1, 1, 1]} : vector<12x8x8xf32> to vector<8x8x8xf32>
    %83 = vector.extract_strided_slice %25 {offsets = [4, 0, 0], sizes = [8, 8, 8], strides = [1, 1, 1]} : vector<12x8x8xf32> to vector<8x8x8xf32>
    %84 = tpu.concatenate %79, %80, %81, %82, %83 in 2 : vector<8x8x8xf32>, vector<8x8x8xf32>, vector<8x8x8xf32>, vector<8x8x8xf32>, vector<8x8x8xf32> -> vector<8x8x40xf32>
    %85 = vector.shape_cast %84 : vector<8x8x40xf32> to vector<64x40xf32>
    %86 = arith.truncf %85 : vector<64x40xf32> to vector<64x40xbf16>
    %c0_60 = arith.constant 0 : index
    %c4_61 = arith.constant 4 : index
    %c0_62 = arith.constant 0 : index
    %c0_63 = arith.constant 0 : index
    %87 = vector.load %arg5[%c0_60, %c4_61, %c0_62, %c0_63] : memref<2x5x40x8xbf16, #tpu.memory_space<vmem>>, vector<1x1x40x8xbf16>
    %88 = vector.shape_cast %87 : vector<1x1x40x8xbf16> to vector<40x8xbf16>
    %cst_64 = arith.constant dense<0.000000e+00> : vector<64x8xf32>
    %89 = tpu.matmul %86, %88, %cst_64 {dimension_numbers = #tpu.dot_dimension_numbers<[1], [0], [0], [1], [0, 0, 1, 1], [], []>} : vector<64x40xbf16>, vector<40x8xbf16>, vector<64x8xf32> -> vector<64x8xf32>
    %90 = arith.addf %78, %89 : vector<64x8xf32>
    %cst_65 = arith.constant 0.000000e+00 : f32
    %91 = vector.broadcast %cst_65 : f32 to vector<64x8xf32>
    %92 = arith.maximumf %90, %91 : vector<64x8xf32>
    %93 = vector.shape_cast %92 : vector<64x8xf32> to vector<8x8x8xf32>
    %c2_66 = arith.constant 2 : index
    %c2_67 = arith.constant 2 : index
    %c0_68 = arith.constant 0 : index
    %94 = vector.load %arg8[%c2_66, %c2_67, %c0_68] : memref<12x12x8xf32, #tpu.memory_space<vmem>>, vector<8x8x8xf32>
    tpu.vector_store %arg8[%c2_66, %c2_67, %c0_68], %93 {strides = array<i32>} : memref<12x12x8xf32, #tpu.memory_space<vmem>>, vector<8x8x8xf32>,
    %c0_69 = arith.constant 0 : index
    %c0_70 = arith.constant 0 : index
    %c0_71 = arith.constant 0 : index
    %95 = vector.load %arg8[%c0_69, %c0_70, %c0_71] : memref<12x12x8xf32, #tpu.memory_space<vmem>>, vector<12x8x8xf32>
    %c0_72 = arith.constant 0 : index
    %c1_73 = arith.constant 1 : index
    %c0_74 = arith.constant 0 : index
    %96 = vector.load %arg8[%c0_72, %c1_73, %c0_74] : memref<12x12x8xf32, #tpu.memory_space<vmem>>, vector<12x8x8xf32>
    %c0_75 = arith.constant 0 : index
    %c2_76 = arith.constant 2 : index
    %c0_77 = arith.constant 0 : index
    %97 = vector.load %arg8[%c0_75, %c2_76, %c0_77] : memref<12x12x8xf32, #tpu.memory_space<vmem>>, vector<12x8x8xf32>
    %c0_78 = arith.constant 0 : index
    %c3_79 = arith.constant 3 : index
    %c0_80 = arith.constant 0 : index
    %98 = vector.load %arg8[%c0_78, %c3_79, %c0_80] : memref<12x12x8xf32, #tpu.memory_space<vmem>>, vector<12x8x8xf32>
    %c0_81 = arith.constant 0 : index
    %c4_82 = arith.constant 4 : index
    %c0_83 = arith.constant 0 : index
    %99 = vector.load %arg8[%c0_81, %c4_82, %c0_83] : memref<12x12x8xf32, #tpu.memory_space<vmem>>, vector<12x8x8xf32>
    %cst_84 = arith.constant 0.000000e+00 : f32
    %100 = vector.broadcast %cst_84 : f32 to vector<64x8xf32>
    %c1_85 = arith.constant 1 : index
    %c0_86 = arith.constant 0 : index
    %c0_87 = arith.constant 0 : index
    %101 = vector.load %arg6[%c1_85, %c0_86, %c0_87] : memref<2x1x8xf32, #tpu.memory_space<vmem>>, vector<1x1x8xf32>
    %102 = vector.shape_cast %101 : vector<1x1x8xf32> to vector<1x8xf32>
    %103 = vector.broadcast %102 : vector<1x8xf32> to vector<64x8xf32>
    %104 = arith.addf %100, %103 : vector<64x8xf32>
    %105 = vector.extract_strided_slice %95 {offsets = [0, 0, 0], sizes = [8, 8, 8], strides = [1, 1, 1]} : vector<12x8x8xf32> to vector<8x8x8xf32>
    %106 = vector.extract_strided_slice %96 {offsets = [0, 0, 0], sizes = [8, 8, 8], strides = [1, 1, 1]} : vector<12x8x8xf32> to vector<8x8x8xf32>
    %107 = vector.extract_strided_slice %97 {offsets = [0, 0, 0], sizes = [8, 8, 8], strides = [1, 1, 1]} : vector<12x8x8xf32> to vector<8x8x8xf32>
    %108 = vector.extract_strided_slice %98 {offsets = [0, 0, 0], sizes = [8, 8, 8], strides = [1, 1, 1]} : vector<12x8x8xf32> to vector<8x8x8xf32>
    %109 = vector.extract_strided_slice %99 {offsets = [0, 0, 0], sizes = [8, 8, 8], strides = [1, 1, 1]} : vector<12x8x8xf32> to vector<8x8x8xf32>
    %110 = tpu.concatenate %105, %106, %107, %108, %109 in 2 : vector<8x8x8xf32>, vector<8x8x8xf32>, vector<8x8x8xf32>, vector<8x8x8xf32>, vector<8x8x8xf32> -> vector<8x8x40xf32>
    %111 = vector.shape_cast %110 : vector<8x8x40xf32> to vector<64x40xf32>
    %112 = arith.truncf %111 : vector<64x40xf32> to vector<64x40xbf16>
    %c1_88 = arith.constant 1 : index
    %c0_89 = arith.constant 0 : index
    %c0_90 = arith.constant 0 : index
    %c0_91 = arith.constant 0 : index
    %113 = vector.load %arg5[%c1_88, %c0_89, %c0_90, %c0_91] : memref<2x5x40x8xbf16, #tpu.memory_space<vmem>>, vector<1x1x40x8xbf16>
    %114 = vector.shape_cast %113 : vector<1x1x40x8xbf16> to vector<40x8xbf16>
    %cst_92 = arith.constant dense<0.000000e+00> : vector<64x8xf32>
    %115 = tpu.matmul %112, %114, %cst_92 {dimension_numbers = #tpu.dot_dimension_numbers<[1], [0], [0], [1], [0, 0, 1, 1], [], []>} : vector<64x40xbf16>, vector<40x8xbf16>, vector<64x8xf32> -> vector<64x8xf32>
    %116 = arith.addf %104, %115 : vector<64x8xf32>
    %117 = vector.extract_strided_slice %95 {offsets = [1, 0, 0], sizes = [8, 8, 8], strides = [1, 1, 1]} : vector<12x8x8xf32> to vector<8x8x8xf32>
    %118 = vector.extract_strided_slice %96 {offsets = [1, 0, 0], sizes = [8, 8, 8], strides = [1, 1, 1]} : vector<12x8x8xf32> to vector<8x8x8xf32>
    %119 = vector.extract_strided_slice %97 {offsets = [1, 0, 0], sizes = [8, 8, 8], strides = [1, 1, 1]} : vector<12x8x8xf32> to vector<8x8x8xf32>
    %120 = vector.extract_strided_slice %98 {offsets = [1, 0, 0], sizes = [8, 8, 8], strides = [1, 1, 1]} : vector<12x8x8xf32> to vector<8x8x8xf32>
    %121 = vector.extract_strided_slice %99 {offsets = [1, 0, 0], sizes = [8, 8, 8], strides = [1, 1, 1]} : vector<12x8x8xf32> to vector<8x8x8xf32>
    %122 = tpu.concatenate %117, %118, %119, %120, %121 in 2 : vector<8x8x8xf32>, vector<8x8x8xf32>, vector<8x8x8xf32>, vector<8x8x8xf32>, vector<8x8x8xf32> -> vector<8x8x40xf32>
    %123 = vector.shape_cast %122 : vector<8x8x40xf32> to vector<64x40xf32>
    %124 = arith.truncf %123 : vector<64x40xf32> to vector<64x40xbf16>
    %c1_93 = arith.constant 1 : index
    %c1_94 = arith.constant 1 : index
    %c0_95 = arith.constant 0 : index
    %c0_96 = arith.constant 0 : index
    %125 = vector.load %arg5[%c1_93, %c1_94, %c0_95, %c0_96] : memref<2x5x40x8xbf16, #tpu.memory_space<vmem>>, vector<1x1x40x8xbf16>
    %126 = vector.shape_cast %125 : vector<1x1x40x8xbf16> to vector<40x8xbf16>
    %cst_97 = arith.constant dense<0.000000e+00> : vector<64x8xf32>
    %127 = tpu.matmul %124, %126, %cst_97 {dimension_numbers = #tpu.dot_dimension_numbers<[1], [0], [0], [1], [0, 0, 1, 1], [], []>} : vector<64x40xbf16>, vector<40x8xbf16>, vector<64x8xf32> -> vector<64x8xf32>
    %128 = arith.addf %116, %127 : vector<64x8xf32>
    %129 = vector.extract_strided_slice %95 {offsets = [2, 0, 0], sizes = [8, 8, 8], strides = [1, 1, 1]} : vector<12x8x8xf32> to vector<8x8x8xf32>
    %130 = vector.extract_strided_slice %96 {offsets = [2, 0, 0], sizes = [8, 8, 8], strides = [1, 1, 1]} : vector<12x8x8xf32> to vector<8x8x8xf32>
    %131 = vector.extract_strided_slice %97 {offsets = [2, 0, 0], sizes = [8, 8, 8], strides = [1, 1, 1]} : vector<12x8x8xf32> to vector<8x8x8xf32>
    %132 = vector.extract_strided_slice %98 {offsets = [2, 0, 0], sizes = [8, 8, 8], strides = [1, 1, 1]} : vector<12x8x8xf32> to vector<8x8x8xf32>
    %133 = vector.extract_strided_slice %99 {offsets = [2, 0, 0], sizes = [8, 8, 8], strides = [1, 1, 1]} : vector<12x8x8xf32> to vector<8x8x8xf32>
    %134 = tpu.concatenate %129, %130, %131, %132, %133 in 2 : vector<8x8x8xf32>, vector<8x8x8xf32>, vector<8x8x8xf32>, vector<8x8x8xf32>, vector<8x8x8xf32> -> vector<8x8x40xf32>
    %135 = vector.shape_cast %134 : vector<8x8x40xf32> to vector<64x40xf32>
    %136 = arith.truncf %135 : vector<64x40xf32> to vector<64x40xbf16>
    %c1_98 = arith.constant 1 : index
    %c2_99 = arith.constant 2 : index
    %c0_100 = arith.constant 0 : index
    %c0_101 = arith.constant 0 : index
    %137 = vector.load %arg5[%c1_98, %c2_99, %c0_100, %c0_101] : memref<2x5x40x8xbf16, #tpu.memory_space<vmem>>, vector<1x1x40x8xbf16>
    %138 = vector.shape_cast %137 : vector<1x1x40x8xbf16> to vector<40x8xbf16>
    %cst_102 = arith.constant dense<0.000000e+00> : vector<64x8xf32>
    %139 = tpu.matmul %136, %138, %cst_102 {dimension_numbers = #tpu.dot_dimension_numbers<[1], [0], [0], [1], [0, 0, 1, 1], [], []>} : vector<64x40xbf16>, vector<40x8xbf16>, vector<64x8xf32> -> vector<64x8xf32>
    %140 = arith.addf %128, %139 : vector<64x8xf32>
    %141 = vector.extract_strided_slice %95 {offsets = [3, 0, 0], sizes = [8, 8, 8], strides = [1, 1, 1]} : vector<12x8x8xf32> to vector<8x8x8xf32>
    %142 = vector.extract_strided_slice %96 {offsets = [3, 0, 0], sizes = [8, 8, 8], strides = [1, 1, 1]} : vector<12x8x8xf32> to vector<8x8x8xf32>
    %143 = vector.extract_strided_slice %97 {offsets = [3, 0, 0], sizes = [8, 8, 8], strides = [1, 1, 1]} : vector<12x8x8xf32> to vector<8x8x8xf32>
    %144 = vector.extract_strided_slice %98 {offsets = [3, 0, 0], sizes = [8, 8, 8], strides = [1, 1, 1]} : vector<12x8x8xf32> to vector<8x8x8xf32>
    %145 = vector.extract_strided_slice %99 {offsets = [3, 0, 0], sizes = [8, 8, 8], strides = [1, 1, 1]} : vector<12x8x8xf32> to vector<8x8x8xf32>
    %146 = tpu.concatenate %141, %142, %143, %144, %145 in 2 : vector<8x8x8xf32>, vector<8x8x8xf32>, vector<8x8x8xf32>, vector<8x8x8xf32>, vector<8x8x8xf32> -> vector<8x8x40xf32>
    %147 = vector.shape_cast %146 : vector<8x8x40xf32> to vector<64x40xf32>
    %148 = arith.truncf %147 : vector<64x40xf32> to vector<64x40xbf16>
    %c1_103 = arith.constant 1 : index
    %c3_104 = arith.constant 3 : index
    %c0_105 = arith.constant 0 : index
    %c0_106 = arith.constant 0 : index
    %149 = vector.load %arg5[%c1_103, %c3_104, %c0_105, %c0_106] : memref<2x5x40x8xbf16, #tpu.memory_space<vmem>>, vector<1x1x40x8xbf16>
    %150 = vector.shape_cast %149 : vector<1x1x40x8xbf16> to vector<40x8xbf16>
    %cst_107 = arith.constant dense<0.000000e+00> : vector<64x8xf32>
    %151 = tpu.matmul %148, %150, %cst_107 {dimension_numbers = #tpu.dot_dimension_numbers<[1], [0], [0], [1], [0, 0, 1, 1], [], []>} : vector<64x40xbf16>, vector<40x8xbf16>, vector<64x8xf32> -> vector<64x8xf32>
    %152 = arith.addf %140, %151 : vector<64x8xf32>
    %153 = vector.extract_strided_slice %95 {offsets = [4, 0, 0], sizes = [8, 8, 8], strides = [1, 1, 1]} : vector<12x8x8xf32> to vector<8x8x8xf32>
    %154 = vector.extract_strided_slice %96 {offsets = [4, 0, 0], sizes = [8, 8, 8], strides = [1, 1, 1]} : vector<12x8x8xf32> to vector<8x8x8xf32>
    %155 = vector.extract_strided_slice %97 {offsets = [4, 0, 0], sizes = [8, 8, 8], strides = [1, 1, 1]} : vector<12x8x8xf32> to vector<8x8x8xf32>
    %156 = vector.extract_strided_slice %98 {offsets = [4, 0, 0], sizes = [8, 8, 8], strides = [1, 1, 1]} : vector<12x8x8xf32> to vector<8x8x8xf32>
    %157 = vector.extract_strided_slice %99 {offsets = [4, 0, 0], sizes = [8, 8, 8], strides = [1, 1, 1]} : vector<12x8x8xf32> to vector<8x8x8xf32>
    %158 = tpu.concatenate %153, %154, %155, %156, %157 in 2 : vector<8x8x8xf32>, vector<8x8x8xf32>, vector<8x8x8xf32>, vector<8x8x8xf32>, vector<8x8x8xf32> -> vector<8x8x40xf32>
    %159 = vector.shape_cast %158 : vector<8x8x40xf32> to vector<64x40xf32>
    %160 = arith.truncf %159 : vector<64x40xf32> to vector<64x40xbf16>
    %c1_108 = arith.constant 1 : index
    %c4_109 = arith.constant 4 : index
    %c0_110 = arith.constant 0 : index
    %c0_111 = arith.constant 0 : index
    %161 = vector.load %arg5[%c1_108, %c4_109, %c0_110, %c0_111] : memref<2x5x40x8xbf16, #tpu.memory_space<vmem>>, vector<1x1x40x8xbf16>
    %162 = vector.shape_cast %161 : vector<1x1x40x8xbf16> to vector<40x8xbf16>
    %cst_112 = arith.constant dense<0.000000e+00> : vector<64x8xf32>
    %163 = tpu.matmul %160, %162, %cst_112 {dimension_numbers = #tpu.dot_dimension_numbers<[1], [0], [0], [1], [0, 0, 1, 1], [], []>} : vector<64x40xbf16>, vector<40x8xbf16>, vector<64x8xf32> -> vector<64x8xf32>
    %164 = arith.addf %152, %163 : vector<64x8xf32>
    %cst_113 = arith.constant 0.000000e+00 : f32
    %165 = vector.broadcast %cst_113 : f32 to vector<64x8xf32>
    %166 = arith.maximumf %164, %165 : vector<64x8xf32>
    %167 = arith.addf %166, %12 : vector<64x8xf32>
    %cst_114 = arith.constant 0.000000e+00 : f32
    %168 = vector.broadcast %cst_114 : f32 to vector<64x8xf32>
    %169 = arith.maximumf %167, %168 : vector<64x8xf32>
    %c0_115 = arith.constant 0 : index
    %c0_116 = arith.constant 0 : index
    %c0_117 = arith.constant 0 : index
    %170 = vector.load %arg7[%c0_115, %c0_116, %c0_117] : memref<1x64x8xf32, #tpu.memory_space<vmem>>, vector<1x64x8xf32>
    %171 = vector.shape_cast %170 : vector<1x64x8xf32> to vector<64x8xf32>
    %172 = vector.shape_cast %169 : vector<64x8xf32> to vector<1x64x8xf32>
    tpu.vector_store %arg7[%c0_115, %c0_116, %c0_117], %172 {strides = array<i32>} : memref<1x64x8xf32, #tpu.memory_space<vmem>>, vector<1x64x8xf32>,
    return
  }
  func.func @transform_0(%arg0: i32) -> (i32, i32, i32) {
    %c0_i32 = arith.constant 0 : i32
    %c0_i32_0 = arith.constant 0 : i32
    %c0_i32_1 = arith.constant 0 : i32
    return %arg0, %c0_i32, %c0_i32_0 : i32, i32, i32
  }
  func.func @transform_1(%arg0: i32) -> (i32, i32) {
    %c0_i32 = arith.constant 0 : i32
    %c0_i32_0 = arith.constant 0 : i32
    %c0_i32_1 = arith.constant 0 : i32
    return %c0_i32, %c0_i32_0 : i32, i32
  }
  func.func @transform_2(%arg0: i32) -> (i32, i32) {
    %c0_i32 = arith.constant 0 : i32
    %c0_i32_0 = arith.constant 0 : i32
    %c0_i32_1 = arith.constant 0 : i32
    return %c0_i32, %c0_i32_0 : i32, i32
  }
  func.func @transform_3(%arg0: i32) -> (i32, i32) {
    %c0_i32 = arith.constant 0 : i32
    %c0_i32_0 = arith.constant 0 : i32
    %c0_i32_1 = arith.constant 0 : i32
    return %c0_i32, %c0_i32_0 : i32, i32
  }
  func.func @transform_4(%arg0: i32) -> (i32, i32, i32, i32) {
    %c0_i32 = arith.constant 0 : i32
    %c0_i32_0 = arith.constant 0 : i32
    %c0_i32_1 = arith.constant 0 : i32
    %c0_i32_2 = arith.constant 0 : i32
    %c0_i32_3 = arith.constant 0 : i32
    return %c0_i32, %c0_i32_0, %c0_i32_1, %c0_i32_2 : i32, i32, i32, i32
  }
  func.func @transform_5(%arg0: i32) -> (i32, i32, i32) {
    %c0_i32 = arith.constant 0 : i32
    %c0_i32_0 = arith.constant 0 : i32
    %c0_i32_1 = arith.constant 0 : i32
    %c0_i32_2 = arith.constant 0 : i32
    return %c0_i32, %c0_i32_0, %c0_i32_1 : i32, i32, i32
  }
  func.func @transform_6(%arg0: i32) -> (i32, i32, i32) {
    %c0_i32 = arith.constant 0 : i32
    %c0_i32_0 = arith.constant 0 : i32
    %c0_i32_1 = arith.constant 0 : i32
    return %arg0, %c0_i32, %c0_i32_0 : i32, i32, i32
  }
}

</mosaic_0001>

<bundles_post_ra>
// kernel: tpu_custom_call.1
= control target key start
LH: loop header
LB: loop body
LE: loop exit
PB: predicated region body
PF: predicated region fallthrough
CT: control target
= control target key end

     0   :  { %s2936_s21 = smov 0   ;;  %s3490_s0 = inlined_call_operand.vmem [shape: bf16[2,64,16], index: 0, kind: input, shape index: {}]   ;;  %s3491_s1 = inlined_call_operand.vmem [shape: bf16[16,8], index: 1, kind: input, shape index: {}]   ;;  %s3492_s2 = inlined_call_operand.vmem [shape: f32[1,8], index: 2, kind: input, shape index: {}]   ;;  %s3493_s3 = inlined_call_operand.vmem [shape: f32[1,8], index: 3, kind: input, shape index: {}]   ;;  %s3494_s4 = inlined_call_operand.vmem [shape: bf16[2,5,40,8], index: 4, kind: input, shape index: {}]   ;;  %s3495_s5 = inlined_call_operand.vmem [shape: f32[2,1,8], index: 5, kind: input, shape index: {}]   ;;  %s3496_s6 = inlined_call_operand.vmem [shape: f32[2,64,8], index: 6, kind: output, shape index: {}]  }
   0x1 LB: > { %s2223_s22 = sadd.s32 4294967295, %s2894_s21   ;;  %p2227_p0 = scmp.ge.s32.totalorder %s2894_s21, 1  ;;  %s2894_s21 = sphi %s2936_s21, %s16_s21  }
   0x2   : > { %p212_p1 = scmp.lt.s32.totalorder %s2894_s21, 3 }
   0x4   : > { %p213_p2 = pnand %p2227_p0, %p212_p1 }
   0x5   : > { %v2853_v0 = vld [vmem:[%s3491_s1] sm:$0xff] (!%p213_p2)   ;;  %p242_p3 = scmp.lt.s32.totalorder (!%p213_p2), %s2223_s22, 1  ;;  %vm296_vm0 = vcmask (!%p213_p2), 130048   ;;  %vm405_vm1 = vcmask (!%p213_p2), 64512   ;;  %vm407_vm2 = vcmask (!%p213_p2), 60416   ;;  %v2896_v5 = vmov (!%p213_p2), 0.0  }
   0x6   : > { %216 = sbr.rel (%p213_p2) target bundleno = 1113 (0x459), region = 44  ;;  %2440 = vmatprep.subr.bf16.mxu0 (!%p213_p2), %v2853_v0  ;;  %406 = vst.msk [vmem:[#allocation2] sm:$0xff] (!%p213_p2), %vm405_vm1, %v2896_v5  ;;  %409 = vst.msk [vmem:[#allocation2 + $0x10] sm:$0xff] (!%p213_p2), %vm405_vm1, %v2896_v5  ;;  %vm417_vm3 = vcmask (!%p213_p2), 58368   ;;  %s2897_s29 = smov (!%p213_p2), 8   ;;  %v2858_v52 = vld [vmem:[%s3494_s4] sm:$0xff] (!%p213_p2)  }
   0x7   : > { %2441 = vmatpush3.bf16.msra.mxu0 (!%p213_p2), %v2853_v0  ;;  %408 = vst.msk [vmem:[#allocation2 + $0x8] sm:$0xf] (!%p213_p2), %vm407_vm2, %v2896_v5  ;;  %410 = vst.msk [vmem:[#allocation2 + $0x18] sm:$0xf] (!%p213_p2), %vm407_vm2, %v2896_v5  ;;  %s2898_s30 = smov (!%p213_p2), 24   ;;  %s2899_s7 = smov (!%p213_p2), 32   ;;  %2450 = vmatprep.subr.bf16.mxu1 (!%p213_p2), %v2858_v52 }
   0x8   : > { %412 = vst.msk [vmem:[#allocation2 + $0xa0] sm:$0xff] (!%p213_p2), %vm405_vm1, %v2896_v5  ;;  %414 = vst.msk [vmem:[#allocation2 + $0xb0] sm:$0xff] (!%p213_p2), %vm405_vm1, %v2896_v5  ;;  %s2900_s8 = smov (!%p213_p2), 16   ;;  %v2232_v19 = vld [vmem:[%s3492_s2] ss:$0 sm:$0xff] (!%p213_p2)  ;;  %vm654_vm8 = vcmask (!%p213_p2), 195584   ;;  %2451 = vmatpush3.bf16.msra.mxu1 (!%p213_p2), %v2858_v52 }
   0x9   : > { %413 = vst.msk [vmem:[#allocation2 + $0xa8] sm:$0xf] (!%p213_p2), %vm407_vm2, %v2896_v5  ;;  %415 = vst.msk [vmem:[#allocation2 + $0xb8] sm:$0xf] (!%p213_p2), %vm407_vm2, %v2896_v5  ;;  %v3001_v23 = vld [vmem:[%s3493_s3] ss:$0 sm:$0xff] (!%p213_p2) }
   0xa   : > { %420 = vst.msk [vmem:[#allocation2 + $0x40] sm:$0x3] (!%p213_p2), %vm417_vm3, %v2896_v5  ;;  %421 = vst.msk [vmem:[#allocation2 + $0x50] sm:$0x3] (!%p213_p2), %vm417_vm3, %v2896_v5  ;;  %vm663_vm9 = vcmask (!%p213_p2), 261120   ;;  %vm696_vm14 = vcmask (!%p213_p2), 326656  }
   0xb   : > { %418 = vst.msk [vmem:[#allocation2 + $0x20] sm:$0x3] (!%p213_p2), %vm417_vm3, %v2896_v5  ;;  %419 = vst.msk [vmem:[#allocation2 + $0x30] sm:$0x3] (!%p213_p2), %vm417_vm3, %v2896_v5  ;;  %vm709_vm15 = vcmask (!%p213_p2), 1043456  }
   0xc   : > { %422 = vst.msk [vmem:[#allocation2 + $0x60] sm:$0x3] (!%p213_p2), %vm417_vm3, %v2896_v5  ;;  %423 = vst.msk [vmem:[#allocation2 + $0x70] sm:$0x3] (!%p213_p2), %vm417_vm3, %v2896_v5 }
   0xd   : > { %s3498_s22 = smov (!%p242_p3, %s2223_s22), 1  ;;  %424 = vst.msk [vmem:[#allocation2 + $0x80] sm:$0x3] %vm417_vm3, %v2896_v5  ;;  %425 = vst.msk [vmem:[#allocation2 + $0x90] sm:$0x3] %vm417_vm3, %v2896_v5  ;;  %v2996_v21 = vld [vmem:[#allocation2 + $0x10] sm:$0xff] }
   0xe   : > { %s2363_s25 = sshll.u32 %s3498_s22, 5  ;;  %v454_v6 = vld [vmem:[#allocation2 + $0x1] sm:$0xff]  ;;  %v455_v7 = vld [vmem:[#allocation2 + $0x11] sm:$0xff]  ;;  %426 = vst.msk [vmem:[#allocation2 + $0x2a] sm:$0x3] %vm417_vm3, %v2896_v5 }
   0xf   : > { %s246_s28 = scalar_lea.vmem %s3490_s0, %s2363_s25  ;;  %v2961_v8 = vpack.i.bf16 %v455_v7, %v454_v6  ;;  %427 = vst.msk [vmem:[#allocation2 + $0x3a] sm:$0x3] %vm417_vm3, %v2896_v5  ;;  %428 = vst.msk [vmem:[#allocation2 + $0x4a] sm:$0x3] %vm417_vm3, %v2896_v5  ;;  %v478_v9 = vld [vmem:[#allocation2 + $0x3] sm:$0xff]  ;;  %v479_v10 = vld [vmem:[#allocation2 + $0x13] sm:$0xff] }
  0x10   : > { %v2854_v1 = vld [vmem:[%s246_s28] sm:$0xff]   ;;  %v2855_v2 = vld [vmem:[%s246_s28 + $0x8] sm:$0xff]   ;;  %v2856_v3 = vld [vmem:[%s246_s28 + $0x10] sm:$0xff]   ;;  %429 = vst.msk [vmem:[#allocation2 + $0x5a] sm:$0x3] %vm417_vm3, %v2896_v5  ;;  %v2981_v11 = vpack.i.bf16 %v479_v10, %v478_v9 }
  0x11   : > { %2442 = vmatprep.mubr.msk.bf16.mxu0 %vm296_vm0, %v2854_v1  ;;  %v2857_v4 = vld [vmem:[%s246_s28 + $0x18] sm:$0xff]   ;;  %2694 = vrot.lane.b32.xlu0 %v2961_v8, %s2897_s29  ;;  %430 = vst.msk [vmem:[#allocation2 + $0x6a] sm:$0x3] %vm417_vm3, %v2896_v5  ;;  %431 = vst.msk [vmem:[#allocation2 + $0x7a] sm:$0x3] %vm417_vm3, %v2896_v5  ;;  %v490_v12 = vld [vmem:[#allocation2 + $0x4] sm:$0xff] }
  0x12   : > { %2443 = vmatmul.mubr.msk.bf16.vlgmr.msra.gmra.mrb[0].mxu0 %vm296_vm0, %v2855_v2  ;;  %432 = vst.msk [vmem:[#allocation2 + $0x8a] sm:$0x3] %vm417_vm3, %v2896_v5  ;;  %433 = vst.msk [vmem:[#allocation2 + $0x9a] sm:$0x3] %vm417_vm3, %v2896_v5  ;;  %v491_v13 = vld [vmem:[#allocation2 + $0x14] sm:$0xff]  ;;  %v466_v15 = vld [vmem:[#allocation2 + $0x2] sm:$0xff] }
  0x13   : > { %2446 = vmatprep.mubr.msk.bf16.mxu0 %vm296_vm0, %v2856_v3  ;;  %v2985_v14 = vpack.i.bf16 %v491_v13, %v490_v12  ;;  %v467_v16 = vld [vmem:[#allocation2 + $0x12] sm:$0xff]  ;;  %v3003_v28 = vld [vmem:[#allocation2] sm:$0xff] }
  0x14   : > { %v2987_v17 = vpack.i.bf16 %v467_v16, %v466_v15 }
  0x15   : > { %2704 = vrot.lane.b32.xlu0 %v2981_v11, %s2898_s30 }
  0x16   : > { %2699 = vrot.lane.b32.xlu1 %v2987_v17, %s2900_s8 }
  0x19   : > { %2709 = vrot.lane.b32.xlu0 %v2985_v14, %s2899_s7 }
  0x1a   : > { %2447 = vmatmul.mubr.msk.bf16.gmra.mrb[4].mxu0 %vm296_vm0, %v2857_v4 }
  0x83   : > { %v2695_v18 = vpop.permute.xlu0 %2694 }
  0x84   : > { %v2697_v20 = vunpack.i.h.bf16 %v2695_v18  ;;  %v2696_v24 = vunpack.i.l.bf16 %v2695_v18 }
  0x86   : > { %v639_v32 = vsel %vm405_vm1, %v2996_v21, %v2697_v20  ;;  %v638_v40 = vsel %vm405_vm1, %v3003_v28, %v2696_v24 }
  0x87   : > { %v2705_v25 = vpop.permute.xlu0 %2704 }
  0x88   : > { %v2700_v29 = vpop.permute.xlu1 %2699  ;;  %v2707_v43 = vunpack.i.h.bf16 %v2705_v25  ;;  %v2706_v46 = vunpack.i.l.bf16 %v2705_v25 }
  0x89   : > { %v2702_v33 = vunpack.i.h.bf16 %v2700_v29  ;;  %v2701_v37 = vunpack.i.l.bf16 %v2700_v29 }
  0x8b   : > { %v2710_v47 = vpop.permute.xlu0 %2709  ;;  %v646_v50 = vsel %vm296_vm0, %v638_v40, %v2701_v37  ;;  %v647_v51 = vsel %vm296_vm0, %v639_v32, %v2702_v33 }
  0x8c   : > { %v2711_v49 = vunpack.i.l.bf16 %v2710_v47  ;;  %v2712_v55 = vunpack.i.h.bf16 %v2710_v47  ;;  %v655_v60 = vsel %vm654_vm8, %v646_v50, %v2706_v46  ;;  %v656_v61 = vsel %vm654_vm8, %v647_v51, %v2707_v43  ;;  %v3079_v46 = vld [vmem:[%s3494_s4 + $0x14] sm:$0xff]  }
  0x8e   : > { %v664_v1 = vsel %vm663_vm9, %v655_v60, %v2711_v49  ;;  %v3040_v4 = vsel %vm663_vm9, %v656_v61, %v2712_v55 }
  0x8f   : > { %v672_v7 = vpack.c.bf16 %v3040_v4, %v664_v1 }
  0x91   : > { %2456 = vmatprep.mubr.msk.bf16.mxu1 %vm696_vm14, %v672_v7 }
  0xe5   : > { %v2444_v22 = vpop.f32.mrb[0].mxu0 }
  0xe6   : > { %v352_v26 = vadd.f32 %v2444_v22, %v2232_v19  ;;  %v343_v27 = vpop.f32.mrb[1].mxu0 }
  0xe7   : > { %v344_v30 = vadd.f32 %v2232_v19, %v343_v27  ;;  %v2445_v31 = vpop.f32.mrb[2].mxu0 }
  0xe8   : > { %vm377_vm4 = vcmp.gt.f32.partialorder %v352_v26, 0.0  ;;  %v391_v34 = vmul.f32 %v3001_v23, %v352_v26  ;;  %v355_v35 = vadd.f32 %v2445_v31, %v2232_v19  ;;  %v346_v36 = vpop.f32.mrb[3].mxu0 }
  0xe9   : > { %vm375_vm5 = vcmp.gt.f32.partialorder %v344_v30, 0.0  ;;  %v389_v38 = vmul.f32 %v3001_v23, %v344_v30  ;;  %v347_v39 = vadd.f32 %v2232_v19, %v346_v36 }
  0xea   : > { %v3011_v41 = vsel %vm377_vm4, %v352_v26, %v391_v34  ;;  %vm378_vm6 = vcmp.gt.f32.partialorder %v355_v35, 0.0  ;;  %v392_v42 = vmul.f32 %v3001_v23, %v355_v35  ;;  %v2859_v26 = vld [vmem:[%s3494_s4 + $0x8] sm:$0xff]  }
  0xeb   : > { %436 = vst.msk [vmem:[#allocation2 + $0x42] sm:$0xff] %vm405_vm1, %v3011_v41  ;;  %v3016_v44 = vsel %vm375_vm5, %v344_v30, %v389_v38  ;;  %vm376_vm7 = vcmp.gt.f32.partialorder %v347_v39, 0.0  ;;  %v390_v45 = vmul.f32 %v3001_v23, %v347_v39  ;;  %v2860_v30 = vld [vmem:[%s3494_s4 + $0x10] ss:$0 sps:$4 sm:$0xff]   ;;  %2452 = vmatprep.subr.bf16.mxu1 %v2859_v26 }
  0xec   : > { %434 = vst.msk [vmem:[#allocation2 + $0x22] sm:$0xff] %vm405_vm1, %v3016_v44  ;;  %v3021_v48 = vsel %vm378_vm6, %v355_v35, %v392_v42  ;;  %2453 = vmatpush3.bf16.msra.mxu1 %v2859_v26  ;;  %v711_v35 = vsel %vm709_vm15, %v2860_v30, 0 }
  0xed   : > { %437 = vst.msk [vmem:[#allocation2 + $0x52] sm:$0xff] %vm405_vm1, %v3021_v48  ;;  %v3030_v53 = vsel %vm376_vm7, %v347_v39, %v390_v45  ;;  %v2448_v54 = vpop.f32.mrb[4].mxu0  ;;  %2670 = vmatprep.subr.msk.bf16.mxu1 %vm709_vm15, %v2860_v30 }
  0xee   : > { %435 = vst.msk [vmem:[#allocation2 + $0x32] sm:$0xff] %vm405_vm1, %v3030_v53  ;;  %v368_v56 = vadd.f32 %v2448_v54, %v2232_v19  ;;  %v359_v57 = vpop.f32.mrb[5].mxu0 }
  0xef   : > { %v360_v58 = vadd.f32 %v2232_v19, %v359_v57  ;;  %v2449_v59 = vpop.f32.mrb[6].mxu0 }
  0xf0   : > { %vm381_vm10 = vcmp.gt.f32.partialorder %v368_v56, 0.0  ;;  %v395_v62 = vmul.f32 %v3001_v23, %v368_v56  ;;  %v371_v63 = vadd.f32 %v2449_v59, %v2232_v19  ;;  %v362_v0 = vpop.f32.mrb[7].mxu0  ;;  %2455 = vmatpush3.bf16.msra.mxu1 %v711_v35 }
  0xf1   : > { %vm379_vm11 = vcmp.gt.f32.partialorder %v360_v58, 0.0  ;;  %v393_v2 = vmul.f32 %v3001_v23, %v360_v58  ;;  %v363_v3 = vadd.f32 %v2232_v19, %v362_v0  ;;  %2464 = vmatprep.subr.bf16.mxu1 %v3079_v46 }
  0xf2   : > { %v3042_v5 = vsel %vm381_vm10, %v368_v56, %v395_v62  ;;  %vm382_vm12 = vcmp.gt.f32.partialorder %v371_v63, 0.0  ;;  %v396_v6 = vmul.f32 %v3001_v23, %v371_v63  ;;  %v458_v13 = vld [vmem:[#allocation2 + $0x41] sm:$0xff] }
  0xf3   : > { %440 = vst.msk [vmem:[#allocation2 + $0x82] sm:$0xff] %vm405_vm1, %v3042_v5  ;;  %v3048_v9 = vsel %vm379_vm11, %v360_v58, %v393_v2  ;;  %vm380_vm13 = vcmp.gt.f32.partialorder %v363_v3, 0.0  ;;  %v394_v10 = vmul.f32 %v3001_v23, %v363_v3  ;;  %v468_v19 = vld [vmem:[#allocation2 + $0x22] sm:$0xff] }
  0xf4   : > { %438 = vst.msk [vmem:[#allocation2 + $0x62] sm:$0xff] %vm405_vm1, %v3048_v9  ;;  %v3053_v12 = vsel %vm382_vm12, %v371_v63, %v396_v6  ;;  %v459_v15 = vld [vmem:[#allocation2 + $0x51] sm:$0xff]  ;;  %v456_v25 = vld [vmem:[#allocation2 + $0x21] sm:$0xff] }
  0xf5   : > { %441 = vst.msk [vmem:[#allocation2 + $0x92] sm:$0xff] %vm405_vm1, %v3053_v12  ;;  %v3058_v16 = vsel %vm380_vm13, %v363_v3, %v394_v10  ;;  %v2713_v18 = vpack.i.bf16 %v459_v15, %v458_v13  ;;  %v469_v20 = vld [vmem:[#allocation2 + $0x32] sm:$0xff]  ;;  %v480_v29 = vld [vmem:[#allocation2 + $0x23] sm:$0xff] }
  0xf6   : > { %439 = vst.msk [vmem:[#allocation2 + $0x72] sm:$0xff] %vm405_vm1, %v3058_v16  ;;  %v2738_v22 = vpack.i.bf16 %v469_v20, %v468_v19  ;;  %v457_v23 = vld [vmem:[#allocation2 + $0x31] sm:$0xff]  ;;  %v470_v34 = vld [vmem:[#allocation2 + $0x42] sm:$0xff] }
  0xf7   : > { %2714 = vrot.lane.b32.xlu0 %v2713_v18, %s2897_s29  ;;  %v481_v24 = vld [vmem:[#allocation2 + $0x33] sm:$0xff]  ;;  %v2718_v27 = vpack.i.bf16 %v457_v23, %v456_v25  ;;  %v492_v37 = vld [vmem:[#allocation2 + $0x24] sm:$0xff] }
  0xf8   : > { %2739 = vrot.lane.b32.xlu1 %v2738_v22, %s2900_s8  ;;  %v2743_v31 = vpack.i.bf16 %v481_v24, %v480_v29  ;;  %v471_v32 = vld [vmem:[#allocation2 + $0x52] sm:$0xff]  ;;  %v482_v43 = vld [vmem:[#allocation2 + $0x43] sm:$0xff] }
  0xf9   : > { %v493_v33 = vld [vmem:[#allocation2 + $0x34] sm:$0xff]  ;;  %v2723_v36 = vpack.i.bf16 %v471_v32, %v470_v34  ;;  %v494_v52 = vld [vmem:[#allocation2 + $0x44] sm:$0xff] }
  0xfa   : > { %v2748_v38 = vpack.i.bf16 %v493_v33, %v492_v37  ;;  %v483_v39 = vld [vmem:[#allocation2 + $0x53] sm:$0xff]  ;;  %v462_v58 = vld [vmem:[#allocation2 + $0x81] sm:$0xff] }
  0xfb   : > { %2719 = vrot.lane.b32.xlu0 %v2718_v27, %s2897_s29  ;;  %v460_v40 = vld [vmem:[#allocation2 + $0x61] sm:$0xff]  ;;  %v2728_v45 = vpack.i.bf16 %v483_v39, %v482_v43  ;;  %v495_v49 = vld [vmem:[#allocation2 + $0x54] sm:$0xff] }
  0xfc   : > { %2744 = vrot.lane.b32.xlu1 %v2743_v31, %s2898_s30  ;;  %v472_v50 = vld [vmem:[#allocation2 + $0x62] sm:$0xff]  ;;  %v2733_v54 = vpack.i.bf16 %v495_v49, %v494_v52  ;;  %v463_v0 = vld [vmem:[#allocation2 + $0x91] sm:$0xff] }
  0xfd   : > { %v461_v42 = vld [vmem:[#allocation2 + $0x71] sm:$0xff]  ;;  %v484_v56 = vld [vmem:[#allocation2 + $0x63] sm:$0xff] }
  0xfe   : > { %v2753_v47 = vpack.i.bf16 %v461_v42, %v460_v40  ;;  %v473_v51 = vld [vmem:[#allocation2 + $0x72] sm:$0xff]  ;;  %v496_v60 = vld [vmem:[#allocation2 + $0x64] sm:$0xff] }
  0xff   : > { %2724 = vrot.lane.b32.xlu0 %v2723_v36, %s2900_s8  ;;  %v2758_v55 = vpack.i.bf16 %v473_v51, %v472_v50  ;;  %v485_v57 = vld [vmem:[#allocation2 + $0x73] sm:$0xff]  ;;  %v486_v62 = vld [vmem:[#allocation2 + $0x83] sm:$0xff] }
 0x100   : > { %2749 = vrot.lane.b32.xlu1 %v2748_v38, %s2899_s7  ;;  %v2763_v59 = vpack.i.bf16 %v485_v57, %v484_v56  ;;  %v497_v61 = vld [vmem:[#allocation2 + $0x74] sm:$0xff]  ;;  %v474_v1 = vld [vmem:[#allocation2 + $0x82] sm:$0xff] }
 0x101   : > { %v2768_v63 = vpack.i.bf16 %v497_v61, %v496_v60  ;;  %v487_v2 = vld [vmem:[#allocation2 + $0x93] sm:$0xff]  ;;  %v498_v3 = vld [vmem:[#allocation2 + $0x84] sm:$0xff]  ;;  %v2862_v57 = vld [vmem:[%s3494_s4 + $0x1c] sm:$0xff]  }
 0x102   : > { %v3094_v6 = vld [vmem:[#allocation2 + $0xa1] sm:$0xff]  ;;  %v475_v7 = vld [vmem:[#allocation2 + $0x92] sm:$0xff] }
 0x103   : > { %2729 = vrot.lane.b32.xlu0 %v2728_v45, %s2898_s30  ;;  %v3099_v10 = vld [vmem:[#allocation2 + $0xa3] sm:$0xff]  ;;  %v499_v13 = vld [vmem:[#allocation2 + $0x94] sm:$0xff] }
 0x104   : > { %2754 = vrot.lane.b32.xlu1 %v2753_v47, %s2897_s29  ;;  %v3104_v15 = vld [vmem:[#allocation2 + $0xb1] sm:$0xff]  ;;  %v3106_v18 = vld [vmem:[#allocation2 + $0xa2] sm:$0xff] }
 0x105   : > { %v3112_v19 = vld [vmem:[#allocation2 + $0xb3] sm:$0xff]  ;;  %v3114_v20 = vld [vmem:[#allocation2 + $0xa4] sm:$0xff] }
 0x106   : > { %v3120_v22 = vld [vmem:[#allocation2 + $0xb2] sm:$0xff]  ;;  %v444_v33 = vld [vmem:[#allocation2 + $0x20] sm:$0xff] }
 0x107   : > { %2734 = vrot.lane.b32.xlu0 %v2733_v54, %s2899_s7  ;;  %v3126_v23 = vld [vmem:[#allocation2 + $0xb4] sm:$0xff]  ;;  %v446_v60 = vld [vmem:[#allocation2 + $0x40] sm:$0xff] }
 0x108   : > { %2759 = vrot.lane.b32.xlu1 %v2758_v55, %s2900_s8  ;;  %v445_v32 = vld [vmem:[#allocation2 + $0x30] sm:$0xff] }
 0x109   : > { %v447_v61 = vld [vmem:[#allocation2 + $0x50] sm:$0xff] }
 0x10b   : > { %787 = vrot.lane.b32.xlu0 %v462_v58, %s2897_s29 }
 0x10c   : > { %2764 = vrot.lane.b32.xlu1 %v2763_v59, %s2898_s30 }
 0x10f   : > { %795 = vrot.lane.b32.xlu0 %v486_v62, %s2898_s30 }
 0x110   : > { %2769 = vrot.lane.b32.xlu1 %v2768_v63, %s2899_s7 }
 0x113   : > { %920 = vrot.lane.b32.xlu0 %v463_v0, %s2897_s29 }
 0x114   : > { %791 = vrot.lane.b32.xlu1 %v474_v1, %s2900_s8 }
 0x117   : > { %928 = vrot.lane.b32.xlu0 %v487_v2, %s2898_s30 }
 0x118   : > { %799 = vrot.lane.b32.xlu1 %v498_v3, %s2899_s7 }
 0x11b   : > { %1041 = vrot.lane.b32.xlu0 %v3094_v6, %s2897_s29 }
 0x11c   : > { %924 = vrot.lane.b32.xlu1 %v475_v7, %s2900_s8 }
 0x11f   : > { %1049 = vrot.lane.b32.xlu0 %v3099_v10, %s2898_s30 }
 0x120   : > { %932 = vrot.lane.b32.xlu1 %v499_v13, %s2899_s7 }
 0x123   : > { %1162 = vrot.lane.b32.xlu0 %v3104_v15, %s2897_s29 }
 0x124   : > { %1045 = vrot.lane.b32.xlu1 %v3106_v18, %s2900_s8 }
 0x127   : > { %1170 = vrot.lane.b32.xlu0 %v3112_v19, %s2898_s30 }
 0x128   : > { %1053 = vrot.lane.b32.xlu1 %v3114_v20, %s2899_s7 }
 0x12b   : > { %2774 = vrot.lane.b32.xlu0 %v2961_v8, %s2897_s29 }
 0x12c   : > { %1166 = vrot.lane.b32.xlu1 %v3120_v22, %s2900_s8 }
 0x12f   : > { %2779 = vrot.lane.b32.xlu0 %v2987_v17, %s2900_s8 }
 0x130   : > { %1174 = vrot.lane.b32.xlu1 %v3126_v23, %s2899_s7 }
 0x133   : > { %2784 = vrot.lane.b32.xlu0 %v2981_v11, %s2898_s30 }
 0x137   : > { %2789 = vrot.lane.b32.xlu0 %v2985_v14, %s2899_s7 }
 0x169   : > { %v2715_v24 = vpop.permute.xlu0 %2714 }
 0x16a   : > { %v2740_v25 = vpop.permute.xlu1 %2739  ;;  %v2717_v45 = vunpack.i.h.bf16 %v2715_v24  ;;  %v2716_v47 = vunpack.i.l.bf16 %v2715_v24  ;;  %v2863_v24 = vld [vmem:[%s3494_s4 + $0x24] ss:$0 sps:$4 sm:$0xff]  }
 0x16b   : > { %v2742_v30 = vunpack.i.h.bf16 %v2740_v25  ;;  %v2741_v31 = vunpack.i.l.bf16 %v2740_v25 }
 0x16c   : > { %v642_v62 = vsel %vm405_vm1, %v446_v60, %v2716_v47  ;;  %v643_v63 = vsel %vm405_vm1, %v447_v61, %v2717_v45  ;;  %v450_v60 = vld [vmem:[#allocation2 + $0x80] sm:$0xff] }
 0x16d   : > { %v2720_v8 = vpop.permute.xlu0 %2719 }
 0x16e   : > { %v2722_v26 = vunpack.i.h.bf16 %v2720_v8  ;;  %v2721_v27 = vunpack.i.l.bf16 %v2720_v8  ;;  %v2745_v29 = vpop.permute.xlu1 %2744 }
 0x16f   : > { %v2747_v35 = vunpack.i.h.bf16 %v2745_v29  ;;  %v2746_v36 = vunpack.i.l.bf16 %v2745_v29 }
 0x170   : > { %v641_v17 = vsel %vm405_vm1, %v445_v32, %v2722_v26  ;;  %v640_v34 = vsel %vm405_vm1, %v444_v33, %v2721_v27  ;;  %v844_v32 = vsel %vm709_vm15, %v2863_v24, 0  ;;  %v2864_v33 = vld [vmem:[%s3494_s4 + $0x28] sm:$0xff]  }
 0x171   : > { %v648_v11 = vsel %vm296_vm0, %v640_v34, %v2741_v31  ;;  %v649_v14 = vsel %vm296_vm0, %v641_v17, %v2742_v30  ;;  %v2725_v37 = vpop.permute.xlu0 %2724 }
 0x172   : > { %v2750_v38 = vpop.permute.xlu1 %2749  ;;  %v657_v42 = vsel %vm654_vm8, %v648_v11, %v2746_v36  ;;  %v658_v43 = vsel %vm654_vm8, %v649_v14, %v2747_v35  ;;  %v2727_v52 = vunpack.i.h.bf16 %v2725_v37  ;;  %v2726_v54 = vunpack.i.l.bf16 %v2725_v37  ;;  %v448_v11 = vld [vmem:[#allocation2 + $0x60] sm:$0xff]  ;;  %v449_v14 = vld [vmem:[#allocation2 + $0x70] sm:$0xff] }
 0x173   : > { %v2752_v39 = vunpack.i.h.bf16 %v2750_v38  ;;  %v2751_v40 = vunpack.i.l.bf16 %v2750_v38 }
 0x174   : > { %v651_v1 = vsel %vm296_vm0, %v643_v63, %v2727_v52  ;;  %v650_v2 = vsel %vm296_vm0, %v642_v62, %v2726_v54  ;;  %v2865_v63 = vld [vmem:[%s3494_s4 + $0x30] sm:$0xff]  }
 0x175   : > { %v666_v49 = vsel %vm663_vm9, %v657_v42, %v2751_v40  ;;  %v667_v50 = vsel %vm663_vm9, %v658_v43, %v2752_v39  ;;  %v2730_v51 = vpop.permute.xlu0 %2729 }
 0x176   : > { %v3144_v55 = vpack.c.bf16 %v667_v50, %v666_v49  ;;  %v2755_v56 = vpop.permute.xlu1 %2754  ;;  %v2732_v58 = vunpack.i.h.bf16 %v2730_v51  ;;  %v2731_v59 = vunpack.i.l.bf16 %v2730_v51 }
 0x177   : > { %v2757_v29 = vunpack.i.h.bf16 %v2755_v56  ;;  %v2756_v30 = vunpack.i.l.bf16 %v2755_v56 }
 0x178   : > { %2457 = vmatmul.mubr.msk.bf16.vlgmr.msra.gmra.mrb[0].mxu1 %vm696_vm14, %v3144_v55  ;;  %v659_v25 = vsel %vm654_vm8, %v650_v2, %v2731_v59  ;;  %v660_v8 = vsel %vm654_vm8, %v651_v1, %v2732_v58 }
 0x179   : > { %v2735_v0 = vpop.permute.xlu0 %2734  ;;  %2465 = vmatpush3.bf16.msra.mxu1 %v3079_v46  ;;  %v645_v37 = vsel %vm405_vm1, %v449_v14, %v2757_v29  ;;  %v644_v38 = vsel %vm405_vm1, %v448_v11, %v2756_v30  ;;  %v2868_v29 = vld [vmem:[%s3494_s4 + $0x44] sm:$0xff]  }
 0x17a   : > { %v2737_v3 = vunpack.i.h.bf16 %v2735_v0  ;;  %v2736_v7 = vunpack.i.l.bf16 %v2735_v0  ;;  %v2760_v13 = vpop.permute.xlu1 %2759  ;;  %2466 = vmatprep.subr.bf16.mxu1 %v2862_v57  ;;  %v3225_v11 = vld [vmem:[#allocation2 + $0xa0] sm:$0xff] }
 0x17b   : > { %v2762_v17 = vunpack.i.h.bf16 %v2760_v13  ;;  %v2761_v34 = vunpack.i.l.bf16 %v2760_v13 }
 0x17c   : > { %v668_v26 = vsel %vm663_vm9, %v659_v25, %v2736_v7  ;;  %v669_v46 = vsel %vm663_vm9, %v660_v8, %v2737_v3 }
 0x17d   : > { %v3163_v27 = vpack.c.bf16 %v669_v46, %v668_v26  ;;  %2467 = vmatpush3.bf16.msra.mxu1 %v2862_v57  ;;  %v652_v40 = vsel %vm296_vm0, %v644_v38, %v2761_v34  ;;  %v653_v42 = vsel %vm296_vm0, %v645_v37, %v2762_v17  ;;  %v806_v57 = vpack.c.bf16 %v666_v49, %v3040_v4  ;;  %v788_v59 = vpop.permute.xlu0 %787 }
 0x17e   : > { %v2765_v31 = vpop.permute.xlu1 %2764  ;;  %2671 = vmatprep.subr.msk.bf16.mxu1 %vm709_vm15, %v2863_v24  ;;  %v807_v61 = vpack.c.bf16 %v668_v26, %v667_v50  ;;  %v802_v62 = vsel %vm405_vm1, %v450_v60, %v788_v59  ;;  %v2866_v50 = vld [vmem:[%s3494_s4 + $0x38] ss:$0 sps:$4 sm:$0xff]   ;;  %v2867_v24 = vld [vmem:[%s3494_s4 + $0x3c] sm:$0xff]   ;;  %v451_v26 = vld [vmem:[#allocation2 + $0x90] sm:$0xff] }
 0x17f   : > { %2460 = vmatprep.mubr.msk.bf16.mxu1 %vm696_vm14, %v3163_v27  ;;  %v2767_v35 = vunpack.i.h.bf16 %v2765_v31  ;;  %v2766_v36 = vunpack.i.l.bf16 %v2765_v31  ;;  %v965_v13 = vsel %vm709_vm15, %v2866_v50, 0 }
 0x181   : > { %2469 = vmatpush3.bf16.msra.mxu1 %v844_v32  ;;  %v661_v47 = vsel %vm654_vm8, %v652_v40, %v2766_v36  ;;  %v662_v51 = vsel %vm654_vm8, %v653_v42, %v2767_v35  ;;  %v796_v4 = vpop.permute.xlu0 %795  ;;  %v2870_v36 = vld [vmem:[%s3494_s4 + $0x50] sm:$0xff]   ;;  %v2871_v42 = vld [vmem:[%s3494_s4 + $0x58] sm:$0xff]  }
 0x182   : > { %v2770_v39 = vpop.permute.xlu1 %2769  ;;  %2478 = vmatprep.subr.bf16.mxu1 %v2864_v33 }
 0x183   : > { %v2772_v43 = vunpack.i.h.bf16 %v2770_v39  ;;  %v2771_v45 = vunpack.i.l.bf16 %v2770_v39 }
 0x185   : > { %v670_v52 = vsel %vm663_vm9, %v661_v47, %v2771_v45  ;;  %v671_v54 = vsel %vm663_vm9, %v662_v51, %v2772_v43  ;;  %v921_v8 = vpop.permute.xlu0 %920  ;;  %v2872_v47 = vld [vmem:[%s3494_s4 + $0x60] ss:$0 sps:$4 sm:$0xff]  }
 0x186   : > { %v3180_v56 = vpack.c.bf16 %v671_v54, %v670_v52  ;;  %v792_v58 = vpop.permute.xlu1 %791  ;;  %v808_v0 = vpack.c.bf16 %v670_v52, %v669_v46  ;;  %v935_v46 = vsel %vm405_vm1, %v451_v26, %v921_v8 }
 0x187   : > { %v803_v1 = vsel %vm296_vm0, %v802_v62, %v792_v58 }
 0x188   : > { %2461 = vmatmul.mubr.msk.bf16.gmra.mrb[4].mxu1 %vm696_vm14, %v3180_v56  ;;  %v804_v49 = vsel %vm654_vm8, %v803_v1, %v796_v4 }
 0x189   : > { %2470 = vmatprep.mubr.msk.bf16.mxu1 %vm696_vm14, %v806_v57  ;;  %v929_v32 = vpop.permute.xlu0 %928  ;;  %v3244_v57 = vld [vmem:[#allocation2 + $0xb0] sm:$0xff] }
 0x18a   : > { %v800_v2 = vpop.permute.xlu1 %799 }
 0x18b   : > { %v805_v3 = vsel %vm663_vm9, %v804_v49, %v800_v2 }
 0x18c   : > { %v809_v7 = vpack.c.bf16 %v805_v3, %v671_v54  ;;  %v1207_v54 = vsel %vm709_vm15, %v2872_v47, 0 }
 0x18d   : > { %v1042_v14 = vpop.permute.xlu0 %1041 }
 0x18e   : > { %v925_v25 = vpop.permute.xlu1 %924  ;;  %v1056_v37 = vsel %vm405_vm1, %v3225_v11, %v1042_v14 }
 0x18f   : > { %v936_v30 = vsel %vm296_vm0, %v935_v46, %v925_v25 }
 0x190   : > { %2471 = vmatmul.mubr.msk.bf16.vlgmr.msra.gmra.mrb[0].mxu1 %vm696_vm14, %v807_v61 }
 0x191   : > { %2479 = vmatpush3.bf16.msra.mxu1 %v2864_v33  ;;  %2474 = vmatprep.mubr.msk.bf16.mxu1 %vm696_vm14, %v808_v0  ;;  %v2869_v33 = vld [vmem:[%s3494_s4 + $0x4c] ss:$0 sps:$4 sm:$0xff]   ;;  %v1050_v40 = vpop.permute.xlu0 %1049 }
 0x192   : > { %2480 = vmatprep.subr.bf16.mxu1 %v2865_v63  ;;  %v933_v31 = vpop.permute.xlu1 %932  ;;  %v1086_v35 = vsel %vm709_vm15, %v2869_v33, 0 }
 0x195   : > { %2481 = vmatpush3.bf16.msra.mxu1 %v2865_v63  ;;  %v1163_v58 = vpop.permute.xlu0 %1162 }
 0x196   : > { %2672 = vmatprep.subr.msk.bf16.mxu1 %vm709_vm15, %v2866_v50  ;;  %v1046_v38 = vpop.permute.xlu1 %1045  ;;  %v1177_v59 = vsel %vm405_vm1, %v3244_v57, %v1163_v58 }
 0x197   : > { %v1057_v39 = vsel %vm296_vm0, %v1056_v37, %v1046_v38 }
 0x198   : > { %2475 = vmatmul.mubr.msk.bf16.gmra.mrb[4].mxu1 %vm696_vm14, %v809_v7  ;;  %v1058_v43 = vsel %vm654_vm8, %v1057_v39, %v1050_v40 }
 0x199   : > { %2484 = vmatprep.mubr.msk.bf16.mxu1 %vm696_vm14, %v3144_v55  ;;  %2483 = vmatpush3.bf16.msra.mxu1 %v965_v13  ;;  %v937_v55 = vsel %vm654_vm8, %v936_v30, %v929_v32  ;;  %v1171_v62 = vpop.permute.xlu0 %1170 }
 0x19a   : > { %2492 = vmatprep.subr.bf16.mxu1 %v2867_v24  ;;  %v938_v17 = vsel %vm663_vm9, %v937_v55, %v933_v31  ;;  %v1054_v45 = vpop.permute.xlu1 %1053 }
 0x19b   : > { %v939_v34 = vpack.c.bf16 %v938_v17, %v805_v3  ;;  %v1059_v51 = vsel %vm663_vm9, %v1058_v43, %v1054_v45 }
 0x19c   : > { %v1060_v52 = vpack.c.bf16 %v1059_v51, %v938_v17  ;;  %v2243_v17 = vld [vmem:[%s3495_s5] ss:$0 sm:$0xff] }
 0x19e   : > { %v1167_v60 = vpop.permute.xlu1 %1166 }
 0x1a0   : > { %2485 = vmatmul.mubr.msk.bf16.vlgmr.msra.gmra.mrb[0].mxu1 %vm696_vm14, %v3163_v27 }
 0x1a1   : > { %2493 = vmatpush3.bf16.msra.mxu1 %v2867_v24  ;;  %2488 = vmatprep.mubr.msk.bf16.mxu1 %vm696_vm14, %v3180_v56 }
 0x1a2   : > { %2494 = vmatprep.subr.bf16.mxu1 %v2868_v29 }
 0x1a5   : > { %2495 = vmatpush3.bf16.msra.mxu1 %v2868_v29 }
 0x1a6   : > { %2673 = vmatprep.subr.msk.bf16.mxu1 %vm709_vm15, %v2869_v33 }
 0x1a8   : > { %2489 = vmatmul.mubr.msk.bf16.gmra.mrb[4].mxu1 %vm696_vm14, %v939_v34 }
 0x1a9   : > { %2498 = vmatprep.mubr.msk.bf16.mxu1 %vm696_vm14, %v807_v61  ;;  %2497 = vmatpush3.bf16.msra.mxu1 %v1086_v35  ;;  %v1178_v61 = vsel %vm296_vm0, %v1177_v59, %v1167_v60 }
 0x1aa   : > { %2506 = vmatprep.subr.bf16.mxu1 %v2870_v36  ;;  %v1179_v63 = vsel %vm654_vm8, %v1178_v61, %v1171_v62 }
 0x1b0   : > { %2499 = vmatmul.mubr.msk.bf16.vlgmr.msra.gmra.mrb[0].mxu1 %vm696_vm14, %v808_v0  ;;  %v1175_v0 = vpop.permute.xlu1 %1174 }
 0x1b1   : > { %2507 = vmatpush3.bf16.msra.mxu1 %v2870_v36  ;;  %2502 = vmatprep.mubr.msk.bf16.mxu1 %vm696_vm14, %v809_v7  ;;  %v1180_v1 = vsel %vm663_vm9, %v1179_v63, %v1175_v0  ;;  %v2873_v63 = vld [vmem:[%s3494_s4 + $0x64] sm:$0xff]  }
 0x1b2   : > { %2508 = vmatprep.subr.bf16.mxu1 %v2871_v42  ;;  %v1181_v2 = vpack.c.bf16 %v1180_v1, %v1059_v51  ;;  %2520 = vmatprep.subr.bf16.mxu0 %v2873_v63 }
 0x1b3   : > { %2521 = vmatpush3.bf16.msra.mxu0 %v2873_v63 }
 0x1b5   : > { %2509 = vmatpush3.bf16.msra.mxu1 %v2871_v42 }
 0x1b6   : > { %2674 = vmatprep.subr.msk.bf16.mxu1 %vm709_vm15, %v2872_v47 }
 0x1b8   : > { %2503 = vmatmul.mubr.msk.bf16.gmra.mrb[4].mxu1 %vm696_vm14, %v1060_v52 }
 0x1b9   : > { %2512 = vmatprep.mubr.msk.bf16.mxu1 %vm696_vm14, %v3163_v27  ;;  %2511 = vmatpush3.bf16.msra.mxu1 %v1207_v54  ;;  %v2775_v27 = vpop.permute.xlu0 %2774 }
 0x1ba   : > { %v2777_v4 = vunpack.i.h.bf16 %v2775_v27  ;;  %v2776_v49 = vunpack.i.l.bf16 %v2775_v27 }
 0x1bc   : > { %v1496_v13 = vsel %vm405_vm1, %v2996_v21, %v2777_v4  ;;  %v1495_v24 = vsel %vm405_vm1, %v3003_v28, %v2776_v49 }
 0x1bd   : > { %v2780_v50 = vpop.permute.xlu0 %2779 }
 0x1be   : > { %v2782_v3 = vunpack.i.h.bf16 %v2780_v50  ;;  %v2781_v7 = vunpack.i.l.bf16 %v2780_v50 }
 0x1c0   : > { %2513 = vmatmul.mubr.msk.bf16.vlgmr.msra.gmra.mrb[0].mxu1 %vm696_vm14, %v3180_v56  ;;  %v1503_v25 = vsel %vm296_vm0, %v1495_v24, %v2781_v7  ;;  %v1504_v8 = vsel %vm296_vm0, %v1496_v13, %v2782_v3 }
 0x1c1   : > { %2516 = vmatprep.mubr.msk.bf16.mxu1 %vm696_vm14, %v939_v34  ;;  %v2785_v56 = vpop.permute.xlu0 %2784 }
 0x1c2   : > { %v2787_v26 = vunpack.i.h.bf16 %v2785_v56  ;;  %v2786_v46 = vunpack.i.l.bf16 %v2785_v56 }
 0x1c4   : > { %v1511_v29 = vsel %vm654_vm8, %v1503_v25, %v2786_v46  ;;  %v1512_v30 = vsel %vm654_vm8, %v1504_v8, %v2787_v26  ;;  %v2874_v8 = vld [vmem:[%s3494_s4 + $0x6c] sm:$0xff]  }
 0x1c5   : > { %v2790_v31 = vpop.permute.xlu0 %2789  ;;  %2522 = vmatprep.subr.bf16.mxu0 %v2874_v8 }
 0x1c6   : > { %v2792_v32 = vunpack.i.h.bf16 %v2790_v31  ;;  %v2791_v55 = vunpack.i.l.bf16 %v2790_v31  ;;  %2523 = vmatpush3.bf16.msra.mxu0 %v2874_v8 }
 0x1c8   : > { %2517 = vmatmul.mubr.msk.bf16.gmra.mrb[4].mxu1 %vm696_vm14, %v1181_v2  ;;  %v1519_v33 = vsel %vm663_vm9, %v1511_v29, %v2791_v55  ;;  %v3268_v21 = vsel %vm663_vm9, %v1512_v30, %v2792_v32 }
 0x1c9   : > { %v1527_v28 = vpack.c.bf16 %v3268_v21, %v1519_v33 }
 0x1cb   : > { %2526 = vmatprep.mubr.msk.bf16.mxu0 %vm696_vm14, %v1527_v28 }
 0x293   : > { %v2514_v34 = vpop.f32.mrb[0].mxu1 }
 0x294   : > { %v2590_v35 = vadd.f32 %v2514_v34, %v2243_v17  ;;  %v1243_v36 = vpop.f32.mrb[1].mxu1 }
 0x295   : > { %v2591_v14 = vadd.f32 %v2243_v17, %v1243_v36  ;;  %v2515_v37 = vpop.f32.mrb[2].mxu1 }
 0x296   : > { %v1284_v38 = vmax.f32 %v2590_v35, 0.0  ;;  %v2592_v39 = vadd.f32 %v2515_v37, %v2243_v17  ;;  %v1246_v40 = vpop.f32.mrb[3].mxu1  ;;  %v2875_v35 = vld [vmem:[%s3494_s4 + $0x74] ss:$0 sps:$4 sm:$0xff]  }
 0x297   : > { %v1282_v42 = vmax.f32 %v2591_v14, 0.0  ;;  %v2593_v43 = vadd.f32 %v2243_v17, %v1246_v40  ;;  %2675 = vmatprep.subr.msk.bf16.mxu0 %vm709_vm15, %v2875_v35 }
 0x298   : > { %1292 = vst.msk [vmem:[#allocation2 + $0x42] sm:$0xff] %vm405_vm1, %v1284_v38  ;;  %v1285_v45 = vmax.f32 %v2592_v39, 0.0  ;;  %v1565_v38 = vsel %vm709_vm15, %v2875_v35, 0 }
 0x299   : > { %1290 = vst.msk [vmem:[#allocation2 + $0x22] sm:$0xff] %vm405_vm1, %v1282_v42  ;;  %v1283_v47 = vmax.f32 %v2593_v43, 0.0  ;;  %2525 = vmatpush3.bf16.msra.mxu0 %v1565_v38  ;;  %v3305_v43 = vld [vmem:[%s3494_s4 + $0x78] sm:$0xff]  }
 0x29a   : > { %1293 = vst.msk [vmem:[#allocation2 + $0x52] sm:$0xff] %vm405_vm1, %v1285_v45  ;;  %2534 = vmatprep.subr.bf16.mxu0 %v3305_v43 }
 0x29b   : > { %1291 = vst.msk [vmem:[#allocation2 + $0x32] sm:$0xff] %vm405_vm1, %v1283_v47  ;;  %v2518_v51 = vpop.f32.mrb[4].mxu1 }
 0x29c   : > { %v2594_v52 = vadd.f32 %v2518_v51, %v2243_v17  ;;  %v1259_v54 = vpop.f32.mrb[5].mxu1 }
 0x29d   : > { %v2595_v58 = vadd.f32 %v2243_v17, %v1259_v54  ;;  %v2519_v59 = vpop.f32.mrb[6].mxu1 }
 0x29e   : > { %v1288_v60 = vmax.f32 %v2594_v52, 0.0  ;;  %v2596_v61 = vadd.f32 %v2519_v59, %v2243_v17  ;;  %v1262_v62 = vpop.f32.mrb[7].mxu1 }
 0x29f   : > { %v1286_v0 = vmax.f32 %v2595_v58, 0.0  ;;  %v2597_v1 = vadd.f32 %v2243_v17, %v1262_v62  ;;  %v1314_v4 = vld [vmem:[#allocation2 + $0x41] sm:$0xff] }
 0x2a0   : > { %1296 = vst.msk [vmem:[#allocation2 + $0x82] sm:$0xff] %vm405_vm1, %v1288_v60  ;;  %v1289_v2 = vmax.f32 %v2596_v61, 0.0  ;;  %v1312_v3 = vld [vmem:[#allocation2 + $0x21] sm:$0xff] }
 0x2a1   : > { %1294 = vst.msk [vmem:[#allocation2 + $0x62] sm:$0xff] %vm405_vm1, %v1286_v0  ;;  %v1287_v27 = vmax.f32 %v2597_v1, 0.0  ;;  %v1315_v49 = vld [vmem:[#allocation2 + $0x51] sm:$0xff]  ;;  %v1326_v25 = vld [vmem:[#allocation2 + $0x42] sm:$0xff] }
 0x2a2   : > { %1297 = vst.msk [vmem:[#allocation2 + $0x92] sm:$0xff] %vm405_vm1, %v1289_v2  ;;  %v2793_v50 = vpack.i.bf16 %v1315_v49, %v1314_v4  ;;  %v1313_v7 = vld [vmem:[#allocation2 + $0x31] sm:$0xff]  ;;  %v1324_v46 = vld [vmem:[#allocation2 + $0x22] sm:$0xff] }
 0x2a3   : > { %1295 = vst.msk [vmem:[#allocation2 + $0x72] sm:$0xff] %vm405_vm1, %v1287_v27  ;;  %v2813_v13 = vpack.i.bf16 %v1313_v7, %v1312_v3  ;;  %v1327_v24 = vld [vmem:[#allocation2 + $0x52] sm:$0xff]  ;;  %v1338_v32 = vld [vmem:[#allocation2 + $0x43] sm:$0xff] }
 0x2a4   : > { %2794 = vrot.lane.b32.xlu0 %v2793_v50, %s2897_s29  ;;  %v1325_v56 = vld [vmem:[#allocation2 + $0x32] sm:$0xff]  ;;  %v2798_v26 = vpack.i.bf16 %v1327_v24, %v1326_v25  ;;  %v1336_v33 = vld [vmem:[#allocation2 + $0x23] sm:$0xff] }
 0x2a5   : > { %2814 = vrot.lane.b32.xlu1 %v2813_v13, %s2897_s29  ;;  %v2818_v29 = vpack.i.bf16 %v1325_v56, %v1324_v46  ;;  %v1339_v30 = vld [vmem:[#allocation2 + $0x53] sm:$0xff]  ;;  %v1350_v36 = vld [vmem:[#allocation2 + $0x44] sm:$0xff] }
 0x2a6   : > { %v1337_v31 = vld [vmem:[#allocation2 + $0x33] sm:$0xff]  ;;  %v2803_v55 = vpack.i.bf16 %v1339_v30, %v1338_v32  ;;  %v1348_v37 = vld [vmem:[#allocation2 + $0x24] sm:$0xff] }
 0x2a7   : > { %v2823_v28 = vpack.i.bf16 %v1337_v31, %v1336_v33  ;;  %v1351_v17 = vld [vmem:[#allocation2 + $0x54] sm:$0xff]  ;;  %v1318_v45 = vld [vmem:[#allocation2 + $0x81] sm:$0xff] }
 0x2a8   : > { %2799 = vrot.lane.b32.xlu0 %v2798_v26, %s2900_s8  ;;  %v1349_v34 = vld [vmem:[#allocation2 + $0x34] sm:$0xff]  ;;  %v2808_v14 = vpack.i.bf16 %v1351_v17, %v1350_v36  ;;  %v1316_v42 = vld [vmem:[#allocation2 + $0x61] sm:$0xff] }
 0x2a9   : > { %2819 = vrot.lane.b32.xlu1 %v2818_v29, %s2900_s8  ;;  %v2828_v39 = vpack.i.bf16 %v1349_v34, %v1348_v37  ;;  %v1328_v52 = vld [vmem:[#allocation2 + $0x62] sm:$0xff]  ;;  %v1319_v61 = vld [vmem:[#allocation2 + $0x91] sm:$0xff] }
 0x2aa   : > { %v1317_v40 = vld [vmem:[#allocation2 + $0x71] sm:$0xff]  ;;  %v1342_v54 = vld [vmem:[#allocation2 + $0x83] sm:$0xff] }
 0x2ab   : > { %v2833_v47 = vpack.i.bf16 %v1317_v40, %v1316_v42  ;;  %v1329_v51 = vld [vmem:[#allocation2 + $0x72] sm:$0xff]  ;;  %v1340_v60 = vld [vmem:[#allocation2 + $0x63] sm:$0xff] }
 0x2ac   : > { %2804 = vrot.lane.b32.xlu0 %v2803_v55, %s2898_s30  ;;  %v2838_v58 = vpack.i.bf16 %v1329_v51, %v1328_v52  ;;  %v1341_v59 = vld [vmem:[#allocation2 + $0x73] sm:$0xff]  ;;  %v1352_v0 = vld [vmem:[#allocation2 + $0x64] sm:$0xff] }
 0x2ad   : > { %2824 = vrot.lane.b32.xlu1 %v2823_v28, %s2898_s30  ;;  %v2843_v62 = vpack.i.bf16 %v1341_v59, %v1340_v60  ;;  %v1353_v63 = vld [vmem:[#allocation2 + $0x74] sm:$0xff]  ;;  %v1330_v27 = vld [vmem:[#allocation2 + $0x82] sm:$0xff] }
 0x2ae   : > { %v1343_v1 = vld [vmem:[#allocation2 + $0x93] sm:$0xff]  ;;  %v2848_v2 = vpack.i.bf16 %v1353_v63, %v1352_v0  ;;  %v1354_v4 = vld [vmem:[#allocation2 + $0x84] sm:$0xff] }
 0x2af   : > { %v1331_v49 = vld [vmem:[#allocation2 + $0x92] sm:$0xff]  ;;  %v1302_v46 = vld [vmem:[#allocation2 + $0x40] sm:$0xff] }
 0x2b0   : > { %2809 = vrot.lane.b32.xlu0 %v2808_v14, %s2899_s7  ;;  %v1355_v50 = vld [vmem:[#allocation2 + $0x94] sm:$0xff]  ;;  %v1300_v32 = vld [vmem:[#allocation2 + $0x20] sm:$0xff] }
 0x2b1   : > { %2829 = vrot.lane.b32.xlu1 %v2828_v39, %s2899_s7  ;;  %v1303_v29 = vld [vmem:[#allocation2 + $0x50] sm:$0xff] }
 0x2b2   : > { %v1301_v55 = vld [vmem:[#allocation2 + $0x30] sm:$0xff] }
 0x2b4   : > { %1641 = vrot.lane.b32.xlu0 %v1318_v45, %s2897_s29 }
 0x2b5   : > { %2834 = vrot.lane.b32.xlu1 %v2833_v47, %s2897_s29 }
 0x2b8   : > { %1649 = vrot.lane.b32.xlu0 %v1342_v54, %s2898_s30 }
 0x2b9   : > { %2839 = vrot.lane.b32.xlu1 %v2838_v58, %s2900_s8 }
 0x2bc   : > { %1774 = vrot.lane.b32.xlu0 %v1319_v61, %s2897_s29 }
 0x2bd   : > { %2844 = vrot.lane.b32.xlu1 %v2843_v62, %s2898_s30 }
 0x2c0   : > { %1782 = vrot.lane.b32.xlu0 %v1343_v1, %s2898_s30  ;;  %v2877_v1 = vld [vmem:[%s3494_s4 + $0x80] sm:$0xff]  }
 0x2c1   : > { %2849 = vrot.lane.b32.xlu1 %v2848_v2, %s2899_s7 }
 0x2c4   : > { %1895 = vrot.lane.b32.xlu0 %v3094_v6, %s2897_s29 }
 0x2c5   : > { %1645 = vrot.lane.b32.xlu1 %v1330_v27, %s2900_s8 }
 0x2c8   : > { %1903 = vrot.lane.b32.xlu0 %v3099_v10, %s2898_s30 }
 0x2c9   : > { %1653 = vrot.lane.b32.xlu1 %v1354_v4, %s2899_s7  ;;  %v2878_v4 = vld [vmem:[%s3494_s4 + $0x88] ss:$0 sps:$4 sm:$0xff]  }
 0x2cc   : > { %2016 = vrot.lane.b32.xlu0 %v3104_v15, %s2897_s29 }
 0x2cd   : > { %1778 = vrot.lane.b32.xlu1 %v1331_v49, %s2900_s8 }
 0x2d0   : > { %2024 = vrot.lane.b32.xlu0 %v3112_v19, %s2898_s30 }
 0x2d1   : > { %1786 = vrot.lane.b32.xlu1 %v1355_v50, %s2899_s7 }
 0x2d5   : > { %1899 = vrot.lane.b32.xlu1 %v3106_v18, %s2900_s8 }
 0x2d9   : > { %1907 = vrot.lane.b32.xlu1 %v3114_v20, %s2899_s7 }
 0x2dd   : > { %2020 = vrot.lane.b32.xlu1 %v3120_v22, %s2900_s8 }
 0x2e1   : > { %2028 = vrot.lane.b32.xlu1 %v3126_v23, %s2899_s7  ;;  %s2364_s7 = sshll.u32 %s3498_s22, 6 }
 0x2e2   : > { %s3462_s18 = scalar_lea.vmem %s3496_s6, %s2364_s7 }
 0x316   : > { %v2795_v6 = vpop.permute.xlu0 %2794 }
 0x317   : > { %v2815_v10 = vpop.permute.xlu1 %2814  ;;  %v2797_v7 = vunpack.i.h.bf16 %v2795_v6  ;;  %v2796_v19 = vunpack.i.l.bf16 %v2795_v6 }
 0x318   : > { %v2817_v13 = vunpack.i.h.bf16 %v2815_v10  ;;  %v2816_v24 = vunpack.i.l.bf16 %v2815_v10  ;;  %v1698_v10 = vsel %vm709_vm15, %v2878_v4, 0 }
 0x319   : > { %v1499_v23 = vsel %vm405_vm1, %v1302_v46, %v2796_v19  ;;  %v1500_v31 = vsel %vm405_vm1, %v1303_v29, %v2797_v7 }
 0x31a   : > { %v2800_v15 = vpop.permute.xlu0 %2799  ;;  %v1497_v17 = vsel %vm405_vm1, %v1300_v32, %v2816_v24  ;;  %v1498_v34 = vsel %vm405_vm1, %v1301_v55, %v2817_v13  ;;  %v1304_v13 = vld [vmem:[#allocation2 + $0x60] sm:$0xff]  ;;  %v1305_v24 = vld [vmem:[#allocation2 + $0x70] sm:$0xff] }
 0x31b   : > { %v2820_v3 = vpop.permute.xlu1 %2819  ;;  %v2802_v56 = vunpack.i.h.bf16 %v2800_v15  ;;  %v2801_v25 = vunpack.i.l.bf16 %v2800_v15  ;;  %v2879_v15 = vld [vmem:[%s3494_s4 + $0x8c] sm:$0xff]  }
 0x31c   : > { %v2822_v8 = vunpack.i.h.bf16 %v2820_v3  ;;  %v2821_v26 = vunpack.i.l.bf16 %v2820_v3 }
 0x31d   : > { %v1507_v35 = vsel %vm296_vm0, %v1499_v23, %v2801_v25  ;;  %v1508_v36 = vsel %vm296_vm0, %v1500_v31, %v2802_v56 }
 0x31e   : > { %v2805_v18 = vpop.permute.xlu0 %2804  ;;  %v1505_v37 = vsel %vm296_vm0, %v1497_v17, %v2821_v26  ;;  %v1506_v38 = vsel %vm296_vm0, %v1498_v34, %v2822_v8 }
 0x31f   : > { %v2825_v20 = vpop.permute.xlu1 %2824  ;;  %v2807_v22 = vunpack.i.h.bf16 %v2805_v18  ;;  %v2806_v30 = vunpack.i.l.bf16 %v2805_v18 }
 0x320   : > { %v2827_v33 = vunpack.i.h.bf16 %v2825_v20  ;;  %v2826_v28 = vunpack.i.l.bf16 %v2825_v20 }
 0x321   : > { %v1515_v45 = vsel %vm654_vm8, %v1507_v35, %v2806_v30  ;;  %v1516_v47 = vsel %vm654_vm8, %v1508_v36, %v2807_v22  ;;  %v2880_v35 = vld [vmem:[%s3494_s4 + $0x94] sm:$0xff]  }
 0x322   : > { %v2810_v14 = vpop.permute.xlu0 %2809  ;;  %v1513_v54 = vsel %vm654_vm8, %v1505_v37, %v2826_v28  ;;  %v1514_v58 = vsel %vm654_vm8, %v1506_v38, %v2827_v33  ;;  %v1306_v28 = vld [vmem:[#allocation2 + $0x80] sm:$0xff] }
 0x323   : > { %v2812_v39 = vunpack.i.h.bf16 %v2810_v14  ;;  %v2811_v40 = vunpack.i.l.bf16 %v2810_v14  ;;  %v2830_v42 = vpop.permute.xlu1 %2829 }
 0x324   : > { %v2832_v51 = vunpack.i.h.bf16 %v2830_v42  ;;  %v2831_v52 = vunpack.i.l.bf16 %v2830_v42 }
 0x325   : > { %v1523_v59 = vsel %vm663_vm9, %v1515_v45, %v2811_v40  ;;  %v1524_v60 = vsel %vm663_vm9, %v1516_v47, %v2812_v39  ;;  %v2881_v39 = vld [vmem:[%s3494_s4 + $0x9c] ss:$0 sps:$4 sm:$0xff]   ;;  %v2882_v47 = vld [vmem:[%s3494_s4 + $0xa0] sm:$0xff]  }
 0x326   : > { %v1521_v61 = vsel %vm663_vm9, %v1513_v54, %v2831_v52  ;;  %v1522_v62 = vsel %vm663_vm9, %v1514_v58, %v2832_v51  ;;  %v3357_v2 = vpack.c.bf16 %v1524_v60, %v1523_v59  ;;  %v1642_v33 = vpop.permute.xlu0 %1641  ;;  %v1819_v45 = vsel %vm709_vm15, %v2881_v39, 0  ;;  %v1307_v54 = vld [vmem:[#allocation2 + $0x90] sm:$0xff] }
 0x327   : > { %v3352_v63 = vpack.c.bf16 %v1522_v62, %v1521_v61  ;;  %v2835_v0 = vpop.permute.xlu1 %2834  ;;  %v1660_v32 = vpack.c.bf16 %v1521_v61, %v3268_v21  ;;  %v1661_v17 = vpack.c.bf16 %v1523_v59, %v1522_v62  ;;  %v1656_v34 = vsel %vm405_vm1, %v1306_v28, %v1642_v33  ;;  %v2883_v59 = vld [vmem:[%s3494_s4 + $0xa8] sm:$0xff]  }
 0x328   : > { %v2837_v49 = vunpack.i.h.bf16 %v2835_v0  ;;  %v2836_v50 = vunpack.i.l.bf16 %v2835_v0  ;;  %v2884_v0 = vld [vmem:[%s3494_s4 + $0xb0] ss:$0 sps:$4 sm:$0xff]  }
 0x329   : > { %2527 = vmatmul.mubr.msk.bf16.vlgmr.msra.gmra.mrb[8].mxu0 %vm696_vm14, %v3352_v63 }
 0x32a   : > { %2530 = vmatprep.mubr.msk.bf16.mxu0 %vm696_vm14, %v3357_v2  ;;  %2535 = vmatpush3.bf16.msra.mxu0 %v3305_v43  ;;  %v1501_v56 = vsel %vm405_vm1, %v1304_v13, %v2836_v50  ;;  %v1502_v25 = vsel %vm405_vm1, %v1305_v24, %v2837_v49  ;;  %v1650_v21 = vpop.permute.xlu0 %1649  ;;  %v2885_v49 = vld [vmem:[%s3494_s4 + $0xb4] sm:$0xff]  }
 0x32b   : > { %v2840_v27 = vpop.permute.xlu1 %2839  ;;  %2536 = vmatprep.subr.bf16.mxu0 %v2877_v1 }
 0x32c   : > { %v2842_v3 = vunpack.i.h.bf16 %v2840_v27  ;;  %v2841_v43 = vunpack.i.l.bf16 %v2840_v27 }
 0x32e   : > { %2537 = vmatpush3.bf16.msra.mxu0 %v2877_v1  ;;  %v1509_v8 = vsel %vm296_vm0, %v1501_v56, %v2841_v43  ;;  %v1510_v26 = vsel %vm296_vm0, %v1502_v25, %v2842_v3  ;;  %v1775_v52 = vpop.permute.xlu0 %1774  ;;  %v2886_v43 = vld [vmem:[%s3494_s4 + $0xbc] sm:$0xff]  }
 0x32f   : > { %v2845_v6 = vpop.permute.xlu1 %2844  ;;  %2676 = vmatprep.subr.msk.bf16.mxu0 %vm709_vm15, %v2878_v4  ;;  %v1789_v58 = vsel %vm405_vm1, %v1307_v54, %v1775_v52  ;;  %v1940_v4 = vsel %vm709_vm15, %v2884_v0, 0 }
 0x330   : > { %v2847_v7 = vunpack.i.h.bf16 %v2845_v6  ;;  %v2846_v19 = vunpack.i.l.bf16 %v2845_v6 }
 0x332   : > { %2539 = vmatpush3.bf16.msra.mxu0 %v1698_v10  ;;  %v1517_v29 = vsel %vm654_vm8, %v1509_v8, %v2846_v19  ;;  %v1518_v22 = vsel %vm654_vm8, %v1510_v26, %v2847_v7  ;;  %v1783_v62 = vpop.permute.xlu0 %1782 }
 0x333   : > { %v2850_v18 = vpop.permute.xlu1 %2849  ;;  %2548 = vmatprep.subr.bf16.mxu0 %v2879_v15 }
 0x334   : > { %v2852_v20 = vunpack.i.h.bf16 %v2850_v18  ;;  %v2851_v46 = vunpack.i.l.bf16 %v2850_v18 }
 0x336   : > { %v1525_v30 = vsel %vm663_vm9, %v1517_v29, %v2851_v46  ;;  %v1526_v23 = vsel %vm663_vm9, %v1518_v22, %v2852_v20  ;;  %v1896_v50 = vpop.permute.xlu0 %1895 }
 0x337   : > { %v3380_v31 = vpack.c.bf16 %v1526_v23, %v1525_v30  ;;  %v1646_v55 = vpop.permute.xlu1 %1645  ;;  %v1662_v36 = vpack.c.bf16 %v1525_v30, %v1524_v60  ;;  %v1910_v6 = vsel %vm405_vm1, %v3225_v11, %v1896_v50  ;;  %v2887_v11 = vld [vmem:[%s3494_s4 + $0xc4] ss:$0 sps:$4 sm:$0xff]  }
 0x338   : > { %v1657_v14 = vsel %vm296_vm0, %v1656_v34, %v1646_v55  ;;  %v2061_v56 = vsel %vm709_vm15, %v2887_v11, 0 }
 0x339   : > { %2531 = vmatmul.mubr.msk.bf16.gmra.mrb[12].mxu0 %vm696_vm14, %v3380_v31  ;;  %v1658_v38 = vsel %vm654_vm8, %v1657_v14, %v1650_v21 }
 0x33a   : > { %2540 = vmatprep.mubr.msk.bf16.mxu0 %vm696_vm14, %v1660_v32  ;;  %v1904_v3 = vpop.permute.xlu0 %1903 }
 0x33b   : > { %v1654_v37 = vpop.permute.xlu1 %1653 }
 0x33c   : > { %v1659_v40 = vsel %vm663_vm9, %v1658_v38, %v1654_v37 }
 0x33d   : > { %v1663_v42 = vpack.c.bf16 %v1659_v40, %v1526_v23 }
 0x33e   : > { %v2017_v25 = vpop.permute.xlu0 %2016 }
 0x33f   : > { %v1779_v51 = vpop.permute.xlu1 %1778  ;;  %v2031_v18 = vsel %vm405_vm1, %v3244_v57, %v2017_v25  ;;  %v2300_v57 = vld [vmem:[%s3495_s5 + $0x1] ss:$0 sm:$0xff] }
 0x340   : > { %v1790_v60 = vsel %vm296_vm0, %v1789_v58, %v1779_v51 }
 0x341   : > { %2541 = vmatmul.mubr.msk.bf16.vlgmr.msra.gmra.mrb[8].mxu0 %vm696_vm14, %v1661_v17 }
 0x342   : > { %2549 = vmatpush3.bf16.msra.mxu0 %v2879_v15  ;;  %2544 = vmatprep.mubr.msk.bf16.mxu0 %vm696_vm14, %v1662_v36  ;;  %v2025_v20 = vpop.permute.xlu0 %2024 }
 0x343   : > { %2550 = vmatprep.subr.bf16.mxu0 %v2880_v35  ;;  %v1787_v61 = vpop.permute.xlu1 %1786 }
 0x346   : > { %2551 = vmatpush3.bf16.msra.mxu0 %v2880_v35 }
 0x347   : > { %2677 = vmatprep.subr.msk.bf16.mxu0 %vm709_vm15, %v2881_v39  ;;  %v1900_v10 = vpop.permute.xlu1 %1899 }
 0x348   : > { %v1911_v15 = vsel %vm296_vm0, %v1910_v6, %v1900_v10 }
 0x349   : > { %2545 = vmatmul.mubr.msk.bf16.gmra.mrb[12].mxu0 %vm696_vm14, %v1663_v42  ;;  %v1912_v7 = vsel %vm654_vm8, %v1911_v15, %v1904_v3 }
 0x34a   : > { %2554 = vmatprep.mubr.msk.bf16.mxu0 %vm696_vm14, %v3352_v63  ;;  %2553 = vmatpush3.bf16.msra.mxu0 %v1819_v45  ;;  %v1791_v63 = vsel %vm654_vm8, %v1790_v60, %v1783_v62 }
 0x34b   : > { %2562 = vmatprep.subr.bf16.mxu0 %v2882_v47  ;;  %v1792_v1 = vsel %vm663_vm9, %v1791_v63, %v1787_v61  ;;  %v1908_v19 = vpop.permute.xlu1 %1907 }
 0x34c   : > { %v1793_v27 = vpack.c.bf16 %v1792_v1, %v1659_v40  ;;  %v1913_v13 = vsel %vm663_vm9, %v1912_v7, %v1908_v19 }
 0x34d   : > { %v1914_v24 = vpack.c.bf16 %v1913_v13, %v1792_v1 }
 0x34f   : > { %v2021_v8 = vpop.permute.xlu1 %2020 }
 0x350   : > { %v2032_v26 = vsel %vm296_vm0, %v2031_v18, %v2021_v8 }
 0x351   : > { %2555 = vmatmul.mubr.msk.bf16.vlgmr.msra.gmra.mrb[8].mxu0 %vm696_vm14, %v3357_v2  ;;  %v2033_v46 = vsel %vm654_vm8, %v2032_v26, %v2025_v20 }
 0x352   : > { %2563 = vmatpush3.bf16.msra.mxu0 %v2882_v47  ;;  %2558 = vmatprep.mubr.msk.bf16.mxu0 %vm696_vm14, %v3380_v31 }
 0x353   : > { %2564 = vmatprep.subr.bf16.mxu0 %v2883_v59  ;;  %v2029_v29 = vpop.permute.xlu1 %2028 }
 0x354   : > { %v2034_v22 = vsel %vm663_vm9, %v2033_v46, %v2029_v29 }
 0x356   : > { %2565 = vmatpush3.bf16.msra.mxu0 %v2883_v59 }
 0x357   : > { %2678 = vmatprep.subr.msk.bf16.mxu0 %vm709_vm15, %v2884_v0 }
 0x359   : > { %2559 = vmatmul.mubr.msk.bf16.gmra.mrb[12].mxu0 %vm696_vm14, %v1793_v27 }
 0x35a   : > { %2568 = vmatprep.mubr.msk.bf16.mxu0 %vm696_vm14, %v1661_v17  ;;  %2567 = vmatpush3.bf16.msra.mxu0 %v1940_v4 }
 0x35b   : > { %2576 = vmatprep.subr.bf16.mxu0 %v2885_v49 }
 0x361   : > { %2569 = vmatmul.mubr.msk.bf16.vlgmr.msra.gmra.mrb[8].mxu0 %vm696_vm14, %v1662_v36 }
 0x362   : > { %2577 = vmatpush3.bf16.msra.mxu0 %v2885_v49  ;;  %2572 = vmatprep.mubr.msk.bf16.mxu0 %vm696_vm14, %v1663_v42 }
 0x363   : > { %2578 = vmatprep.subr.bf16.mxu0 %v2886_v43 }
 0x366   : > { %2579 = vmatpush3.bf16.msra.mxu0 %v2886_v43 }
 0x367   : > { %2679 = vmatprep.subr.msk.bf16.mxu0 %vm709_vm15, %v2887_v11 }
 0x369   : > { %2573 = vmatmul.mubr.msk.bf16.gmra.mrb[12].mxu0 %vm696_vm14, %v1914_v24 }
 0x36a   : > { %2582 = vmatprep.mubr.msk.bf16.mxu0 %vm696_vm14, %v3357_v2  ;;  %2581 = vmatpush3.bf16.msra.mxu0 %v2061_v56  ;;  %v2035_v2 = vpack.c.bf16 %v2034_v22, %v1913_v13 }
 0x371   : > { %2583 = vmatmul.mubr.msk.bf16.vlgmr.msra.gmra.mrb[8].mxu0 %vm696_vm14, %v3380_v31 }
 0x372   : > { %2586 = vmatprep.mubr.msk.bf16.mxu0 %vm696_vm14, %v1793_v27 }
 0x379   : > { %2587 = vmatmul.mubr.msk.bf16.gmra.mrb[12].mxu0 %vm696_vm14, %v2035_v2 }
 0x444   : > { %v2584_v30 = vpop.f32.mrb[8].mxu0 }
 0x445   : > { %v2598_v23 = vadd.f32 %v2584_v30, %v2300_v57  ;;  %v2097_v32 = vpop.f32.mrb[9].mxu0 }
 0x446   : > { %v2599_v55 = vadd.f32 %v2300_v57, %v2097_v32  ;;  %v2585_v33 = vpop.f32.mrb[10].mxu0 }
 0x447   : > { %v2138_v28 = vmax.f32 %v2598_v23, 0.0  ;;  %v2600_v17 = vadd.f32 %v2585_v33, %v2300_v57  ;;  %v2100_v31 = vpop.f32.mrb[11].mxu0 }
 0x448   : > { %v2136_v34 = vmax.f32 %v2599_v55, 0.0  ;;  %v2601_v35 = vadd.f32 %v2300_v57, %v2100_v31 }
 0x449   : > { %v2146_v36 = vadd.f32 %v2138_v28, %v3011_v41  ;;  %v2139_v14 = vmax.f32 %v2600_v17, 0.0 }
 0x44a   : > { %v2144_v37 = vadd.f32 %v2136_v34, %v3016_v44  ;;  %v2137_v21 = vmax.f32 %v2601_v35, 0.0 }
 0x44b   : > { %v2154_v38 = vmax.f32 %v2146_v36, 0.0  ;;  %v2147_v39 = vadd.f32 %v2139_v14, %v3021_v48 }
 0x44c   : > { %v2152_v40 = vmax.f32 %v2144_v37, 0.0  ;;  %v2145_v42 = vadd.f32 %v2137_v21, %v3030_v53  ;;  %v2588_v41 = vpop.f32.mrb[12].mxu0 }
 0x44d   : > { %2162 = vst.msk [vmem:[%s3462_s18 + $0x10] sm:$0xff] %vm405_vm1, %v2154_v38  ;;  %v2155_v45 = vmax.f32 %v2147_v39, 0.0  ;;  %v2602_v47 = vadd.f32 %v2588_v41, %v2300_v57  ;;  %v2113_v51 = vpop.f32.mrb[13].mxu0 }
 0x44e   : > { %2160 = vst.msk [vmem:[%s3462_s18] sm:$0xff] %vm405_vm1, %v2152_v40  ;;  %v2153_v52 = vmax.f32 %v2145_v42, 0.0  ;;  %v2603_v54 = vadd.f32 %v2300_v57, %v2113_v51  ;;  %v2589_v58 = vpop.f32.mrb[14].mxu0 }
 0x44f   : > { %2163 = vst.msk [vmem:[%s3462_s18 + $0x18] sm:$0xff] %vm405_vm1, %v2155_v45  ;;  %v2142_v44 = vmax.f32 %v2602_v47, 0.0  ;;  %v2604_v48 = vadd.f32 %v2589_v58, %v2300_v57  ;;  %v2116_v59 = vpop.f32.mrb[15].mxu0 }
 0x450   : > { %2161 = vst.msk [vmem:[%s3462_s18 + $0x8] sm:$0xff] %vm405_vm1, %v2153_v52  ;;  %v2140_v53 = vmax.f32 %v2603_v54, 0.0  ;;  %v2605_v60 = vadd.f32 %v2300_v57, %v2116_v59 }
 0x451   : > { %v2150_v61 = vadd.f32 %v2142_v44, %v3042_v5  ;;  %v2143_v62 = vmax.f32 %v2604_v48, 0.0 }
 0x452   : > { %v2148_v63 = vadd.f32 %v2140_v53, %v3048_v9  ;;  %v2141_v0 = vmax.f32 %v2605_v60, 0.0 }
 0x453   : > { %v2158_v1 = vmax.f32 %v2150_v61, 0.0  ;;  %v2151_v27 = vadd.f32 %v2143_v62, %v3053_v12 }
 0x454   : > { %v2156_v4 = vmax.f32 %v2148_v63, 0.0  ;;  %v2149_v49 = vadd.f32 %v2141_v0, %v3058_v16 }
 0x455   : > { %2166 = vst.msk [vmem:[%s3462_s18 + $0x30] sm:$0xff] %vm405_vm1, %v2158_v1  ;;  %v2159_v50 = vmax.f32 %v2151_v27, 0.0 }
 0x456   : > { %2164 = vst.msk [vmem:[%s3462_s18 + $0x20] sm:$0xff] %vm405_vm1, %v2156_v4  ;;  %v2157_v6 = vmax.f32 %v2149_v49, 0.0 }
 0x457   : > { %2167 = vst.msk [vmem:[%s3462_s18 + $0x38] sm:$0xff] %vm405_vm1, %v2159_v50 }
 0x458   : > { %2165 = vst.msk [vmem:[%s3462_s18 + $0x28] sm:$0xff] %vm405_vm1, %v2157_v6 }
 0x459 PF: > { %s16_s21 = sadd.s32 1, %s2894_s21  }
 0x45a   : > { %p13_p4 = scmp.ge.s32.totalorder %s16_s21, 4  }
 0x45c   :  { %15 = sbr.rel (!%p13_p4) target bundleno = 1 (0x1), region = 86 }

// kernel: tpu_custom_call.1
= control target key start
LH: loop header
LB: loop body
LE: loop exit
PB: predicated region body
PF: predicated region fallthrough
CT: control target
= control target key end

     0   :  { %s2936_s21 = smov 0   ;;  %s3490_s0 = inlined_call_operand.vmem [shape: bf16[2,64,16], index: 0, kind: input, shape index: {}]   ;;  %s3491_s1 = inlined_call_operand.vmem [shape: bf16[16,8], index: 1, kind: input, shape index: {}]   ;;  %s3492_s2 = inlined_call_operand.vmem [shape: f32[1,8], index: 2, kind: input, shape index: {}]   ;;  %s3493_s3 = inlined_call_operand.vmem [shape: f32[1,8], index: 3, kind: input, shape index: {}]   ;;  %s3494_s4 = inlined_call_operand.vmem [shape: bf16[2,5,40,8], index: 4, kind: input, shape index: {}]   ;;  %s3495_s5 = inlined_call_operand.vmem [shape: f32[2,1,8], index: 5, kind: input, shape index: {}]   ;;  %s3496_s6 = inlined_call_operand.vmem [shape: f32[2,64,8], index: 6, kind: output, shape index: {}]  }
   0x1 LB: > { %s2223_s22 = sadd.s32 4294967295, %s2894_s21   ;;  %p2227_p0 = scmp.ge.s32.totalorder %s2894_s21, 1  ;;  %s2894_s21 = sphi %s2936_s21, %s16_s21  }
   0x2   : > { %p212_p1 = scmp.lt.s32.totalorder %s2894_s21, 3 }
   0x4   : > { %p213_p2 = pnand %p2227_p0, %p212_p1 }
   0x5   : > { %v2853_v0 = vld [vmem:[%s3491_s1] sm:$0xff] (!%p213_p2)   ;;  %p242_p3 = scmp.lt.s32.totalorder (!%p213_p2), %s2223_s22, 1  ;;  %vm296_vm0 = vcmask (!%p213_p2), 130048   ;;  %vm405_vm1 = vcmask (!%p213_p2), 64512   ;;  %vm407_vm2 = vcmask (!%p213_p2), 60416   ;;  %v2896_v5 = vmov (!%p213_p2), 0.0  }
   0x6   : > { %216 = sbr.rel (%p213_p2) target bundleno = 1113 (0x459), region = 44  ;;  %2440 = vmatprep.subr.bf16.mxu0 (!%p213_p2), %v2853_v0  ;;  %406 = vst.msk [vmem:[#allocation2] sm:$0xff] (!%p213_p2), %vm405_vm1, %v2896_v5  ;;  %409 = vst.msk [vmem:[#allocation2 + $0x10] sm:$0xff] (!%p213_p2), %vm405_vm1, %v2896_v5  ;;  %vm417_vm3 = vcmask (!%p213_p2), 58368   ;;  %s2897_s29 = smov (!%p213_p2), 8   ;;  %v2858_v52 = vld [vmem:[%s3494_s4] sm:$0xff] (!%p213_p2)  }
   0x7   : > { %2441 = vmatpush3.bf16.msra.mxu0 (!%p213_p2), %v2853_v0  ;;  %408 = vst.msk [vmem:[#allocation2 + $0x8] sm:$0xf] (!%p213_p2), %vm407_vm2, %v2896_v5  ;;  %410 = vst.msk [vmem:[#allocation2 + $0x18] sm:$0xf] (!%p213_p2), %vm407_vm2, %v2896_v5  ;;  %s2898_s30 = smov (!%p213_p2), 24   ;;  %s2899_s7 = smov (!%p213_p2), 32   ;;  %2450 = vmatprep.subr.bf16.mxu1 (!%p213_p2), %v2858_v52 }
   0x8   : > { %412 = vst.msk [vmem:[#allocation2 + $0xa0] sm:$0xff] (!%p213_p2), %vm405_vm1, %v2896_v5  ;;  %414 = vst.msk [vmem:[#allocation2 + $0xb0] sm:$0xff] (!%p213_p2), %vm405_vm1, %v2896_v5  ;;  %s2900_s8 = smov (!%p213_p2), 16   ;;  %v2232_v19 = vld [vmem:[%s3492_s2] ss:$0 sm:$0xff] (!%p213_p2)  ;;  %vm654_vm8 = vcmask (!%p213_p2), 195584   ;;  %2451 = vmatpush3.bf16.msra.mxu1 (!%p213_p2), %v2858_v52 }
   0x9   : > { %413 = vst.msk [vmem:[#allocation2 + $0xa8] sm:$0xf] (!%p213_p2), %vm407_vm2, %v2896_v5  ;;  %415 = vst.msk [vmem:[#allocation2 + $0xb8] sm:$0xf] (!%p213_p2), %vm407_vm2, %v2896_v5  ;;  %v3001_v23 = vld [vmem:[%s3493_s3] ss:$0 sm:$0xff] (!%p213_p2) }
   0xa   : > { %420 = vst.msk [vmem:[#allocation2 + $0x40] sm:$0x3] (!%p213_p2), %vm417_vm3, %v2896_v5  ;;  %421 = vst.msk [vmem:[#allocation2 + $0x50] sm:$0x3] (!%p213_p2), %vm417_vm3, %v2896_v5  ;;  %vm663_vm9 = vcmask (!%p213_p2), 261120   ;;  %vm696_vm14 = vcmask (!%p213_p2), 326656  }
   0xb   : > { %418 = vst.msk [vmem:[#allocation2 + $0x20] sm:$0x3] (!%p213_p2), %vm417_vm3, %v2896_v5  ;;  %419 = vst.msk [vmem:[#allocation2 + $0x30] sm:$0x3] (!%p213_p2), %vm417_vm3, %v2896_v5  ;;  %vm709_vm15 = vcmask (!%p213_p2), 1043456  }
   0xc   : > { %422 = vst.msk [vmem:[#allocation2 + $0x60] sm:$0x3] (!%p213_p2), %vm417_vm3, %v2896_v5  ;;  %423 = vst.msk [vmem:[#allocation2 + $0x70] sm:$0x3] (!%p213_p2), %vm417_vm3, %v2896_v5 }
   0xd   : > { %s3498_s22 = smov (!%p242_p3, %s2223_s22), 1  ;;  %424 = vst.msk [vmem:[#allocation2 + $0x80] sm:$0x3] %vm417_vm3, %v2896_v5  ;;  %425 = vst.msk [vmem:[#allocation2 + $0x90] sm:$0x3] %vm417_vm3, %v2896_v5  ;;  %v2996_v21 = vld [vmem:[#allocation2 + $0x10] sm:$0xff] }
   0xe   : > { %s2363_s25 = sshll.u32 %s3498_s22, 5  ;;  %v454_v6 = vld [vmem:[#allocation2 + $0x1] sm:$0xff]  ;;  %v455_v7 = vld [vmem:[#allocation2 + $0x11] sm:$0xff]  ;;  %426 = vst.msk [vmem:[#allocation2 + $0x2a] sm:$0x3] %vm417_vm3, %v2896_v5 }
   0xf   : > { %s246_s28 = scalar_lea.vmem %s3490_s0, %s2363_s25  ;;  %v2961_v8 = vpack.i.bf16 %v455_v7, %v454_v6  ;;  %427 = vst.msk [vmem:[#allocation2 + $0x3a] sm:$0x3] %vm417_vm3, %v2896_v5  ;;  %428 = vst.msk [vmem:[#allocation2 + $0x4a] sm:$0x3] %vm417_vm3, %v2896_v5  ;;  %v478_v9 = vld [vmem:[#allocation2 + $0x3] sm:$0xff]  ;;  %v479_v10 = vld [vmem:[#allocation2 + $0x13] sm:$0xff] }
  0x10   : > { %v2854_v1 = vld [vmem:[%s246_s28] sm:$0xff]   ;;  %v2855_v2 = vld [vmem:[%s246_s28 + $0x8] sm:$0xff]   ;;  %v2856_v3 = vld [vmem:[%s246_s28 + $0x10] sm:$0xff]   ;;  %429 = vst.msk [vmem:[#allocation2 + $0x5a] sm:$0x3] %vm417_vm3, %v2896_v5  ;;  %v2981_v11 = vpack.i.bf16 %v479_v10, %v478_v9 }
  0x11   : > { %2442 = vmatprep.mubr.msk.bf16.mxu0 %vm296_vm0, %v2854_v1  ;;  %v2857_v4 = vld [vmem:[%s246_s28 + $0x18] sm:$0xff]   ;;  %2694 = vrot.lane.b32.xlu0 %v2961_v8, %s2897_s29  ;;  %430 = vst.msk [vmem:[#allocation2 + $0x6a] sm:$0x3] %vm417_vm3, %v2896_v5  ;;  %431 = vst.msk [vmem:[#allocation2 + $0x7a] sm:$0x3] %vm417_vm3, %v2896_v5  ;;  %v490_v12 = vld [vmem:[#allocation2 + $0x4] sm:$0xff] }
  0x12   : > { %2443 = vmatmul.mubr.msk.bf16.vlgmr.msra.gmra.mrb[0].mxu0 %vm296_vm0, %v2855_v2  ;;  %432 = vst.msk [vmem:[#allocation2 + $0x8a] sm:$0x3] %vm417_vm3, %v2896_v5  ;;  %433 = vst.msk [vmem:[#allocation2 + $0x9a] sm:$0x3] %vm417_vm3, %v2896_v5  ;;  %v491_v13 = vld [vmem:[#allocation2 + $0x14] sm:$0xff]  ;;  %v466_v15 = vld [vmem:[#allocation2 + $0x2] sm:$0xff] }
  0x13   : > { %2446 = vmatprep.mubr.msk.bf16.mxu0 %vm296_vm0, %v2856_v3  ;;  %v2985_v14 = vpack.i.bf16 %v491_v13, %v490_v12  ;;  %v467_v16 = vld [vmem:[#allocation2 + $0x12] sm:$0xff]  ;;  %v3003_v28 = vld [vmem:[#allocation2] sm:$0xff] }
  0x14   : > { %v2987_v17 = vpack.i.bf16 %v467_v16, %v466_v15 }
  0x15   : > { %2704 = vrot.lane.b32.xlu0 %v2981_v11, %s2898_s30 }
  0x16   : > { %2699 = vrot.lane.b32.xlu1 %v2987_v17, %s2900_s8 }
  0x19   : > { %2709 = vrot.lane.b32.xlu0 %v2985_v14, %s2899_s7 }
  0x1a   : > { %2447 = vmatmul.mubr.msk.bf16.gmra.mrb[4].mxu0 %vm296_vm0, %v2857_v4 }
  0x83   : > { %v2695_v18 = vpop.permute.xlu0 %2694 }
  0x84   : > { %v2697_v20 = vunpack.i.h.bf16 %v2695_v18  ;;  %v2696_v24 = vunpack.i.l.bf16 %v2695_v18 }
  0x86   : > { %v639_v32 = vsel %vm405_vm1, %v2996_v21, %v2697_v20  ;;  %v638_v40 = vsel %vm405_vm1, %v3003_v28, %v2696_v24 }
  0x87   : > { %v2705_v25 = vpop.permute.xlu0 %2704 }
  0x88   : > { %v2700_v29 = vpop.permute.xlu1 %2699  ;;  %v2707_v43 = vunpack.i.h.bf16 %v2705_v25  ;;  %v2706_v46 = vunpack.i.l.bf16 %v2705_v25 }
  0x89   : > { %v2702_v33 = vunpack.i.h.bf16 %v2700_v29  ;;  %v2701_v37 = vunpack.i.l.bf16 %v2700_v29 }
  0x8b   : > { %v2710_v47 = vpop.permute.xlu0 %2709  ;;  %v646_v50 = vsel %vm296_vm0, %v638_v40, %v2701_v37  ;;  %v647_v51 = vsel %vm296_vm0, %v639_v32, %v2702_v33 }
  0x8c   : > { %v2711_v49 = vunpack.i.l.bf16 %v2710_v47  ;;  %v2712_v55 = vunpack.i.h.bf16 %v2710_v47  ;;  %v655_v60 = vsel %vm654_vm8, %v646_v50, %v2706_v46  ;;  %v656_v61 = vsel %vm654_vm8, %v647_v51, %v2707_v43  ;;  %v3079_v46 = vld [vmem:[%s3494_s4 + $0x14] sm:$0xff]  }
  0x8e   : > { %v664_v1 = vsel %vm663_vm9, %v655_v60, %v2711_v49  ;;  %v3040_v4 = vsel %vm663_vm9, %v656_v61, %v2712_v55 }
  0x8f   : > { %v672_v7 = vpack.c.bf16 %v3040_v4, %v664_v1 }
  0x91   : > { %2456 = vmatprep.mubr.msk.bf16.mxu1 %vm696_vm14, %v672_v7 }
  0xe5   : > { %v2444_v22 = vpop.f32.mrb[0].mxu0 }
  0xe6   : > { %v352_v26 = vadd.f32 %v2444_v22, %v2232_v19  ;;  %v343_v27 = vpop.f32.mrb[1].mxu0 }
  0xe7   : > { %v344_v30 = vadd.f32 %v2232_v19, %v343_v27  ;;  %v2445_v31 = vpop.f32.mrb[2].mxu0 }
  0xe8   : > { %vm377_vm4 = vcmp.gt.f32.partialorder %v352_v26, 0.0  ;;  %v391_v34 = vmul.f32 %v3001_v23, %v352_v26  ;;  %v355_v35 = vadd.f32 %v2445_v31, %v2232_v19  ;;  %v346_v36 = vpop.f32.mrb[3].mxu0 }
  0xe9   : > { %vm375_vm5 = vcmp.gt.f32.partialorder %v344_v30, 0.0  ;;  %v389_v38 = vmul.f32 %v3001_v23, %v344_v30  ;;  %v347_v39 = vadd.f32 %v2232_v19, %v346_v36 }
  0xea   : > { %v3011_v41 = vsel %vm377_vm4, %v352_v26, %v391_v34  ;;  %vm378_vm6 = vcmp.gt.f32.partialorder %v355_v35, 0.0  ;;  %v392_v42 = vmul.f32 %v3001_v23, %v355_v35  ;;  %v2859_v26 = vld [vmem:[%s3494_s4 + $0x8] sm:$0xff]  }
  0xeb   : > { %436 = vst.msk [vmem:[#allocation2 + $0x42] sm:$0xff] %vm405_vm1, %v3011_v41  ;;  %v3016_v44 = vsel %vm375_vm5, %v344_v30, %v389_v38  ;;  %vm376_vm7 = vcmp.gt.f32.partialorder %v347_v39, 0.0  ;;  %v390_v45 = vmul.f32 %v3001_v23, %v347_v39  ;;  %v2860_v30 = vld [vmem:[%s3494_s4 + $0x10] ss:$0 sps:$4 sm:$0xff]   ;;  %2452 = vmatprep.subr.bf16.mxu1 %v2859_v26 }
  0xec   : > { %434 = vst.msk [vmem:[#allocation2 + $0x22] sm:$0xff] %vm405_vm1, %v3016_v44  ;;  %v3021_v48 = vsel %vm378_vm6, %v355_v35, %v392_v42  ;;  %2453 = vmatpush3.bf16.msra.mxu1 %v2859_v26  ;;  %v711_v35 = vsel %vm709_vm15, %v2860_v30, 0 }
  0xed   : > { %437 = vst.msk [vmem:[#allocation2 + $0x52] sm:$0xff] %vm405_vm1, %v3021_v48  ;;  %v3030_v53 = vsel %vm376_vm7, %v347_v39, %v390_v45  ;;  %v2448_v54 = vpop.f32.mrb[4].mxu0  ;;  %2670 = vmatprep.subr.msk.bf16.mxu1 %vm709_vm15, %v2860_v30 }
  0xee   : > { %435 = vst.msk [vmem:[#allocation2 + $0x32] sm:$0xff] %vm405_vm1, %v3030_v53  ;;  %v368_v56 = vadd.f32 %v2448_v54, %v2232_v19  ;;  %v359_v57 = vpop.f32.mrb[5].mxu0 }
  0xef   : > { %v360_v58 = vadd.f32 %v2232_v19, %v359_v57  ;;  %v2449_v59 = vpop.f32.mrb[6].mxu0 }
  0xf0   : > { %vm381_vm10 = vcmp.gt.f32.partialorder %v368_v56, 0.0  ;;  %v395_v62 = vmul.f32 %v3001_v23, %v368_v56  ;;  %v371_v63 = vadd.f32 %v2449_v59, %v2232_v19  ;;  %v362_v0 = vpop.f32.mrb[7].mxu0  ;;  %2455 = vmatpush3.bf16.msra.mxu1 %v711_v35 }
  0xf1   : > { %vm379_vm11 = vcmp.gt.f32.partialorder %v360_v58, 0.0  ;;  %v393_v2 = vmul.f32 %v3001_v23, %v360_v58  ;;  %v363_v3 = vadd.f32 %v2232_v19, %v362_v0  ;;  %2464 = vmatprep.subr.bf16.mxu1 %v3079_v46 }
  0xf2   : > { %v3042_v5 = vsel %vm381_vm10, %v368_v56, %v395_v62  ;;  %vm382_vm12 = vcmp.gt.f32.partialorder %v371_v63, 0.0  ;;  %v396_v6 = vmul.f32 %v3001_v23, %v371_v63  ;;  %v458_v13 = vld [vmem:[#allocation2 + $0x41] sm:$0xff] }
  0xf3   : > { %440 = vst.msk [vmem:[#allocation2 + $0x82] sm:$0xff] %vm405_vm1, %v3042_v5  ;;  %v3048_v9 = vsel %vm379_vm11, %v360_v58, %v393_v2  ;;  %vm380_vm13 = vcmp.gt.f32.partialorder %v363_v3, 0.0  ;;  %v394_v10 = vmul.f32 %v3001_v23, %v363_v3  ;;  %v468_v19 = vld [vmem:[#allocation2 + $0x22] sm:$0xff] }
  0xf4   : > { %438 = vst.msk [vmem:[#allocation2 + $0x62] sm:$0xff] %vm405_vm1, %v3048_v9  ;;  %v3053_v12 = vsel %vm382_vm12, %v371_v63, %v396_v6  ;;  %v459_v15 = vld [vmem:[#allocation2 + $0x51] sm:$0xff]  ;;  %v456_v25 = vld [vmem:[#allocation2 + $0x21] sm:$0xff] }
  0xf5   : > { %441 = vst.msk [vmem:[#allocation2 + $0x92] sm:$0xff] %vm405_vm1, %v3053_v12  ;;  %v3058_v16 = vsel %vm380_vm13, %v363_v3, %v394_v10  ;;  %v2713_v18 = vpack.i.bf16 %v459_v15, %v458_v13  ;;  %v469_v20 = vld [vmem:[#allocation2 + $0x32] sm:$0xff]  ;;  %v480_v29 = vld [vmem:[#allocation2 + $0x23] sm:$0xff] }
  0xf6   : > { %439 = vst.msk [vmem:[#allocation2 + $0x72] sm:$0xff] %vm405_vm1, %v3058_v16  ;;  %v2738_v22 = vpack.i.bf16 %v469_v20, %v468_v19  ;;  %v457_v23 = vld [vmem:[#allocation2 + $0x31] sm:$0xff]  ;;  %v470_v34 = vld [vmem:[#allocation2 + $0x42] sm:$0xff] }
  0xf7   : > { %2714 = vrot.lane.b32.xlu0 %v2713_v18, %s2897_s29  ;;  %v481_v24 = vld [vmem:[#allocation2 + $0x33] sm:$0xff]  ;;  %v2718_v27 = vpack.i.bf16 %v457_v23, %v456_v25  ;;  %v492_v37 = vld [vmem:[#allocation2 + $0x24] sm:$0xff] }
  0xf8   : > { %2739 = vrot.lane.b32.xlu1 %v2738_v22, %s2900_s8  ;;  %v2743_v31 = vpack.i.bf16 %v481_v24, %v480_v29  ;;  %v471_v32 = vld [vmem:[#allocation2 + $0x52] sm:$0xff]  ;;  %v482_v43 = vld [vmem:[#allocation2 + $0x43] sm:$0xff] }
  0xf9   : > { %v493_v33 = vld [vmem:[#allocation2 + $0x34] sm:$0xff]  ;;  %v2723_v36 = vpack.i.bf16 %v471_v32, %v470_v34  ;;  %v494_v52 = vld [vmem:[#allocation2 + $0x44] sm:$0xff] }
  0xfa   : > { %v2748_v38 = vpack.i.bf16 %v493_v33, %v492_v37  ;;  %v483_v39 = vld [vmem:[#allocation2 + $0x53] sm:$0xff]  ;;  %v462_v58 = vld [vmem:[#allocation2 + $0x81] sm:$0xff] }
  0xfb   : > { %2719 = vrot.lane.b32.xlu0 %v2718_v27, %s2897_s29  ;;  %v460_v40 = vld [vmem:[#allocation2 + $0x61] sm:$0xff]  ;;  %v2728_v45 = vpack.i.bf16 %v483_v39, %v482_v43  ;;  %v495_v49 = vld [vmem:[#allocation2 + $0x54] sm:$0xff] }
  0xfc   : > { %2744 = vrot.lane.b32.xlu1 %v2743_v31, %s2898_s30  ;;  %v472_v50 = vld [vmem:[#allocation2 + $0x62] sm:$0xff]  ;;  %v2733_v54 = vpack.i.bf16 %v495_v49, %v494_v52  ;;  %v463_v0 = vld [vmem:[#allocation2 + $0x91] sm:$0xff] }
  0xfd   : > { %v461_v42 = vld [vmem:[#allocation2 + $0x71] sm:$0xff]  ;;  %v484_v56 = vld [vmem:[#allocation2 + $0x63] sm:$0xff] }
  0xfe   : > { %v2753_v47 = vpack.i.bf16 %v461_v42, %v460_v40  ;;  %v473_v51 = vld [vmem:[#allocation2 + $0x72] sm:$0xff]  ;;  %v496_v60 = vld [vmem:[#allocation2 + $0x64] sm:$0xff] }
  0xff   : > { %2724 = vrot.lane.b32.xlu0 %v2723_v36, %s2900_s8  ;;  %v2758_v55 = vpack.i.bf16 %v473_v51, %v472_v50  ;;  %v485_v57 = vld [vmem:[#allocation2 + $0x73] sm:$0xff]  ;;  %v486_v62 = vld [vmem:[#allocation2 + $0x83] sm:$0xff] }
 0x100   : > { %2749 = vrot.lane.b32.xlu1 %v2748_v38, %s2899_s7  ;;  %v2763_v59 = vpack.i.bf16 %v485_v57, %v484_v56  ;;  %v497_v61 = vld [vmem:[#allocation2 + $0x74] sm:$0xff]  ;;  %v474_v1 = vld [vmem:[#allocation2 + $0x82] sm:$0xff] }
 0x101   : > { %v2768_v63 = vpack.i.bf16 %v497_v61, %v496_v60  ;;  %v487_v2 = vld [vmem:[#allocation2 + $0x93] sm:$0xff]  ;;  %v498_v3 = vld [vmem:[#allocation2 + $0x84] sm:$0xff]  ;;  %v2862_v57 = vld [vmem:[%s3494_s4 + $0x1c] sm:$0xff]  }
 0x102   : > { %v3094_v6 = vld [vmem:[#allocation2 + $0xa1] sm:$0xff]  ;;  %v475_v7 = vld [vmem:[#allocation2 + $0x92] sm:$0xff] }
 0x103   : > { %2729 = vrot.lane.b32.xlu0 %v2728_v45, %s2898_s30  ;;  %v3099_v10 = vld [vmem:[#allocation2 + $0xa3] sm:$0xff]  ;;  %v499_v13 = vld [vmem:[#allocation2 + $0x94] sm:$0xff] }
 0x104   : > { %2754 = vrot.lane.b32.xlu1 %v2753_v47, %s2897_s29  ;;  %v3104_v15 = vld [vmem:[#allocation2 + $0xb1] sm:$0xff]  ;;  %v3106_v18 = vld [vmem:[#allocation2 + $0xa2] sm:$0xff] }
 0x105   : > { %v3112_v19 = vld [vmem:[#allocation2 + $0xb3] sm:$0xff]  ;;  %v3114_v20 = vld [vmem:[#allocation2 + $0xa4] sm:$0xff] }
 0x106   : > { %v3120_v22 = vld [vmem:[#allocation2 + $0xb2] sm:$0xff]  ;;  %v444_v33 = vld [vmem:[#allocation2 + $0x20] sm:$0xff] }
 0x107   : > { %2734 = vrot.lane.b32.xlu0 %v2733_v54, %s2899_s7  ;;  %v3126_v23 = vld [vmem:[#allocation2 + $0xb4] sm:$0xff]  ;;  %v446_v60 = vld [vmem:[#allocation2 + $0x40] sm:$0xff] }
 0x108   : > { %2759 = vrot.lane.b32.xlu1 %v2758_v55, %s2900_s8  ;;  %v445_v32 = vld [vmem:[#allocation2 + $0x30] sm:$0xff] }
 0x109   : > { %v447_v61 = vld [vmem:[#allocation2 + $0x50] sm:$0xff] }
 0x10b   : > { %787 = vrot.lane.b32.xlu0 %v462_v58, %s2897_s29 }
 0x10c   : > { %2764 = vrot.lane.b32.xlu1 %v2763_v59, %s2898_s30 }
 0x10f   : > { %795 = vrot.lane.b32.xlu0 %v486_v62, %s2898_s30 }
 0x110   : > { %2769 = vrot.lane.b32.xlu1 %v2768_v63, %s2899_s7 }
 0x113   : > { %920 = vrot.lane.b32.xlu0 %v463_v0, %s2897_s29 }
 0x114   : > { %791 = vrot.lane.b32.xlu1 %v474_v1, %s2900_s8 }
 0x117   : > { %928 = vrot.lane.b32.xlu0 %v487_v2, %s2898_s30 }
 0x118   : > { %799 = vrot.lane.b32.xlu1 %v498_v3, %s2899_s7 }
 0x11b   : > { %1041 = vrot.lane.b32.xlu0 %v3094_v6, %s2897_s29 }
 0x11c   : > { %924 = vrot.lane.b32.xlu1 %v475_v7, %s2900_s8 }
 0x11f   : > { %1049 = vrot.lane.b32.xlu0 %v3099_v10, %s2898_s30 }
 0x120   : > { %932 = vrot.lane.b32.xlu1 %v499_v13, %s2899_s7 }
 0x123   : > { %1162 = vrot.lane.b32.xlu0 %v3104_v15, %s2897_s29 }
 0x124   : > { %1045 = vrot.lane.b32.xlu1 %v3106_v18, %s2900_s8 }
 0x127   : > { %1170 = vrot.lane.b32.xlu0 %v3112_v19, %s2898_s30 }
 0x128   : > { %1053 = vrot.lane.b32.xlu1 %v3114_v20, %s2899_s7 }
 0x12b   : > { %2774 = vrot.lane.b32.xlu0 %v2961_v8, %s2897_s29 }
 0x12c   : > { %1166 = vrot.lane.b32.xlu1 %v3120_v22, %s2900_s8 }
 0x12f   : > { %2779 = vrot.lane.b32.xlu0 %v2987_v17, %s2900_s8 }
 0x130   : > { %1174 = vrot.lane.b32.xlu1 %v3126_v23, %s2899_s7 }
 0x133   : > { %2784 = vrot.lane.b32.xlu0 %v2981_v11, %s2898_s30 }
 0x137   : > { %2789 = vrot.lane.b32.xlu0 %v2985_v14, %s2899_s7 }
 0x169   : > { %v2715_v24 = vpop.permute.xlu0 %2714 }
 0x16a   : > { %v2740_v25 = vpop.permute.xlu1 %2739  ;;  %v2717_v45 = vunpack.i.h.bf16 %v2715_v24  ;;  %v2716_v47 = vunpack.i.l.bf16 %v2715_v24  ;;  %v2863_v24 = vld [vmem:[%s3494_s4 + $0x24] ss:$0 sps:$4 sm:$0xff]  }
 0x16b   : > { %v2742_v30 = vunpack.i.h.bf16 %v2740_v25  ;;  %v2741_v31 = vunpack.i.l.bf16 %v2740_v25 }
 0x16c   : > { %v642_v62 = vsel %vm405_vm1, %v446_v60, %v2716_v47  ;;  %v643_v63 = vsel %vm405_vm1, %v447_v61, %v2717_v45  ;;  %v450_v60 = vld [vmem:[#allocation2 + $0x80] sm:$0xff] }
 0x16d   : > { %v2720_v8 = vpop.permute.xlu0 %2719 }
 0x16e   : > { %v2722_v26 = vunpack.i.h.bf16 %v2720_v8  ;;  %v2721_v27 = vunpack.i.l.bf16 %v2720_v8  ;;  %v2745_v29 = vpop.permute.xlu1 %2744 }
 0x16f   : > { %v2747_v35 = vunpack.i.h.bf16 %v2745_v29  ;;  %v2746_v36 = vunpack.i.l.bf16 %v2745_v29 }
 0x170   : > { %v641_v17 = vsel %vm405_vm1, %v445_v32, %v2722_v26  ;;  %v640_v34 = vsel %vm405_vm1, %v444_v33, %v2721_v27  ;;  %v844_v32 = vsel %vm709_vm15, %v2863_v24, 0  ;;  %v2864_v33 = vld [vmem:[%s3494_s4 + $0x28] sm:$0xff]  }
 0x171   : > { %v648_v11 = vsel %vm296_vm0, %v640_v34, %v2741_v31  ;;  %v649_v14 = vsel %vm296_vm0, %v641_v17, %v2742_v30  ;;  %v2725_v37 = vpop.permute.xlu0 %2724 }
 0x172   : > { %v2750_v38 = vpop.permute.xlu1 %2749  ;;  %v657_v42 = vsel %vm654_vm8, %v648_v11, %v2746_v36  ;;  %v658_v43 = vsel %vm654_vm8, %v649_v14, %v2747_v35  ;;  %v2727_v52 = vunpack.i.h.bf16 %v2725_v37  ;;  %v2726_v54 = vunpack.i.l.bf16 %v2725_v37  ;;  %v448_v11 = vld [vmem:[#allocation2 + $0x60] sm:$0xff]  ;;  %v449_v14 = vld [vmem:[#allocation2 + $0x70] sm:$0xff] }
 0x173   : > { %v2752_v39 = vunpack.i.h.bf16 %v2750_v38  ;;  %v2751_v40 = vunpack.i.l.bf16 %v2750_v38 }
 0x174   : > { %v651_v1 = vsel %vm296_vm0, %v643_v63, %v2727_v52  ;;  %v650_v2 = vsel %vm296_vm0, %v642_v62, %v2726_v54  ;;  %v2865_v63 = vld [vmem:[%s3494_s4 + $0x30] sm:$0xff]  }
 0x175   : > { %v666_v49 = vsel %vm663_vm9, %v657_v42, %v2751_v40  ;;  %v667_v50 = vsel %vm663_vm9, %v658_v43, %v2752_v39  ;;  %v2730_v51 = vpop.permute.xlu0 %2729 }
 0x176   : > { %v3144_v55 = vpack.c.bf16 %v667_v50, %v666_v49  ;;  %v2755_v56 = vpop.permute.xlu1 %2754  ;;  %v2732_v58 = vunpack.i.h.bf16 %v2730_v51  ;;  %v2731_v59 = vunpack.i.l.bf16 %v2730_v51 }
 0x177   : > { %v2757_v29 = vunpack.i.h.bf16 %v2755_v56  ;;  %v2756_v30 = vunpack.i.l.bf16 %v2755_v56 }
 0x178   : > { %2457 = vmatmul.mubr.msk.bf16.vlgmr.msra.gmra.mrb[0].mxu1 %vm696_vm14, %v3144_v55  ;;  %v659_v25 = vsel %vm654_vm8, %v650_v2, %v2731_v59  ;;  %v660_v8 = vsel %vm654_vm8, %v651_v1, %v2732_v58 }
 0x179   : > { %v2735_v0 = vpop.permute.xlu0 %2734  ;;  %2465 = vmatpush3.bf16.msra.mxu1 %v3079_v46  ;;  %v645_v37 = vsel %vm405_vm1, %v449_v14, %v2757_v29  ;;  %v644_v38 = vsel %vm405_vm1, %v448_v11, %v2756_v30  ;;  %v2868_v29 = vld [vmem:[%s3494_s4 + $0x44] sm:$0xff]  }
 0x17a   : > { %v2737_v3 = vunpack.i.h.bf16 %v2735_v0  ;;  %v2736_v7 = vunpack.i.l.bf16 %v2735_v0  ;;  %v2760_v13 = vpop.permute.xlu1 %2759  ;;  %2466 = vmatprep.subr.bf16.mxu1 %v2862_v57  ;;  %v3225_v11 = vld [vmem:[#allocation2 + $0xa0] sm:$0xff] }
 0x17b   : > { %v2762_v17 = vunpack.i.h.bf16 %v2760_v13  ;;  %v2761_v34 = vunpack.i.l.bf16 %v2760_v13 }
 0x17c   : > { %v668_v26 = vsel %vm663_vm9, %v659_v25, %v2736_v7  ;;  %v669_v46 = vsel %vm663_vm9, %v660_v8, %v2737_v3 }
 0x17d   : > { %v3163_v27 = vpack.c.bf16 %v669_v46, %v668_v26  ;;  %2467 = vmatpush3.bf16.msra.mxu1 %v2862_v57  ;;  %v652_v40 = vsel %vm296_vm0, %v644_v38, %v2761_v34  ;;  %v653_v42 = vsel %vm296_vm0, %v645_v37, %v2762_v17  ;;  %v806_v57 = vpack.c.bf16 %v666_v49, %v3040_v4  ;;  %v788_v59 = vpop.permute.xlu0 %787 }
 0x17e   : > { %v2765_v31 = vpop.permute.xlu1 %2764  ;;  %2671 = vmatprep.subr.msk.bf16.mxu1 %vm709_vm15, %v2863_v24  ;;  %v807_v61 = vpack.c.bf16 %v668_v26, %v667_v50  ;;  %v802_v62 = vsel %vm405_vm1, %v450_v60, %v788_v59  ;;  %v2866_v50 = vld [vmem:[%s3494_s4 + $0x38] ss:$0 sps:$4 sm:$0xff]   ;;  %v2867_v24 = vld [vmem:[%s3494_s4 + $0x3c] sm:$0xff]   ;;  %v451_v26 = vld [vmem:[#allocation2 + $0x90] sm:$0xff] }
 0x17f   : > { %2460 = vmatprep.mubr.msk.bf16.mxu1 %vm696_vm14, %v3163_v27  ;;  %v2767_v35 = vunpack.i.h.bf16 %v2765_v31  ;;  %v2766_v36 = vunpack.i.l.bf16 %v2765_v31  ;;  %v965_v13 = vsel %vm709_vm15, %v2866_v50, 0 }
 0x181   : > { %2469 = vmatpush3.bf16.msra.mxu1 %v844_v32  ;;  %v661_v47 = vsel %vm654_vm8, %v652_v40, %v2766_v36  ;;  %v662_v51 = vsel %vm654_vm8, %v653_v42, %v2767_v35  ;;  %v796_v4 = vpop.permute.xlu0 %795  ;;  %v2870_v36 = vld [vmem:[%s3494_s4 + $0x50] sm:$0xff]   ;;  %v2871_v42 = vld [vmem:[%s3494_s4 + $0x58] sm:$0xff]  }
 0x182   : > { %v2770_v39 = vpop.permute.xlu1 %2769  ;;  %2478 = vmatprep.subr.bf16.mxu1 %v2864_v33 }
 0x183   : > { %v2772_v43 = vunpack.i.h.bf16 %v2770_v39  ;;  %v2771_v45 = vunpack.i.l.bf16 %v2770_v39 }
 0x185   : > { %v670_v52 = vsel %vm663_vm9, %v661_v47, %v2771_v45  ;;  %v671_v54 = vsel %vm663_vm9, %v662_v51, %v2772_v43  ;;  %v921_v8 = vpop.permute.xlu0 %920  ;;  %v2872_v47 = vld [vmem:[%s3494_s4 + $0x60] ss:$0 sps:$4 sm:$0xff]  }
 0x186   : > { %v3180_v56 = vpack.c.bf16 %v671_v54, %v670_v52  ;;  %v792_v58 = vpop.permute.xlu1 %791  ;;  %v808_v0 = vpack.c.bf16 %v670_v52, %v669_v46  ;;  %v935_v46 = vsel %vm405_vm1, %v451_v26, %v921_v8 }
 0x187   : > { %v803_v1 = vsel %vm296_vm0, %v802_v62, %v792_v58 }
 0x188   : > { %2461 = vmatmul.mubr.msk.bf16.gmra.mrb[4].mxu1 %vm696_vm14, %v3180_v56  ;;  %v804_v49 = vsel %vm654_vm8, %v803_v1, %v796_v4 }
 0x189   : > { %2470 = vmatprep.mubr.msk.bf16.mxu1 %vm696_vm14, %v806_v57  ;;  %v929_v32 = vpop.permute.xlu0 %928  ;;  %v3244_v57 = vld [vmem:[#allocation2 + $0xb0] sm:$0xff] }
 0x18a   : > { %v800_v2 = vpop.permute.xlu1 %799 }
 0x18b   : > { %v805_v3 = vsel %vm663_vm9, %v804_v49, %v800_v2 }
 0x18c   : > { %v809_v7 = vpack.c.bf16 %v805_v3, %v671_v54  ;;  %v1207_v54 = vsel %vm709_vm15, %v2872_v47, 0 }
 0x18d   : > { %v1042_v14 = vpop.permute.xlu0 %1041 }
 0x18e   : > { %v925_v25 = vpop.permute.xlu1 %924  ;;  %v1056_v37 = vsel %vm405_vm1, %v3225_v11, %v1042_v14 }
 0x18f   : > { %v936_v30 = vsel %vm296_vm0, %v935_v46, %v925_v25 }
 0x190   : > { %2471 = vmatmul.mubr.msk.bf16.vlgmr.msra.gmra.mrb[0].mxu1 %vm696_vm14, %v807_v61 }
 0x191   : > { %2479 = vmatpush3.bf16.msra.mxu1 %v2864_v33  ;;  %2474 = vmatprep.mubr.msk.bf16.mxu1 %vm696_vm14, %v808_v0  ;;  %v2869_v33 = vld [vmem:[%s3494_s4 + $0x4c] ss:$0 sps:$4 sm:$0xff]   ;;  %v1050_v40 = vpop.permute.xlu0 %1049 }
 0x192   : > { %2480 = vmatprep.subr.bf16.mxu1 %v2865_v63  ;;  %v933_v31 = vpop.permute.xlu1 %932  ;;  %v1086_v35 = vsel %vm709_vm15, %v2869_v33, 0 }
 0x195   : > { %2481 = vmatpush3.bf16.msra.mxu1 %v2865_v63  ;;  %v1163_v58 = vpop.permute.xlu0 %1162 }
 0x196   : > { %2672 = vmatprep.subr.msk.bf16.mxu1 %vm709_vm15, %v2866_v50  ;;  %v1046_v38 = vpop.permute.xlu1 %1045  ;;  %v1177_v59 = vsel %vm405_vm1, %v3244_v57, %v1163_v58 }
 0x197   : > { %v1057_v39 = vsel %vm296_vm0, %v1056_v37, %v1046_v38 }
 0x198   : > { %2475 = vmatmul.mubr.msk.bf16.gmra.mrb[4].mxu1 %vm696_vm14, %v809_v7  ;;  %v1058_v43 = vsel %vm654_vm8, %v1057_v39, %v1050_v40 }
 0x199   : > { %2484 = vmatprep.mubr.msk.bf16.mxu1 %vm696_vm14, %v3144_v55  ;;  %2483 = vmatpush3.bf16.msra.mxu1 %v965_v13  ;;  %v937_v55 = vsel %vm654_vm8, %v936_v30, %v929_v32  ;;  %v1171_v62 = vpop.permute.xlu0 %1170 }
 0x19a   : > { %2492 = vmatprep.subr.bf16.mxu1 %v2867_v24  ;;  %v938_v17 = vsel %vm663_vm9, %v937_v55, %v933_v31  ;;  %v1054_v45 = vpop.permute.xlu1 %1053 }
 0x19b   : > { %v939_v34 = vpack.c.bf16 %v938_v17, %v805_v3  ;;  %v1059_v51 = vsel %vm663_vm9, %v1058_v43, %v1054_v45 }
 0x19c   : > { %v1060_v52 = vpack.c.bf16 %v1059_v51, %v938_v17  ;;  %v2243_v17 = vld [vmem:[%s3495_s5] ss:$0 sm:$0xff] }
 0x19e   : > { %v1167_v60 = vpop.permute.xlu1 %1166 }
 0x1a0   : > { %2485 = vmatmul.mubr.msk.bf16.vlgmr.msra.gmra.mrb[0].mxu1 %vm696_vm14, %v3163_v27 }
 0x1a1   : > { %2493 = vmatpush3.bf16.msra.mxu1 %v2867_v24  ;;  %2488 = vmatprep.mubr.msk.bf16.mxu1 %vm696_vm14, %v3180_v56 }
 0x1a2   : > { %2494 = vmatprep.subr.bf16.mxu1 %v2868_v29 }
 0x1a5   : > { %2495 = vmatpush3.bf16.msra.mxu1 %v2868_v29 }
 0x1a6   : > { %2673 = vmatprep.subr.msk.bf16.mxu1 %vm709_vm15, %v2869_v33 }
 0x1a8   : > { %2489 = vmatmul.mubr.msk.bf16.gmra.mrb[4].mxu1 %vm696_vm14, %v939_v34 }
 0x1a9   : > { %2498 = vmatprep.mubr.msk.bf16.mxu1 %vm696_vm14, %v807_v61  ;;  %2497 = vmatpush3.bf16.msra.mxu1 %v1086_v35  ;;  %v1178_v61 = vsel %vm296_vm0, %v1177_v59, %v1167_v60 }
 0x1aa   : > { %2506 = vmatprep.subr.bf16.mxu1 %v2870_v36  ;;  %v1179_v63 = vsel %vm654_vm8, %v1178_v61, %v1171_v62 }
 0x1b0   : > { %2499 = vmatmul.mubr.msk.bf16.vlgmr.msra.gmra.mrb[0].mxu1 %vm696_vm14, %v808_v0  ;;  %v1175_v0 = vpop.permute.xlu1 %1174 }
 0x1b1   : > { %2507 = vmatpush3.bf16.msra.mxu1 %v2870_v36  ;;  %2502 = vmatprep.mubr.msk.bf16.mxu1 %vm696_vm14, %v809_v7  ;;  %v1180_v1 = vsel %vm663_vm9, %v1179_v63, %v1175_v0  ;;  %v2873_v63 = vld [vmem:[%s3494_s4 + $0x64] sm:$0xff]  }
 0x1b2   : > { %2508 = vmatprep.subr.bf16.mxu1 %v2871_v42  ;;  %v1181_v2 = vpack.c.bf16 %v1180_v1, %v1059_v51  ;;  %2520 = vmatprep.subr.bf16.mxu0 %v2873_v63 }
 0x1b3   : > { %2521 = vmatpush3.bf16.msra.mxu0 %v2873_v63 }
 0x1b5   : > { %2509 = vmatpush3.bf16.msra.mxu1 %v2871_v42 }
 0x1b6   : > { %2674 = vmatprep.subr.msk.bf16.mxu1 %vm709_vm15, %v2872_v47 }
 0x1b8   : > { %2503 = vmatmul.mubr.msk.bf16.gmra.mrb[4].mxu1 %vm696_vm14, %v1060_v52 }
 0x1b9   : > { %2512 = vmatprep.mubr.msk.bf16.mxu1 %vm696_vm14, %v3163_v27  ;;  %2511 = vmatpush3.bf16.msra.mxu1 %v1207_v54  ;;  %v2775_v27 = vpop.permute.xlu0 %2774 }
 0x1ba   : > { %v2777_v4 = vunpack.i.h.bf16 %v2775_v27  ;;  %v2776_v49 = vunpack.i.l.bf16 %v2775_v27 }
 0x1bc   : > { %v1496_v13 = vsel %vm405_vm1, %v2996_v21, %v2777_v4  ;;  %v1495_v24 = vsel %vm405_vm1, %v3003_v28, %v2776_v49 }
 0x1bd   : > { %v2780_v50 = vpop.permute.xlu0 %2779 }
 0x1be   : > { %v2782_v3 = vunpack.i.h.bf16 %v2780_v50  ;;  %v2781_v7 = vunpack.i.l.bf16 %v2780_v50 }
 0x1c0   : > { %2513 = vmatmul.mubr.msk.bf16.vlgmr.msra.gmra.mrb[0].mxu1 %vm696_vm14, %v3180_v56  ;;  %v1503_v25 = vsel %vm296_vm0, %v1495_v24, %v2781_v7  ;;  %v1504_v8 = vsel %vm296_vm0, %v1496_v13, %v2782_v3 }
 0x1c1   : > { %2516 = vmatprep.mubr.msk.bf16.mxu1 %vm696_vm14, %v939_v34  ;;  %v2785_v56 = vpop.permute.xlu0 %2784 }
 0x1c2   : > { %v2787_v26 = vunpack.i.h.bf16 %v2785_v56  ;;  %v2786_v46 = vunpack.i.l.bf16 %v2785_v56 }
 0x1c4   : > { %v1511_v29 = vsel %vm654_vm8, %v1503_v25, %v2786_v46  ;;  %v1512_v30 = vsel %vm654_vm8, %v1504_v8, %v2787_v26  ;;  %v2874_v8 = vld [vmem:[%s3494_s4 + $0x6c] sm:$0xff]  }
 0x1c5   : > { %v2790_v31 = vpop.permute.xlu0 %2789  ;;  %2522 = vmatprep.subr.bf16.mxu0 %v2874_v8 }
 0x1c6   : > { %v2792_v32 = vunpack.i.h.bf16 %v2790_v31  ;;  %v2791_v55 = vunpack.i.l.bf16 %v2790_v31  ;;  %2523 = vmatpush3.bf16.msra.mxu0 %v2874_v8 }
 0x1c8   : > { %2517 = vmatmul.mubr.msk.bf16.gmra.mrb[4].mxu1 %vm696_vm14, %v1181_v2  ;;  %v1519_v33 = vsel %vm663_vm9, %v1511_v29, %v2791_v55  ;;  %v3268_v21 = vsel %vm663_vm9, %v1512_v30, %v2792_v32 }
 0x1c9   : > { %v1527_v28 = vpack.c.bf16 %v3268_v21, %v1519_v33 }
 0x1cb   : > { %2526 = vmatprep.mubr.msk.bf16.mxu0 %vm696_vm14, %v1527_v28 }
 0x293   : > { %v2514_v34 = vpop.f32.mrb[0].mxu1 }
 0x294   : > { %v2590_v35 = vadd.f32 %v2514_v34, %v2243_v17  ;;  %v1243_v36 = vpop.f32.mrb[1].mxu1 }
 0x295   : > { %v2591_v14 = vadd.f32 %v2243_v17, %v1243_v36  ;;  %v2515_v37 = vpop.f32.mrb[2].mxu1 }
 0x296   : > { %v1284_v38 = vmax.f32 %v2590_v35, 0.0  ;;  %v2592_v39 = vadd.f32 %v2515_v37, %v2243_v17  ;;  %v1246_v40 = vpop.f32.mrb[3].mxu1  ;;  %v2875_v35 = vld [vmem:[%s3494_s4 + $0x74] ss:$0 sps:$4 sm:$0xff]  }
 0x297   : > { %v1282_v42 = vmax.f32 %v2591_v14, 0.0  ;;  %v2593_v43 = vadd.f32 %v2243_v17, %v1246_v40  ;;  %2675 = vmatprep.subr.msk.bf16.mxu0 %vm709_vm15, %v2875_v35 }
 0x298   : > { %1292 = vst.msk [vmem:[#allocation2 + $0x42] sm:$0xff] %vm405_vm1, %v1284_v38  ;;  %v1285_v45 = vmax.f32 %v2592_v39, 0.0  ;;  %v1565_v38 = vsel %vm709_vm15, %v2875_v35, 0 }
 0x299   : > { %1290 = vst.msk [vmem:[#allocation2 + $0x22] sm:$0xff] %vm405_vm1, %v1282_v42  ;;  %v1283_v47 = vmax.f32 %v2593_v43, 0.0  ;;  %2525 = vmatpush3.bf16.msra.mxu0 %v1565_v38  ;;  %v3305_v43 = vld [vmem:[%s3494_s4 + $0x78] sm:$0xff]  }
 0x29a   : > { %1293 = vst.msk [vmem:[#allocation2 + $0x52] sm:$0xff] %vm405_vm1, %v1285_v45  ;;  %2534 = vmatprep.subr.bf16.mxu0 %v3305_v43 }
 0x29b   : > { %1291 = vst.msk [vmem:[#allocation2 + $0x32] sm:$0xff] %vm405_vm1, %v1283_v47  ;;  %v2518_v51 = vpop.f32.mrb[4].mxu1 }
 0x29c   : > { %v2594_v52 = vadd.f32 %v2518_v51, %v2243_v17  ;;  %v1259_v54 = vpop.f32.mrb[5].mxu1 }
 0x29d   : > { %v2595_v58 = vadd.f32 %v2243_v17, %v1259_v54  ;;  %v2519_v59 = vpop.f32.mrb[6].mxu1 }
 0x29e   : > { %v1288_v60 = vmax.f32 %v2594_v52, 0.0  ;;  %v2596_v61 = vadd.f32 %v2519_v59, %v2243_v17  ;;  %v1262_v62 = vpop.f32.mrb[7].mxu1 }
 0x29f   : > { %v1286_v0 = vmax.f32 %v2595_v58, 0.0  ;;  %v2597_v1 = vadd.f32 %v2243_v17, %v1262_v62  ;;  %v1314_v4 = vld [vmem:[#allocation2 + $0x41] sm:$0xff] }
 0x2a0   : > { %1296 = vst.msk [vmem:[#allocation2 + $0x82] sm:$0xff] %vm405_vm1, %v1288_v60  ;;  %v1289_v2 = vmax.f32 %v2596_v61, 0.0  ;;  %v1312_v3 = vld [vmem:[#allocation2 + $0x21] sm:$0xff] }
 0x2a1   : > { %1294 = vst.msk [vmem:[#allocation2 + $0x62] sm:$0xff] %vm405_vm1, %v1286_v0  ;;  %v1287_v27 = vmax.f32 %v2597_v1, 0.0  ;;  %v1315_v49 = vld [vmem:[#allocation2 + $0x51] sm:$0xff]  ;;  %v1326_v25 = vld [vmem:[#allocation2 + $0x42] sm:$0xff] }
 0x2a2   : > { %1297 = vst.msk [vmem:[#allocation2 + $0x92] sm:$0xff] %vm405_vm1, %v1289_v2  ;;  %v2793_v50 = vpack.i.bf16 %v1315_v49, %v1314_v4  ;;  %v1313_v7 = vld [vmem:[#allocation2 + $0x31] sm:$0xff]  ;;  %v1324_v46 = vld [vmem:[#allocation2 + $0x22] sm:$0xff] }
 0x2a3   : > { %1295 = vst.msk [vmem:[#allocation2 + $0x72] sm:$0xff] %vm405_vm1, %v1287_v27  ;;  %v2813_v13 = vpack.i.bf16 %v1313_v7, %v1312_v3  ;;  %v1327_v24 = vld [vmem:[#allocation2 + $0x52] sm:$0xff]  ;;  %v1338_v32 = vld [vmem:[#allocation2 + $0x43] sm:$0xff] }
 0x2a4   : > { %2794 = vrot.lane.b32.xlu0 %v2793_v50, %s2897_s29  ;;  %v1325_v56 = vld [vmem:[#allocation2 + $0x32] sm:$0xff]  ;;  %v2798_v26 = vpack.i.bf16 %v1327_v24, %v1326_v25  ;;  %v1336_v33 = vld [vmem:[#allocation2 + $0x23] sm:$0xff] }
 0x2a5   : > { %2814 = vrot.lane.b32.xlu1 %v2813_v13, %s2897_s29  ;;  %v2818_v29 = vpack.i.bf16 %v1325_v56, %v1324_v46  ;;  %v1339_v30 = vld [vmem:[#allocation2 + $0x53] sm:$0xff]  ;;  %v1350_v36 = vld [vmem:[#allocation2 + $0x44] sm:$0xff] }
 0x2a6   : > { %v1337_v31 = vld [vmem:[#allocation2 + $0x33] sm:$0xff]  ;;  %v2803_v55 = vpack.i.bf16 %v1339_v30, %v1338_v32  ;;  %v1348_v37 = vld [vmem:[#allocation2 + $0x24] sm:$0xff] }
 0x2a7   : > { %v2823_v28 = vpack.i.bf16 %v1337_v31, %v1336_v33  ;;  %v1351_v17 = vld [vmem:[#allocation2 + $0x54] sm:$0xff]  ;;  %v1318_v45 = vld [vmem:[#allocation2 + $0x81] sm:$0xff] }
 0x2a8   : > { %2799 = vrot.lane.b32.xlu0 %v2798_v26, %s2900_s8  ;;  %v1349_v34 = vld [vmem:[#allocation2 + $0x34] sm:$0xff]  ;;  %v2808_v14 = vpack.i.bf16 %v1351_v17, %v1350_v36  ;;  %v1316_v42 = vld [vmem:[#allocation2 + $0x61] sm:$0xff] }
 0x2a9   : > { %2819 = vrot.lane.b32.xlu1 %v2818_v29, %s2900_s8  ;;  %v2828_v39 = vpack.i.bf16 %v1349_v34, %v1348_v37  ;;  %v1328_v52 = vld [vmem:[#allocation2 + $0x62] sm:$0xff]  ;;  %v1319_v61 = vld [vmem:[#allocation2 + $0x91] sm:$0xff] }
 0x2aa   : > { %v1317_v40 = vld [vmem:[#allocation2 + $0x71] sm:$0xff]  ;;  %v1342_v54 = vld [vmem:[#allocation2 + $0x83] sm:$0xff] }
 0x2ab   : > { %v2833_v47 = vpack.i.bf16 %v1317_v40, %v1316_v42  ;;  %v1329_v51 = vld [vmem:[#allocation2 + $0x72] sm:$0xff]  ;;  %v1340_v60 = vld [vmem:[#allocation2 + $0x63] sm:$0xff] }
 0x2ac   : > { %2804 = vrot.lane.b32.xlu0 %v2803_v55, %s2898_s30  ;;  %v2838_v58 = vpack.i.bf16 %v1329_v51, %v1328_v52  ;;  %v1341_v59 = vld [vmem:[#allocation2 + $0x73] sm:$0xff]  ;;  %v1352_v0 = vld [vmem:[#allocation2 + $0x64] sm:$0xff] }
 0x2ad   : > { %2824 = vrot.lane.b32.xlu1 %v2823_v28, %s2898_s30  ;;  %v2843_v62 = vpack.i.bf16 %v1341_v59, %v1340_v60  ;;  %v1353_v63 = vld [vmem:[#allocation2 + $0x74] sm:$0xff]  ;;  %v1330_v27 = vld [vmem:[#allocation2 + $0x82] sm:$0xff] }
 0x2ae   : > { %v1343_v1 = vld [vmem:[#allocation2 + $0x93] sm:$0xff]  ;;  %v2848_v2 = vpack.i.bf16 %v1353_v63, %v1352_v0  ;;  %v1354_v4 = vld [vmem:[#allocation2 + $0x84] sm:$0xff] }
 0x2af   : > { %v1331_v49 = vld [vmem:[#allocation2 + $0x92] sm:$0xff]  ;;  %v1302_v46 = vld [vmem:[#allocation2 + $0x40] sm:$0xff] }
 0x2b0   : > { %2809 = vrot.lane.b32.xlu0 %v2808_v14, %s2899_s7  ;;  %v1355_v50 = vld [vmem:[#allocation2 + $0x94] sm:$0xff]  ;;  %v1300_v32 = vld [vmem:[#allocation2 + $0x20] sm:$0xff] }
 0x2b1   : > { %2829 = vrot.lane.b32.xlu1 %v2828_v39, %s2899_s7  ;;  %v1303_v29 = vld [vmem:[#allocation2 + $0x50] sm:$0xff] }
 0x2b2   : > { %v1301_v55 = vld [vmem:[#allocation2 + $0x30] sm:$0xff] }
 0x2b4   : > { %1641 = vrot.lane.b32.xlu0 %v1318_v45, %s2897_s29 }
 0x2b5   : > { %2834 = vrot.lane.b32.xlu1 %v2833_v47, %s2897_s29 }
 0x2b8   : > { %1649 = vrot.lane.b32.xlu0 %v1342_v54, %s2898_s30 }
 0x2b9   : > { %2839 = vrot.lane.b32.xlu1 %v2838_v58, %s2900_s8 }
 0x2bc   : > { %1774 = vrot.lane.b32.xlu0 %v1319_v61, %s2897_s29 }
 0x2bd   : > { %2844 = vrot.lane.b32.xlu1 %v2843_v62, %s2898_s30 }
 0x2c0   : > { %1782 = vrot.lane.b32.xlu0 %v1343_v1, %s2898_s30  ;;  %v2877_v1 = vld [vmem:[%s3494_s4 + $0x80] sm:$0xff]  }
 0x2c1   : > { %2849 = vrot.lane.b32.xlu1 %v2848_v2, %s2899_s7 }
 0x2c4   : > { %1895 = vrot.lane.b32.xlu0 %v3094_v6, %s2897_s29 }
 0x2c5   : > { %1645 = vrot.lane.b32.xlu1 %v1330_v27, %s2900_s8 }
 0x2c8   : > { %1903 = vrot.lane.b32.xlu0 %v3099_v10, %s2898_s30 }
 0x2c9   : > { %1653 = vrot.lane.b32.xlu1 %v1354_v4, %s2899_s7  ;;  %v2878_v4 = vld [vmem:[%s3494_s4 + $0x88] ss:$0 sps:$4 sm:$0xff]  }
 0x2cc   : > { %2016 = vrot.lane.b32.xlu0 %v3104_v15, %s2897_s29 }
 0x2cd   : > { %1778 = vrot.lane.b32.xlu1 %v1331_v49, %s2900_s8 }
 0x2d0   : > { %2024 = vrot.lane.b32.xlu0 %v3112_v19, %s2898_s30 }
 0x2d1   : > { %1786 = vrot.lane.b32.xlu1 %v1355_v50, %s2899_s7 }
 0x2d5   : > { %1899 = vrot.lane.b32.xlu1 %v3106_v18, %s2900_s8 }
 0x2d9   : > { %1907 = vrot.lane.b32.xlu1 %v3114_v20, %s2899_s7 }
 0x2dd   : > { %2020 = vrot.lane.b32.xlu1 %v3120_v22, %s2900_s8 }
 0x2e1   : > { %2028 = vrot.lane.b32.xlu1 %v3126_v23, %s2899_s7  ;;  %s2364_s7 = sshll.u32 %s3498_s22, 6 }
 0x2e2   : > { %s3462_s18 = scalar_lea.vmem %s3496_s6, %s2364_s7 }
 0x316   : > { %v2795_v6 = vpop.permute.xlu0 %2794 }
 0x317   : > { %v2815_v10 = vpop.permute.xlu1 %2814  ;;  %v2797_v7 = vunpack.i.h.bf16 %v2795_v6  ;;  %v2796_v19 = vunpack.i.l.bf16 %v2795_v6 }
 0x318   : > { %v2817_v13 = vunpack.i.h.bf16 %v2815_v10  ;;  %v2816_v24 = vunpack.i.l.bf16 %v2815_v10  ;;  %v1698_v10 = vsel %vm709_vm15, %v2878_v4, 0 }
 0x319   : > { %v1499_v23 = vsel %vm405_vm1, %v1302_v46, %v2796_v19  ;;  %v1500_v31 = vsel %vm405_vm1, %v1303_v29, %v2797_v7 }
 0x31a   : > { %v2800_v15 = vpop.permute.xlu0 %2799  ;;  %v1497_v17 = vsel %vm405_vm1, %v1300_v32, %v2816_v24  ;;  %v1498_v34 = vsel %vm405_vm1, %v1301_v55, %v2817_v13  ;;  %v1304_v13 = vld [vmem:[#allocation2 + $0x60] sm:$0xff]  ;;  %v1305_v24 = vld [vmem:[#allocation2 + $0x70] sm:$0xff] }
 0x31b   : > { %v2820_v3 = vpop.permute.xlu1 %2819  ;;  %v2802_v56 = vunpack.i.h.bf16 %v2800_v15  ;;  %v2801_v25 = vunpack.i.l.bf16 %v2800_v15  ;;  %v2879_v15 = vld [vmem:[%s3494_s4 + $0x8c] sm:$0xff]  }
 0x31c   : > { %v2822_v8 = vunpack.i.h.bf16 %v2820_v3  ;;  %v2821_v26 = vunpack.i.l.bf16 %v2820_v3 }
 0x31d   : > { %v1507_v35 = vsel %vm296_vm0, %v1499_v23, %v2801_v25  ;;  %v1508_v36 = vsel %vm296_vm0, %v1500_v31, %v2802_v56 }
 0x31e   : > { %v2805_v18 = vpop.permute.xlu0 %2804  ;;  %v1505_v37 = vsel %vm296_vm0, %v1497_v17, %v2821_v26  ;;  %v1506_v38 = vsel %vm296_vm0, %v1498_v34, %v2822_v8 }
 0x31f   : > { %v2825_v20 = vpop.permute.xlu1 %2824  ;;  %v2807_v22 = vunpack.i.h.bf16 %v2805_v18  ;;  %v2806_v30 = vunpack.i.l.bf16 %v2805_v18 }
 0x320   : > { %v2827_v33 = vunpack.i.h.bf16 %v2825_v20  ;;  %v2826_v28 = vunpack.i.l.bf16 %v2825_v20 }
 0x321   : > { %v1515_v45 = vsel %vm654_vm8, %v1507_v35, %v2806_v30  ;;  %v1516_v47 = vsel %vm654_vm8, %v1508_v36, %v2807_v22  ;;  %v2880_v35 = vld [vmem:[%s3494_s4 + $0x94] sm:$0xff]  }
 0x322   : > { %v2810_v14 = vpop.permute.xlu0 %2809  ;;  %v1513_v54 = vsel %vm654_vm8, %v1505_v37, %v2826_v28  ;;  %v1514_v58 = vsel %vm654_vm8, %v1506_v38, %v2827_v33  ;;  %v1306_v28 = vld [vmem:[#allocation2 + $0x80] sm:$0xff] }
 0x323   : > { %v2812_v39 = vunpack.i.h.bf16 %v2810_v14  ;;  %v2811_v40 = vunpack.i.l.bf16 %v2810_v14  ;;  %v2830_v42 = vpop.permute.xlu1 %2829 }
 0x324   : > { %v2832_v51 = vunpack.i.h.bf16 %v2830_v42  ;;  %v2831_v52 = vunpack.i.l.bf16 %v2830_v42 }
 0x325   : > { %v1523_v59 = vsel %vm663_vm9, %v1515_v45, %v2811_v40  ;;  %v1524_v60 = vsel %vm663_vm9, %v1516_v47, %v2812_v39  ;;  %v2881_v39 = vld [vmem:[%s3494_s4 + $0x9c] ss:$0 sps:$4 sm:$0xff]   ;;  %v2882_v47 = vld [vmem:[%s3494_s4 + $0xa0] sm:$0xff]  }
 0x326   : > { %v1521_v61 = vsel %vm663_vm9, %v1513_v54, %v2831_v52  ;;  %v1522_v62 = vsel %vm663_vm9, %v1514_v58, %v2832_v51  ;;  %v3357_v2 = vpack.c.bf16 %v1524_v60, %v1523_v59  ;;  %v1642_v33 = vpop.permute.xlu0 %1641  ;;  %v1819_v45 = vsel %vm709_vm15, %v2881_v39, 0  ;;  %v1307_v54 = vld [vmem:[#allocation2 + $0x90] sm:$0xff] }
 0x327   : > { %v3352_v63 = vpack.c.bf16 %v1522_v62, %v1521_v61  ;;  %v2835_v0 = vpop.permute.xlu1 %2834  ;;  %v1660_v32 = vpack.c.bf16 %v1521_v61, %v3268_v21  ;;  %v1661_v17 = vpack.c.bf16 %v1523_v59, %v1522_v62  ;;  %v1656_v34 = vsel %vm405_vm1, %v1306_v28, %v1642_v33  ;;  %v2883_v59 = vld [vmem:[%s3494_s4 + $0xa8] sm:$0xff]  }
 0x328   : > { %v2837_v49 = vunpack.i.h.bf16 %v2835_v0  ;;  %v2836_v50 = vunpack.i.l.bf16 %v2835_v0  ;;  %v2884_v0 = vld [vmem:[%s3494_s4 + $0xb0] ss:$0 sps:$4 sm:$0xff]  }
 0x329   : > { %2527 = vmatmul.mubr.msk.bf16.vlgmr.msra.gmra.mrb[8].mxu0 %vm696_vm14, %v3352_v63 }
 0x32a   : > { %2530 = vmatprep.mubr.msk.bf16.mxu0 %vm696_vm14, %v3357_v2  ;;  %2535 = vmatpush3.bf16.msra.mxu0 %v3305_v43  ;;  %v1501_v56 = vsel %vm405_vm1, %v1304_v13, %v2836_v50  ;;  %v1502_v25 = vsel %vm405_vm1, %v1305_v24, %v2837_v49  ;;  %v1650_v21 = vpop.permute.xlu0 %1649  ;;  %v2885_v49 = vld [vmem:[%s3494_s4 + $0xb4] sm:$0xff]  }
 0x32b   : > { %v2840_v27 = vpop.permute.xlu1 %2839  ;;  %2536 = vmatprep.subr.bf16.mxu0 %v2877_v1 }
 0x32c   : > { %v2842_v3 = vunpack.i.h.bf16 %v2840_v27  ;;  %v2841_v43 = vunpack.i.l.bf16 %v2840_v27 }
 0x32e   : > { %2537 = vmatpush3.bf16.msra.mxu0 %v2877_v1  ;;  %v1509_v8 = vsel %vm296_vm0, %v1501_v56, %v2841_v43  ;;  %v1510_v26 = vsel %vm296_vm0, %v1502_v25, %v2842_v3  ;;  %v1775_v52 = vpop.permute.xlu0 %1774  ;;  %v2886_v43 = vld [vmem:[%s3494_s4 + $0xbc] sm:$0xff]  }
 0x32f   : > { %v2845_v6 = vpop.permute.xlu1 %2844  ;;  %2676 = vmatprep.subr.msk.bf16.mxu0 %vm709_vm15, %v2878_v4  ;;  %v1789_v58 = vsel %vm405_vm1, %v1307_v54, %v1775_v52  ;;  %v1940_v4 = vsel %vm709_vm15, %v2884_v0, 0 }
 0x330   : > { %v2847_v7 = vunpack.i.h.bf16 %v2845_v6  ;;  %v2846_v19 = vunpack.i.l.bf16 %v2845_v6 }
 0x332   : > { %2539 = vmatpush3.bf16.msra.mxu0 %v1698_v10  ;;  %v1517_v29 = vsel %vm654_vm8, %v1509_v8, %v2846_v19  ;;  %v1518_v22 = vsel %vm654_vm8, %v1510_v26, %v2847_v7  ;;  %v1783_v62 = vpop.permute.xlu0 %1782 }
 0x333   : > { %v2850_v18 = vpop.permute.xlu1 %2849  ;;  %2548 = vmatprep.subr.bf16.mxu0 %v2879_v15 }
 0x334   : > { %v2852_v20 = vunpack.i.h.bf16 %v2850_v18  ;;  %v2851_v46 = vunpack.i.l.bf16 %v2850_v18 }
 0x336   : > { %v1525_v30 = vsel %vm663_vm9, %v1517_v29, %v2851_v46  ;;  %v1526_v23 = vsel %vm663_vm9, %v1518_v22, %v2852_v20  ;;  %v1896_v50 = vpop.permute.xlu0 %1895 }
 0x337   : > { %v3380_v31 = vpack.c.bf16 %v1526_v23, %v1525_v30  ;;  %v1646_v55 = vpop.permute.xlu1 %1645  ;;  %v1662_v36 = vpack.c.bf16 %v1525_v30, %v1524_v60  ;;  %v1910_v6 = vsel %vm405_vm1, %v3225_v11, %v1896_v50  ;;  %v2887_v11 = vld [vmem:[%s3494_s4 + $0xc4] ss:$0 sps:$4 sm:$0xff]  }
 0x338   : > { %v1657_v14 = vsel %vm296_vm0, %v1656_v34, %v1646_v55  ;;  %v2061_v56 = vsel %vm709_vm15, %v2887_v11, 0 }
 0x339   : > { %2531 = vmatmul.mubr.msk.bf16.gmra.mrb[12].mxu0 %vm696_vm14, %v3380_v31  ;;  %v1658_v38 = vsel %vm654_vm8, %v1657_v14, %v1650_v21 }
 0x33a   : > { %2540 = vmatprep.mubr.msk.bf16.mxu0 %vm696_vm14, %v1660_v32  ;;  %v1904_v3 = vpop.permute.xlu0 %1903 }
 0x33b   : > { %v1654_v37 = vpop.permute.xlu1 %1653 }
 0x33c   : > { %v1659_v40 = vsel %vm663_vm9, %v1658_v38, %v1654_v37 }
 0x33d   : > { %v1663_v42 = vpack.c.bf16 %v1659_v40, %v1526_v23 }
 0x33e   : > { %v2017_v25 = vpop.permute.xlu0 %2016 }
 0x33f   : > { %v1779_v51 = vpop.permute.xlu1 %1778  ;;  %v2031_v18 = vsel %vm405_vm1, %v3244_v57, %v2017_v25  ;;  %v2300_v57 = vld [vmem:[%s3495_s5 + $0x1] ss:$0 sm:$0xff] }
 0x340   : > { %v1790_v60 = vsel %vm296_vm0, %v1789_v58, %v1779_v51 }
 0x341   : > { %2541 = vmatmul.mubr.msk.bf16.vlgmr.msra.gmra.mrb[8].mxu0 %vm696_vm14, %v1661_v17 }
 0x342   : > { %2549 = vmatpush3.bf16.msra.mxu0 %v2879_v15  ;;  %2544 = vmatprep.mubr.msk.bf16.mxu0 %vm696_vm14, %v1662_v36  ;;  %v2025_v20 = vpop.permute.xlu0 %2024 }
 0x343   : > { %2550 = vmatprep.subr.bf16.mxu0 %v2880_v35  ;;  %v1787_v61 = vpop.permute.xlu1 %1786 }
 0x346   : > { %2551 = vmatpush3.bf16.msra.mxu0 %v2880_v35 }
 0x347   : > { %2677 = vmatprep.subr.msk.bf16.mxu0 %vm709_vm15, %v2881_v39  ;;  %v1900_v10 = vpop.permute.xlu1 %1899 }
 0x348   : > { %v1911_v15 = vsel %vm296_vm0, %v1910_v6, %v1900_v10 }
 0x349   : > { %2545 = vmatmul.mubr.msk.bf16.gmra.mrb[12].mxu0 %vm696_vm14, %v1663_v42  ;;  %v1912_v7 = vsel %vm654_vm8, %v1911_v15, %v1904_v3 }
 0x34a   : > { %2554 = vmatprep.mubr.msk.bf16.mxu0 %vm696_vm14, %v3352_v63  ;;  %2553 = vmatpush3.bf16.msra.mxu0 %v1819_v45  ;;  %v1791_v63 = vsel %vm654_vm8, %v1790_v60, %v1783_v62 }
 0x34b   : > { %2562 = vmatprep.subr.bf16.mxu0 %v2882_v47  ;;  %v1792_v1 = vsel %vm663_vm9, %v1791_v63, %v1787_v61  ;;  %v1908_v19 = vpop.permute.xlu1 %1907 }
 0x34c   : > { %v1793_v27 = vpack.c.bf16 %v1792_v1, %v1659_v40  ;;  %v1913_v13 = vsel %vm663_vm9, %v1912_v7, %v1908_v19 }
 0x34d   : > { %v1914_v24 = vpack.c.bf16 %v1913_v13, %v1792_v1 }
 0x34f   : > { %v2021_v8 = vpop.permute.xlu1 %2020 }
 0x350   : > { %v2032_v26 = vsel %vm296_vm0, %v2031_v18, %v2021_v8 }
 0x351   : > { %2555 = vmatmul.mubr.msk.bf16.vlgmr.msra.gmra.mrb[8].mxu0 %vm696_vm14, %v3357_v2  ;;  %v2033_v46 = vsel %vm654_vm8, %v2032_v26, %v2025_v20 }
 0x352   : > { %2563 = vmatpush3.bf16.msra.mxu0 %v2882_v47  ;;  %2558 = vmatprep.mubr.msk.bf16.mxu0 %vm696_vm14, %v3380_v31 }
 0x353   : > { %2564 = vmatprep.subr.bf16.mxu0 %v2883_v59  ;;  %v2029_v29 = vpop.permute.xlu1 %2028 }
 0x354   : > { %v2034_v22 = vsel %vm663_vm9, %v2033_v46, %v2029_v29 }
 0x356   : > { %2565 = vmatpush3.bf16.msra.mxu0 %v2883_v59 }
 0x357   : > { %2678 = vmatprep.subr.msk.bf16.mxu0 %vm709_vm15, %v2884_v0 }
 0x359   : > { %2559 = vmatmul.mubr.msk.bf16.gmra.mrb[12].mxu0 %vm696_vm14, %v1793_v27 }
 0x35a   : > { %2568 = vmatprep.mubr.msk.bf16.mxu0 %vm696_vm14, %v1661_v17  ;;  %2567 = vmatpush3.bf16.msra.mxu0 %v1940_v4 }
 0x35b   : > { %2576 = vmatprep.subr.bf16.mxu0 %v2885_v49 }
 0x361   : > { %2569 = vmatmul.mubr.msk.bf16.vlgmr.msra.gmra.mrb[8].mxu0 %vm696_vm14, %v1662_v36 }
 0x362   : > { %2577 = vmatpush3.bf16.msra.mxu0 %v2885_v49  ;;  %2572 = vmatprep.mubr.msk.bf16.mxu0 %vm696_vm14, %v1663_v42 }
 0x363   : > { %2578 = vmatprep.subr.bf16.mxu0 %v2886_v43 }
 0x366   : > { %2579 = vmatpush3.bf16.msra.mxu0 %v2886_v43 }
 0x367   : > { %2679 = vmatprep.subr.msk.bf16.mxu0 %vm709_vm15, %v2887_v11 }
 0x369   : > { %2573 = vmatmul.mubr.msk.bf16.gmra.mrb[12].mxu0 %vm696_vm14, %v1914_v24 }
 0x36a   : > { %2582 = vmatprep.mubr.msk.bf16.mxu0 %vm696_vm14, %v3357_v2  ;;  %2581 = vmatpush3.bf16.msra.mxu0 %v2061_v56  ;;  %v2035_v2 = vpack.c.bf16 %v2034_v22, %v1913_v13 }
 0x371   : > { %2583 = vmatmul.mubr.msk.bf16.vlgmr.msra.gmra.mrb[8].mxu0 %vm696_vm14, %v3380_v31 }
 0x372   : > { %2586 = vmatprep.mubr.msk.bf16.mxu0 %vm696_vm14, %v1793_v27 }
 0x379   : > { %2587 = vmatmul.mubr.msk.bf16.gmra.mrb[12].mxu0 %vm696_vm14, %v2035_v2 }
 0x444   : > { %v2584_v30 = vpop.f32.mrb[8].mxu0 }
 0x445   : > { %v2598_v23 = vadd.f32 %v2584_v30, %v2300_v57  ;;  %v2097_v32 = vpop.f32.mrb[9].mxu0 }
 0x446   : > { %v2599_v55 = vadd.f32 %v2300_v57, %v2097_v32  ;;  %v2585_v33 = vpop.f32.mrb[10].mxu0 }
 0x447   : > { %v2138_v28 = vmax.f32 %v2598_v23, 0.0  ;;  %v2600_v17 = vadd.f32 %v2585_v33, %v2300_v57  ;;  %v2100_v31 = vpop.f32.mrb[11].mxu0 }
 0x448   : > { %v2136_v34 = vmax.f32 %v2599_v55, 0.0  ;;  %v2601_v35 = vadd.f32 %v2300_v57, %v2100_v31 }
 0x449   : > { %v2146_v36 = vadd.f32 %v2138_v28, %v3011_v41  ;;  %v2139_v14 = vmax.f32 %v2600_v17, 0.0 }
 0x44a   : > { %v2144_v37 = vadd.f32 %v2136_v34, %v3016_v44  ;;  %v2137_v21 = vmax.f32 %v2601_v35, 0.0 }
 0x44b   : > { %v2154_v38 = vmax.f32 %v2146_v36, 0.0  ;;  %v2147_v39 = vadd.f32 %v2139_v14, %v3021_v48 }
 0x44c   : > { %v2152_v40 = vmax.f32 %v2144_v37, 0.0  ;;  %v2145_v42 = vadd.f32 %v2137_v21, %v3030_v53  ;;  %v2588_v41 = vpop.f32.mrb[12].mxu0 }
 0x44d   : > { %2162 = vst.msk [vmem:[%s3462_s18 + $0x10] sm:$0xff] %vm405_vm1, %v2154_v38  ;;  %v2155_v45 = vmax.f32 %v2147_v39, 0.0  ;;  %v2602_v47 = vadd.f32 %v2588_v41, %v2300_v57  ;;  %v2113_v51 = vpop.f32.mrb[13].mxu0 }
 0x44e   : > { %2160 = vst.msk [vmem:[%s3462_s18] sm:$0xff] %vm405_vm1, %v2152_v40  ;;  %v2153_v52 = vmax.f32 %v2145_v42, 0.0  ;;  %v2603_v54 = vadd.f32 %v2300_v57, %v2113_v51  ;;  %v2589_v58 = vpop.f32.mrb[14].mxu0 }
 0x44f   : > { %2163 = vst.msk [vmem:[%s3462_s18 + $0x18] sm:$0xff] %vm405_vm1, %v2155_v45  ;;  %v2142_v44 = vmax.f32 %v2602_v47, 0.0  ;;  %v2604_v48 = vadd.f32 %v2589_v58, %v2300_v57  ;;  %v2116_v59 = vpop.f32.mrb[15].mxu0 }
 0x450   : > { %2161 = vst.msk [vmem:[%s3462_s18 + $0x8] sm:$0xff] %vm405_vm1, %v2153_v52  ;;  %v2140_v53 = vmax.f32 %v2603_v54, 0.0  ;;  %v2605_v60 = vadd.f32 %v2300_v57, %v2116_v59 }
 0x451   : > { %v2150_v61 = vadd.f32 %v2142_v44, %v3042_v5  ;;  %v2143_v62 = vmax.f32 %v2604_v48, 0.0 }
 0x452   : > { %v2148_v63 = vadd.f32 %v2140_v53, %v3048_v9  ;;  %v2141_v0 = vmax.f32 %v2605_v60, 0.0 }
 0x453   : > { %v2158_v1 = vmax.f32 %v2150_v61, 0.0  ;;  %v2151_v27 = vadd.f32 %v2143_v62, %v3053_v12 }
 0x454   : > { %v2156_v4 = vmax.f32 %v2148_v63, 0.0  ;;  %v2149_v49 = vadd.f32 %v2141_v0, %v3058_v16 }
 0x455   : > { %2166 = vst.msk [vmem:[%s3462_s18 + $0x30] sm:$0xff] %vm405_vm1, %v2158_v1  ;;  %v2159_v50 = vmax.f32 %v2151_v27, 0.0 }
 0x456   : > { %2164 = vst.msk [vmem:[%s3462_s18 + $0x20] sm:$0xff] %vm405_vm1, %v2156_v4  ;;  %v2157_v6 = vmax.f32 %v2149_v49, 0.0 }
 0x457   : > { %2167 = vst.msk [vmem:[%s3462_s18 + $0x38] sm:$0xff] %vm405_vm1, %v2159_v50 }
 0x458   : > { %2165 = vst.msk [vmem:[%s3462_s18 + $0x28] sm:$0xff] %vm405_vm1, %v2157_v6 }
 0x459 PF: > { %s16_s21 = sadd.s32 1, %s2894_s21  }
 0x45a   : > { %p13_p4 = scmp.ge.s32.totalorder %s16_s21, 4  }
 0x45c   :  { %15 = sbr.rel (!%p13_p4) target bundleno = 1 (0x1), region = 86 }

</bundles_post_ra>
